<compile_context>
chip_gen: v7x
topology: tpu7x:2x2x1
jax: 0.10.0
libtpu: 0.0.40
codegen_flags: <defaults>
</compile_context>

<pallas_src>
import math
import jax
import jax.numpy as jnp
from jax.experimental import pallas as pl
from jax.experimental.pallas import tpu as pltpu

EMB = 32            # emb_size
HEADS = 4           # num_heads
HEAD_DIM = EMB // HEADS
DIM_FF = 64
NUM_CLASSES = 5
NC_PAD = 8          # classifier lanes padded to 8; sliced back in the wrapper
KW = 8              # conv1 kernel width (kernel_size=[1, 8])
PAD_LEFT = (KW - 1) // 2          # torch 'same' for k=8: left 3, right 4
PAD_RIGHT = KW - 1 - PAD_LEFT
C1 = 4 * EMB        # conv1 output channels
BN_EPS = 1e-5
LN_EPS = 1e-5

MXU_DT = jnp.bfloat16     # MXU operand dtype (f32 accumulation everywhere)
GELU_TANH = True          # tanh-GELU (perf review); False -> exact-erf parity

# rows of the packed per-channel table (all (1, EMB)); rows 8..11 = head masks
(V_SHIFT2, V_ALN_G, V_ALN_B, V_LN1_G, V_LN1_B,
 V_FFB2, V_LN2_G, V_LN2_B, V_HMASK) = range(9)


# ---------------------------------------------------------------------------
# in-kernel math helpers (everything here lowers on Mosaic)
# ---------------------------------------------------------------------------
def _erf(x):
    # Abramowitz & Stegun 7.1.26, |err| < 1.5e-7 (exact-erf parity path)
    a1, a2, a3, a4, a5 = (0.254829592, -0.284496736, 1.421413741,
                          -1.453152027, 1.061405429)
    p = 0.3275911
    sgn = jnp.where(x < 0.0, -1.0, 1.0)
    z = jnp.abs(x)
    t = 1.0 / (1.0 + p * z)
    poly = ((((a5 * t + a4) * t + a3) * t + a2) * t + a1) * t
    return sgn * (1.0 - poly * jnp.exp(-z * z))


def _gelu(x):
    if GELU_TANH:
        # torch.nn.GELU() default is exact erf; tanh form deviates by <~1e-3.
        c = 0.7978845608028654  # sqrt(2/pi)
        return 0.5 * x * (1.0 + jnp.tanh(c * (x + 0.044715 * x * x * x)))
    return 0.5 * x * (1.0 + _erf(x * 0.7071067811865476))


def _layer_norm(x, g, b):
    mu = jnp.mean(x, axis=-1, keepdims=True)
    var = jnp.mean(jnp.square(x - mu), axis=-1, keepdims=True)
    return (x - mu) * jax.lax.rsqrt(var + LN_EPS) * g + b


# ---------------------------------------------------------------------------
# the fused kernel: one tile of TB batch elements per grid step
# ---------------------------------------------------------------------------
def convtran_kernel(xcol_ref, w1_ref, shift1_ref, w2_ref, vecs_ref, pe_ref,
                    wqkv_ref, ffw1_ref, ffb1_ref, ffw2_ref, outw_ref, outb_ref,
                    o_ref):
    L = pe_ref.shape[0]
    M = xcol_ref.shape[1]          # TB * L
    TB = M // L

    # --- embed_layer: Conv2d(1, 4*E, [1,8], 'same') + folded BN, one MXU matmul
    col = xcol_ref[0]                                              # (M, KW) bf16
    h = jnp.dot(col, w1_ref[...], preferred_element_type=jnp.float32)   # (M, C1)
    h = _gelu(h + shift1_ref[...]).astype(MXU_DT)                  # producer-side bf16

    # --- embed_layer2: 1x1 conv + folded BN + GELU
    x_src = jnp.dot(h, w2_ref[...], preferred_element_type=jnp.float32)
    x_src = _gelu(x_src + vecs_ref[V_SHIFT2:V_SHIFT2 + 1, :])      # (M, EMB) f32

    # --- tAPE fixed positional encoding (dropout = identity at inference)
    x_pos = (x_src.reshape(TB, L, EMB) + pe_ref[...]).reshape(M, EMB)

    # --- multi-head attention: fused QKV, heads folded into the batch axis
    qkv = jnp.dot(x_pos.astype(MXU_DT), wqkv_ref[...],
                  preferred_element_type=jnp.float32)              # (M, 3*EMB)

    def gather_heads(off):
        # (M, EMB) column range -> (HEADS*TB, L, HEAD_DIM), head-major batches
        return jnp.concatenate(
            [qkv[:, off + hh * HEAD_DIM: off + (hh + 1) * HEAD_DIM]
                 .reshape(TB, L, HEAD_DIM)
             for hh in range(HEADS)], axis=0).astype(MXU_DT)

    qh = gather_heads(0)
    kh = gather_heads(EMB)
    v3 = qkv[:, 2 * EMB:3 * EMB].reshape(TB, L, EMB)
    # lane-masked full-width V per head (masks prepacked in vecs): the p@V
    # matmul then writes each head straight into its own lanes -> no 8-lane
    # masked stores, no lane concat, heads combine with plain adds.
    v_exp = jnp.concatenate(
        [v3 * vecs_ref[V_HMASK + hh:V_HMASK + hh + 1, :] for hh in range(HEADS)],
        axis=0).astype(MXU_DT)                                     # (H*TB, L, EMB)

    # ConvTran Attention uses scale = emb_size ** -0.5 (not head_dim).
    # TODO(synk): for large seq_len, tile this flash-style instead of full (L,L).
    s = jnp.einsum('bqd,bkd->bqk', qh, kh,
                   preferred_element_type=jnp.float32) * (EMB ** -0.5)
    s = s - jnp.max(s, axis=-1, keepdims=True)
    p = jnp.exp(s)
    p = p * pl.reciprocal(jnp.sum(p, axis=-1, keepdims=True), approx=True)
    o_full = jnp.einsum('bqk,bkd->bqd', p.astype(MXU_DT), v_exp,
                        preferred_element_type=jnp.float32)        # (H*TB, L, EMB)
    attn = o_full[0:TB]
    for hh in range(1, HEADS):
        attn = attn + o_full[hh * TB:(hh + 1) * TB]
    attn = attn.reshape(M, EMB)
    attn = _layer_norm(attn, vecs_ref[V_ALN_G:V_ALN_G + 1, :],
                       vecs_ref[V_ALN_B:V_ALN_B + 1, :])           # Attention.to_out

    # --- residual + LayerNorm (residual uses x_src WITHOUT pos encoding)
    att = _layer_norm(x_src + attn, vecs_ref[V_LN1_G:V_LN1_G + 1, :],
                      vecs_ref[V_LN1_B:V_LN1_B + 1, :])

    # --- FeedForward (Linear -> ReLU -> Linear), dropout = identity
    f = jnp.dot(att.astype(MXU_DT), ffw1_ref[...],
                preferred_element_type=jnp.float32) + ffb1_ref[...]
    f = jnp.maximum(f, 0.0)
    f = jnp.dot(f.astype(MXU_DT), ffw2_ref[...],
                preferred_element_type=jnp.float32) + vecs_ref[V_FFB2:V_FFB2 + 1, :]
    out = _layer_norm(att + f, vecs_ref[V_LN2_G:V_LN2_G + 1, :],
                      vecs_ref[V_LN2_B:V_LN2_B + 1, :])            # (M, EMB)

    # --- AdaptiveAvgPool1d(1) over the sequence + final Linear (padded classes)
    pooled = jnp.mean(out.reshape(TB, L, EMB), axis=1)             # (TB, EMB)
    logits = jnp.dot(pooled.astype(MXU_DT), outw_ref[...],
                     preferred_element_type=jnp.float32) + outb_ref[...]
    o_ref[0] = logits.astype(o_ref.dtype)                          # (TB, NC_PAD)


# ---------------------------------------------------------------------------
# plain-JAX glue: tAPE table, parameter construction / folding, pallas_call
# ---------------------------------------------------------------------------
def _tape_pe(L, d):
    position = jnp.arange(L, dtype=jnp.float32)[:, None]
    div_term = jnp.exp(jnp.arange(0, d, 2, dtype=jnp.float32) * (-math.log(10000.0) / d))
    arg = position * div_term * (d / L)
    pe = jnp.zeros((L, d), jnp.float32)
    pe = pe.at[:, 0::2].set(jnp.sin(arg))
    pe = pe.at[:, 1::2].set(jnp.cos(arg))
    return pe


def init_params(key, L):
    keys = jax.random.split(key, 32)
    it = iter(keys)

    def nrm(shape, scale=0.1):
        return scale * jax.random.normal(next(it), shape, dtype=jnp.float32)

    def fold_bn(gamma, beta, mean, var):
        s = gamma / jnp.sqrt(var + BN_EPS)
        return s, beta - mean * s

    # conv1: torch weight (4*EMB, 1, 1, KW) stored transposed as (KW, 4*EMB)
    w1 = nrm((KW, C1))
    b1 = nrm((1, C1))
    bn1_scale, bn1_shift = fold_bn(1.0 + nrm((1, C1)), nrm((1, C1)),
                                   nrm((1, C1)),
                                   1.0 + 0.1 * jnp.abs(jax.random.normal(next(it), (1, C1))))
    # conv2: torch weight (EMB, 4*EMB, 1, 1) stored transposed as (4*EMB, EMB)
    w2 = nrm((C1, EMB))
    b2 = nrm((1, EMB))
    bn2_scale, bn2_shift = fold_bn(1.0 + nrm((1, EMB)), nrm((1, EMB)),
                                   nrm((1, EMB)),
                                   1.0 + 0.1 * jnp.abs(jax.random.normal(next(it), (1, EMB))))
    pe = _tape_pe(L, EMB)
    # attention projections (torch Linear weight is (out,in); stored as (in,out))
    wq = nrm((EMB, EMB)); wk = nrm((EMB, EMB)); wv = nrm((EMB, EMB))
    aln_g = 1.0 + nrm((1, EMB)); aln_b = nrm((1, EMB))      # Attention.to_out LayerNorm
    ln1_g = 1.0 + nrm((1, EMB)); ln1_b = nrm((1, EMB))
    ffw1 = nrm((EMB, DIM_FF)); ffb1 = nrm((1, DIM_FF))
    ffw2 = nrm((DIM_FF, EMB)); ffb2 = nrm((1, EMB))
    ln2_g = 1.0 + nrm((1, EMB)); ln2_b = nrm((1, EMB))
    outw = nrm((EMB, NUM_CLASSES)); outb = nrm((1, NUM_CLASSES))

    return (w1, b1, bn1_scale, bn1_shift, w2, b2, bn2_scale, bn2_shift, pe,
            wq, wk, wv, aln_g, aln_b, ln1_g, ln1_b,
            ffw1, ffb1, ffw2, ffb2, ln2_g, ln2_b, outw, outb)


def _prepare_params(params):
    """Fold BN/bias into conv weights, fuse QKV, pack small vectors + head
    masks, pad the classifier, and pre-cast all MXU RHS operands to bf16."""
    (w1, b1, bn1_s, bn1_b, w2, b2, bn2_s, bn2_b, pe,
     wq, wk, wv, aln_g, aln_b, ln1_g, ln1_b,
     ffw1, ffb1, ffw2, ffb2, ln2_g, ln2_b, outw, outb) = params
    w1f = (w1 * bn1_s).astype(MXU_DT)                       # (KW, C1)
    shift1 = b1 * bn1_s + bn1_b                             # (1, C1) f32
    w2f = (w2 * bn2_s).astype(MXU_DT)                       # (C1, EMB)
    shift2 = b2 * bn2_s + bn2_b                             # (1, EMB) f32
    wqkv = jnp.concatenate([wq, wk, wv], axis=1).astype(MXU_DT)  # (EMB, 3*EMB)
    lane = jnp.arange(EMB)
    head_masks = jnp.stack(
        [((lane >= hh * HEAD_DIM) & (lane < (hh + 1) * HEAD_DIM)).astype(jnp.float32)
         for hh in range(HEADS)], axis=0)                   # (HEADS, EMB)
    vecs = jnp.concatenate([shift2, aln_g, aln_b, ln1_g, ln1_b,
                            ffb2, ln2_g, ln2_b, head_masks], axis=0)  # (12, EMB)
    outw_p = jnp.zeros((EMB, NC_PAD), jnp.float32).at[:, :NUM_CLASSES].set(outw)
    outb_p = jnp.zeros((1, NC_PAD), jnp.float32).at[:, :NUM_CLASSES].set(outb)
    return (w1f, shift1, w2f, vecs, pe, wqkv,
            ffw1.astype(MXU_DT), ffb1, ffw2.astype(MXU_DT),
            outw_p.astype(MXU_DT), outb_p)


def _device_kind():
    try:
        return jax.devices()[0].device_kind.lower()
    except Exception:
        return ""


def _vmem_bytes_estimate(tb, L):
    """Rough upper bound on live VMEM (streamed block + compiler temporaries)."""
    M = tb * L
    b = 0
    b += 2 * M * 128 * 2                       # double-buffered im2col block (lane-padded, bf16)
    b += M * C1 * 4 * 3                        # conv1 slab + GELU temporaries
    b += M * 3 * EMB * 4 * 3                   # qkv + head-gather copies
    b += HEADS * tb * L * L * 4 * 4            # scores / exp / probs (+bf16 copy)
    b += HEADS * M * EMB * 4 * 2               # masked V + widened p@V output
    b += M * DIM_FF * 4 * 2                    # FF hidden
    b += M * EMB * 4 * 8                       # x_src, attn, residuals, LN temps
    return b


def _choose_tb(B, L, min_tiles, vmem_budget, max_tb):
    # fewest tiles on single-TC chips; an (at least) 2-way split on v7x so both
    # TensorCores get work; halve until the VMEM estimate fits the budget.
    tb = max(1, min(max_tb, -(-B // min_tiles)))
    while tb > 1 and _vmem_bytes_estimate(tb, L) > vmem_budget:
        tb = -(-tb // 2)
    return tb


def _flops_per_elem(L):
    conv = 2 * L * (KW * C1 + C1 * EMB)
    qkv = 2 * L * EMB * (3 * EMB)
    attn = 2 * HEADS * L * L * (HEAD_DIM + EMB)
    ff = 4 * L * EMB * DIM_FF
    head = 2 * EMB * NC_PAD
    return conv + qkv + attn + ff + head


def _trans_per_elem(L):
    return L * (C1 + EMB) + HEADS * L * L + HEADS * L


def convtran_forward(x, params, max_tb=128):
    # x: (B, 1, L) float32 -- same layout the PyTorch module receives.
    B, C, L = x.shape
    assert C == 1
    assert L % 8 == 0, "seq_len must be a multiple of 8 (pad on the host) for copy-free TPU layouts"
    # TODO(synk): support ragged L via in-kernel sequence masking of attention/pool.
    packed = _prepare_params(params)

    kind = _device_kind()
    is_v7 = "v7" in kind
    min_tiles = 2 if is_v7 else 1                 # 2 TCs on v7x, 1 on v5e/v6e
    vmem_limit = (40 if is_v7 else 64) * 1024 * 1024
    TB = _choose_tb(B, L, min_tiles, vmem_limit // 2, max_tb)
    ntiles = -(-B // TB)
    Bp = ntiles * TB

    # host-side prep: batch pad, torch-'same' seq pad (left 3 / right 4),
    # im2col slab (Bp, L, KW) -> (ntiles, TB*L, KW), producer-side bf16 cast.
    xs = x[:, 0, :].astype(jnp.float32)
    if Bp != B:
        xs = jnp.pad(xs, ((0, Bp - B), (0, 0)))
    xpad = jnp.pad(xs, ((0, 0), (PAD_LEFT, PAD_RIGHT)))                # (Bp, L+7)
    xcol = jnp.stack([xpad[:, j:j + L] for j in range(KW)], axis=-1)   # (Bp, L, KW)
    xcol = xcol.reshape(ntiles, TB * L, KW).astype(MXU_DT)

    in_specs = [pl.BlockSpec((1, TB * L, KW), lambda i: (i, 0, 0))]
    in_specs += [pl.BlockSpec(p.shape, lambda i, _n=p.ndim: (0,) * _n) for p in packed]
    out_spec = pl.BlockSpec((1, TB, NC_PAD), lambda i: (i, 0, 0))

    param_bytes = sum(int(p.size) * p.dtype.itemsize for p in packed)
    cost = pl.CostEstimate(
        flops=int(Bp * _flops_per_elem(L)),
        transcendentals=int(Bp * _trans_per_elem(L)),
        bytes_accessed=int(xcol.size * xcol.dtype.itemsize
                           + ntiles * param_bytes + Bp * NC_PAD * 4),
    )

    out = pl.pallas_call(
        convtran_kernel,
        out_shape=jax.ShapeDtypeStruct((ntiles, TB, NC_PAD), jnp.float32),
        grid=(ntiles,),
        in_specs=in_specs,
        out_specs=out_spec,
        compiler_params=pltpu.CompilerParams(
            dimension_semantics=("parallel",),
            vmem_limit_bytes=int(vmem_limit)),
        cost_estimate=cost,
    )(xcol, *packed)
    return out.reshape(Bp, NC_PAD)[:B, :NUM_CLASSES]        # (B, NUM_CLASSES)


if __name__ == "__main__":
    key = jax.random.PRNGKey(0)
    kx, kp = jax.random.split(key)
    B, L = 8, 16                      # batch=8, channel_size=1, seq_len=16
    x = jax.random.normal(kx, (B, 1, L), dtype=jnp.float32)
    params = init_params(kp, L)
    fwd = jax.jit(convtran_forward)
    out = jax.block_until_ready(fwd(x, params))
    assert out.shape == (B, NUM_CLASSES)
    assert bool(jnp.all(jnp.isfinite(out)))
    print("KERNEL_OK")
</pallas_src>

<mosaic_0001>
module attributes {stable_mosaic.version = 11 : i64} {
  func.func @convtran_kernel(%arg0: i32, %arg1: memref<1x128x8xbf16, #tpu.memory_space<vmem>>, %arg2: memref<8x128xbf16, #tpu.memory_space<vmem>>, %arg3: memref<1x128xf32, #tpu.memory_space<vmem>>, %arg4: memref<128x32xbf16, #tpu.memory_space<vmem>>, %arg5: memref<12x32xf32, #tpu.memory_space<vmem>>, %arg6: memref<16x32xf32, #tpu.memory_space<vmem>>, %arg7: memref<32x96xbf16, #tpu.memory_space<vmem>>, %arg8: memref<32x64xbf16, #tpu.memory_space<vmem>>, %arg9: memref<1x64xf32, #tpu.memory_space<vmem>>, %arg10: memref<64x32xbf16, #tpu.memory_space<vmem>>, %arg11: memref<32x8xbf16, #tpu.memory_space<vmem>>, %arg12: memref<1x8xf32, #tpu.memory_space<vmem>>, %arg13: memref<1x8x8xf32, #tpu.memory_space<vmem>>) attributes {dimension_semantics = [#tpu.dimension_semantics<parallel>], iteration_bounds = array<i64: 1>, scalar_prefetch = 0 : i64, scratch_operands = 0 : i64, tpu.core_type = #tpu.core_type<tc>, window_params = [{transform_indices = @transform_0, window_bounds = array<i64: 1, 128, 8>}, {pipeline_mode = #tpu.pipeline_mode<synchronous>, transform_indices = @transform_1, window_bounds = array<i64: 8, 128>}, {pipeline_mode = #tpu.pipeline_mode<synchronous>, transform_indices = @transform_2, window_bounds = array<i64: 1, 128>}, {pipeline_mode = #tpu.pipeline_mode<synchronous>, transform_indices = @transform_3, window_bounds = array<i64: 128, 32>}, {pipeline_mode = #tpu.pipeline_mode<synchronous>, transform_indices = @transform_4, window_bounds = array<i64: 12, 32>}, {pipeline_mode = #tpu.pipeline_mode<synchronous>, transform_indices = @transform_5, window_bounds = array<i64: 16, 32>}, {pipeline_mode = #tpu.pipeline_mode<synchronous>, transform_indices = @transform_6, window_bounds = array<i64: 32, 96>}, {pipeline_mode = #tpu.pipeline_mode<synchronous>, transform_indices = @transform_7, window_bounds = array<i64: 32, 64>}, {pipeline_mode = #tpu.pipeline_mode<synchronous>, transform_indices = @transform_8, window_bounds = array<i64: 1, 64>}, {pipeline_mode = #tpu.pipeline_mode<synchronous>, transform_indices = @transform_9, window_bounds = array<i64: 64, 32>}, {pipeline_mode = #tpu.pipeline_mode<synchronous>, transform_indices = @transform_10, window_bounds = array<i64: 32, 8>}, {pipeline_mode = #tpu.pipeline_mode<synchronous>, transform_indices = @transform_11, window_bounds = array<i64: 1, 8>}, {transform_indices = @transform_12, window_bounds = array<i64: 1, 8, 8>}]} {
    %c0 = arith.constant 0 : index
    %c0_0 = arith.constant 0 : index
    %c0_1 = arith.constant 0 : index
    %0 = vector.load %arg1[%c0, %c0_0, %c0_1] : memref<1x128x8xbf16, #tpu.memory_space<vmem>>, vector<1x128x8xbf16>
    %1 = vector.shape_cast %0 : vector<1x128x8xbf16> to vector<128x8xbf16>
    %c0_2 = arith.constant 0 : index
    %c0_3 = arith.constant 0 : index
    %2 = vector.load %arg2[%c0_2, %c0_3] : memref<8x128xbf16, #tpu.memory_space<vmem>>, vector<8x128xbf16>
    %cst = arith.constant dense<0.000000e+00> : vector<128x128xf32>
    %3 = tpu.matmul %1, %2, %cst {dimension_numbers = #tpu.dot_dimension_numbers<[1], [0], [0], [1], [0, 0, 1, 1], [], []>} : vector<128x8xbf16>, vector<8x128xbf16>, vector<128x128xf32> -> vector<128x128xf32>
    %c0_4 = arith.constant 0 : index
    %c0_5 = arith.constant 0 : index
    %4 = vector.load %arg3[%c0_4, %c0_5] : memref<1x128xf32, #tpu.memory_space<vmem>>, vector<1x128xf32>
    %5 = vector.broadcast %4 : vector<1x128xf32> to vector<128x128xf32>
    %6 = arith.addf %3, %5 : vector<128x128xf32>
    %cst_6 = arith.constant 5.000000e-01 : f32
    %7 = vector.broadcast %cst_6 : f32 to vector<128x128xf32>
    %8 = arith.mulf %7, %6 : vector<128x128xf32>
    %cst_7 = arith.constant 4.471500e-02 : f32
    %9 = vector.broadcast %cst_7 : f32 to vector<128x128xf32>
    %10 = arith.mulf %9, %6 : vector<128x128xf32>
    %11 = arith.mulf %10, %6 : vector<128x128xf32>
    %12 = arith.mulf %11, %6 : vector<128x128xf32>
    %13 = arith.addf %6, %12 : vector<128x128xf32>
    %cst_8 = arith.constant 0.797884583 : f32
    %14 = vector.broadcast %cst_8 : f32 to vector<128x128xf32>
    %15 = arith.mulf %14, %13 : vector<128x128xf32>
    %16 = math.tanh %15 : vector<128x128xf32>
    %cst_9 = arith.constant 1.000000e+00 : f32
    %17 = vector.broadcast %cst_9 : f32 to vector<128x128xf32>
    %18 = arith.addf %17, %16 : vector<128x128xf32>
    %19 = arith.mulf %8, %18 : vector<128x128xf32>
    %20 = arith.truncf %19 : vector<128x128xf32> to vector<128x128xbf16>
    %c0_10 = arith.constant 0 : index
    %c0_11 = arith.constant 0 : index
    %21 = vector.load %arg4[%c0_10, %c0_11] : memref<128x32xbf16, #tpu.memory_space<vmem>>, vector<128x32xbf16>
    %cst_12 = arith.constant dense<0.000000e+00> : vector<128x32xf32>
    %22 = tpu.matmul %20, %21, %cst_12 {dimension_numbers = #tpu.dot_dimension_numbers<[1], [0], [0], [1], [0, 0, 1, 1], [], []>} : vector<128x128xbf16>, vector<128x32xbf16>, vector<128x32xf32> -> vector<128x32xf32>
    %c0_13 = arith.constant 0 : index
    %c0_14 = arith.constant 0 : index
    %23 = vector.load %arg5[%c0_13, %c0_14] : memref<12x32xf32, #tpu.memory_space<vmem>>, vector<1x32xf32>
    %24 = vector.broadcast %23 : vector<1x32xf32> to vector<128x32xf32>
    %25 = arith.addf %22, %24 : vector<128x32xf32>
    %cst_15 = arith.constant 5.000000e-01 : f32
    %26 = vector.broadcast %cst_15 : f32 to vector<128x32xf32>
    %27 = arith.mulf %26, %25 : vector<128x32xf32>
    %cst_16 = arith.constant 4.471500e-02 : f32
    %28 = vector.broadcast %cst_16 : f32 to vector<128x32xf32>
    %29 = arith.mulf %28, %25 : vector<128x32xf32>
    %30 = arith.mulf %29, %25 : vector<128x32xf32>
    %31 = arith.mulf %30, %25 : vector<128x32xf32>
    %32 = arith.addf %25, %31 : vector<128x32xf32>
    %cst_17 = arith.constant 0.797884583 : f32
    %33 = vector.broadcast %cst_17 : f32 to vector<128x32xf32>
    %34 = arith.mulf %33, %32 : vector<128x32xf32>
    %35 = math.tanh %34 : vector<128x32xf32>
    %cst_18 = arith.constant 1.000000e+00 : f32
    %36 = vector.broadcast %cst_18 : f32 to vector<128x32xf32>
    %37 = arith.addf %36, %35 : vector<128x32xf32>
    %38 = arith.mulf %27, %37 : vector<128x32xf32>
    %39 = vector.shape_cast %38 : vector<128x32xf32> to vector<8x16x32xf32>
    %c0_19 = arith.constant 0 : index
    %c0_20 = arith.constant 0 : index
    %40 = vector.load %arg6[%c0_19, %c0_20] : memref<16x32xf32, #tpu.memory_space<vmem>>, vector<16x32xf32>
    %41 = vector.shape_cast %40 : vector<16x32xf32> to vector<1x16x32xf32>
    %42 = vector.broadcast %41 : vector<1x16x32xf32> to vector<8x16x32xf32>
    %43 = arith.addf %39, %42 : vector<8x16x32xf32>
    %44 = vector.shape_cast %43 : vector<8x16x32xf32> to vector<128x32xf32>
    %45 = arith.truncf %44 : vector<128x32xf32> to vector<128x32xbf16>
    %c0_21 = arith.constant 0 : index
    %c0_22 = arith.constant 0 : index
    %46 = vector.load %arg7[%c0_21, %c0_22] : memref<32x96xbf16, #tpu.memory_space<vmem>>, vector<32x96xbf16>
    %cst_23 = arith.constant dense<0.000000e+00> : vector<128x96xf32>
    %47 = tpu.matmul %45, %46, %cst_23 {dimension_numbers = #tpu.dot_dimension_numbers<[1], [0], [0], [1], [0, 0, 1, 1], [], []>} : vector<128x32xbf16>, vector<32x96xbf16>, vector<128x96xf32> -> vector<128x96xf32>
    %48 = vector.extract_strided_slice %47 {offsets = [0, 0], sizes = [128, 8], strides = [1, 1]} : vector<128x96xf32> to vector<128x8xf32>
    %49 = vector.shape_cast %48 : vector<128x8xf32> to vector<8x16x8xf32>
    %50 = vector.extract_strided_slice %47 {offsets = [0, 8], sizes = [128, 8], strides = [1, 1]} : vector<128x96xf32> to vector<128x8xf32>
    %51 = vector.shape_cast %50 : vector<128x8xf32> to vector<8x16x8xf32>
    %52 = vector.extract_strided_slice %47 {offsets = [0, 16], sizes = [128, 8], strides = [1, 1]} : vector<128x96xf32> to vector<128x8xf32>
    %53 = vector.shape_cast %52 : vector<128x8xf32> to vector<8x16x8xf32>
    %54 = vector.extract_strided_slice %47 {offsets = [0, 24], sizes = [128, 8], strides = [1, 1]} : vector<128x96xf32> to vector<128x8xf32>
    %55 = vector.shape_cast %54 : vector<128x8xf32> to vector<8x16x8xf32>
    %56 = tpu.concatenate %49, %51, %53, %55 in 0 : vector<8x16x8xf32>, vector<8x16x8xf32>, vector<8x16x8xf32>, vector<8x16x8xf32> -> vector<32x16x8xf32>
    %57 = arith.truncf %56 : vector<32x16x8xf32> to vector<32x16x8xbf16>
    %58 = vector.extract_strided_slice %47 {offsets = [0, 32], sizes = [128, 8], strides = [1, 1]} : vector<128x96xf32> to vector<128x8xf32>
    %59 = vector.shape_cast %58 : vector<128x8xf32> to vector<8x16x8xf32>
    %60 = vector.extract_strided_slice %47 {offsets = [0, 40], sizes = [128, 8], strides = [1, 1]} : vector<128x96xf32> to vector<128x8xf32>
    %61 = vector.shape_cast %60 : vector<128x8xf32> to vector<8x16x8xf32>
    %62 = vector.extract_strided_slice %47 {offsets = [0, 48], sizes = [128, 8], strides = [1, 1]} : vector<128x96xf32> to vector<128x8xf32>
    %63 = vector.shape_cast %62 : vector<128x8xf32> to vector<8x16x8xf32>
    %64 = vector.extract_strided_slice %47 {offsets = [0, 56], sizes = [128, 8], strides = [1, 1]} : vector<128x96xf32> to vector<128x8xf32>
    %65 = vector.shape_cast %64 : vector<128x8xf32> to vector<8x16x8xf32>
    %66 = tpu.concatenate %59, %61, %63, %65 in 0 : vector<8x16x8xf32>, vector<8x16x8xf32>, vector<8x16x8xf32>, vector<8x16x8xf32> -> vector<32x16x8xf32>
    %67 = arith.truncf %66 : vector<32x16x8xf32> to vector<32x16x8xbf16>
    %68 = vector.extract_strided_slice %47 {offsets = [0, 64], sizes = [128, 32], strides = [1, 1]} : vector<128x96xf32> to vector<128x32xf32>
    %69 = vector.shape_cast %68 : vector<128x32xf32> to vector<8x16x32xf32>
    %c8 = arith.constant 8 : index
    %c0_24 = arith.constant 0 : index
    %70 = vector.load %arg5[%c8, %c0_24] : memref<12x32xf32, #tpu.memory_space<vmem>>, vector<1x32xf32>
    %71 = vector.shape_cast %70 : vector<1x32xf32> to vector<1x1x32xf32>
    %72 = vector.broadcast %71 : vector<1x1x32xf32> to vector<8x16x32xf32>
    %73 = arith.mulf %69, %72 : vector<8x16x32xf32>
    %c9 = arith.constant 9 : index
    %c0_25 = arith.constant 0 : index
    %74 = vector.load %arg5[%c9, %c0_25] : memref<12x32xf32, #tpu.memory_space<vmem>>, vector<1x32xf32>
    %75 = vector.shape_cast %74 : vector<1x32xf32> to vector<1x1x32xf32>
    %76 = vector.broadcast %75 : vector<1x1x32xf32> to vector<8x16x32xf32>
    %77 = arith.mulf %69, %76 : vector<8x16x32xf32>
    %c10 = arith.constant 10 : index
    %c0_26 = arith.constant 0 : index
    %78 = vector.load %arg5[%c10, %c0_26] : memref<12x32xf32, #tpu.memory_space<vmem>>, vector<1x32xf32>
    %79 = vector.shape_cast %78 : vector<1x32xf32> to vector<1x1x32xf32>
    %80 = vector.broadcast %79 : vector<1x1x32xf32> to vector<8x16x32xf32>
    %81 = arith.mulf %69, %80 : vector<8x16x32xf32>
    %c11 = arith.constant 11 : index
    %c0_27 = arith.constant 0 : index
    %82 = vector.load %arg5[%c11, %c0_27] : memref<12x32xf32, #tpu.memory_space<vmem>>, vector<1x32xf32>
    %83 = vector.shape_cast %82 : vector<1x32xf32> to vector<1x1x32xf32>
    %84 = vector.broadcast %83 : vector<1x1x32xf32> to vector<8x16x32xf32>
    %85 = arith.mulf %69, %84 : vector<8x16x32xf32>
    %86 = tpu.concatenate %73, %77, %81, %85 in 0 : vector<8x16x32xf32>, vector<8x16x32xf32>, vector<8x16x32xf32>, vector<8x16x32xf32> -> vector<32x16x32xf32>
    %87 = arith.truncf %86 : vector<32x16x32xf32> to vector<32x16x32xbf16>
    "tpu.trace_start"() <{level = 10 : i32, message = "bqd,bkd->bqk"}> : () -> ()
    %cst_28 = arith.constant dense<0.000000e+00> : vector<32x16x16xf32>
    %88 = tpu.matmul %57, %67, %cst_28 {dimension_numbers = #tpu.dot_dimension_numbers<[2], [2], [1], [1], [0, 0, 0, 1, 1, 1], [0], [0]>} : vector<32x16x8xbf16>, vector<32x16x8xbf16>, vector<32x16x16xf32> -> vector<32x16x16xf32>
    "tpu.trace_stop"() : () -> ()
    %cst_29 = arith.constant 0.176776692 : f32
    %89 = vector.broadcast %cst_29 : f32 to vector<32x16x16xf32>
    %90 = arith.mulf %88, %89 : vector<32x16x16xf32>
    %cst_30 = arith.constant dense<0xFF800000> : vector<32x16xf32>
    %91 = vector.multi_reduction <maximumf>, %90, %cst_30 [2] : vector<32x16x16xf32> to vector<32x16xf32>
    %92 = vector.shape_cast %91 : vector<32x16xf32> to vector<32x16x1xf32>
    %93 = vector.broadcast %92 : vector<32x16x1xf32> to vector<32x16x16xf32>
    %94 = arith.subf %90, %93 : vector<32x16x16xf32>
    %95 = math.exp %94 : vector<32x16x16xf32>
    %cst_31 = arith.constant dense<0.000000e+00> : vector<32x16xf32>
    %96 = vector.multi_reduction <add>, %95, %cst_31 [2] : vector<32x16x16xf32> to vector<32x16xf32>
    %97 = vector.shape_cast %96 : vector<32x16xf32> to vector<32x16x1xf32>
    %98 = tpu.reciprocal %97 {approx = true} : vector<32x16x1xf32> -> vector<32x16x1xf32>
    %99 = vector.broadcast %98 : vector<32x16x1xf32> to vector<32x16x16xf32>
    %100 = arith.mulf %95, %99 : vector<32x16x16xf32>
    %101 = arith.truncf %100 : vector<32x16x16xf32> to vector<32x16x16xbf16>
    "tpu.trace_start"() <{level = 10 : i32, message = "bqk,bkd->bqd"}> : () -> ()
    %cst_32 = arith.constant dense<0.000000e+00> : vector<32x16x32xf32>
    %102 = tpu.matmul %101, %87, %cst_32 {dimension_numbers = #tpu.dot_dimension_numbers<[2], [1], [1], [2], [0, 0, 0, 1, 1, 2], [0], [0]>} : vector<32x16x16xbf16>, vector<32x16x32xbf16>, vector<32x16x32xf32> -> vector<32x16x32xf32>
    "tpu.trace_stop"() : () -> ()
    %103 = vector.extract_strided_slice %102 {offsets = [0, 0, 0], sizes = [8, 16, 32], strides = [1, 1, 1]} : vector<32x16x32xf32> to vector<8x16x32xf32>
    %104 = vector.extract_strided_slice %102 {offsets = [8, 0, 0], sizes = [8, 16, 32], strides = [1, 1, 1]} : vector<32x16x32xf32> to vector<8x16x32xf32>
    %105 = arith.addf %103, %104 : vector<8x16x32xf32>
    %106 = vector.extract_strided_slice %102 {offsets = [16, 0, 0], sizes = [8, 16, 32], strides = [1, 1, 1]} : vector<32x16x32xf32> to vector<8x16x32xf32>
    %107 = arith.addf %105, %106 : vector<8x16x32xf32>
    %108 = vector.extract_strided_slice %102 {offsets = [24, 0, 0], sizes = [8, 16, 32], strides = [1, 1, 1]} : vector<32x16x32xf32> to vector<8x16x32xf32>
    %109 = arith.addf %107, %108 : vector<8x16x32xf32>
    %110 = vector.shape_cast %109 : vector<8x16x32xf32> to vector<128x32xf32>
    %c1 = arith.constant 1 : index
    %c0_33 = arith.constant 0 : index
    %111 = vector.load %arg5[%c1, %c0_33] : memref<12x32xf32, #tpu.memory_space<vmem>>, vector<1x32xf32>
    %c2 = arith.constant 2 : index
    %c0_34 = arith.constant 0 : index
    %112 = vector.load %arg5[%c2, %c0_34] : memref<12x32xf32, #tpu.memory_space<vmem>>, vector<1x32xf32>
    %cst_35 = arith.constant dense<0.000000e+00> : vector<128xf32>
    %113 = vector.multi_reduction <add>, %110, %cst_35 [1] : vector<128x32xf32> to vector<128xf32>
    %114 = vector.shape_cast %113 : vector<128xf32> to vector<128x1xf32>
    %cst_36 = arith.constant 3.200000e+01 : f32
    %115 = vector.broadcast %cst_36 : f32 to vector<128x1xf32>
    %116 = arith.divf %114, %115 : vector<128x1xf32>
    %117 = vector.broadcast %116 : vector<128x1xf32> to vector<128x32xf32>
    %118 = arith.subf %110, %117 : vector<128x32xf32>
    %119 = arith.mulf %118, %118 : vector<128x32xf32>
    %cst_37 = arith.constant dense<0.000000e+00> : vector<128xf32>
    %120 = vector.multi_reduction <add>, %119, %cst_37 [1] : vector<128x32xf32> to vector<128xf32>
    %121 = vector.shape_cast %120 : vector<128xf32> to vector<128x1xf32>
    %cst_38 = arith.constant 3.200000e+01 : f32
    %122 = vector.broadcast %cst_38 : f32 to vector<128x1xf32>
    %123 = arith.divf %121, %122 : vector<128x1xf32>
    %124 = vector.broadcast %116 : vector<128x1xf32> to vector<128x32xf32>
    %125 = arith.subf %110, %124 : vector<128x32xf32>
    %cst_39 = arith.constant 9.99999974E-6 : f32
    %126 = vector.broadcast %cst_39 : f32 to vector<128x1xf32>
    %127 = arith.addf %123, %126 : vector<128x1xf32>
    %128 = math.rsqrt %127 : vector<128x1xf32>
    %129 = vector.broadcast %128 : vector<128x1xf32> to vector<128x32xf32>
    %130 = arith.mulf %125, %129 : vector<128x32xf32>
    %131 = vector.broadcast %111 : vector<1x32xf32> to vector<128x32xf32>
    %132 = arith.mulf %130, %131 : vector<128x32xf32>
    %133 = vector.broadcast %112 : vector<1x32xf32> to vector<128x32xf32>
    %134 = arith.addf %132, %133 : vector<128x32xf32>
    %135 = arith.addf %38, %134 : vector<128x32xf32>
    %c3 = arith.constant 3 : index
    %c0_40 = arith.constant 0 : index
    %136 = vector.load %arg5[%c3, %c0_40] : memref<12x32xf32, #tpu.memory_space<vmem>>, vector<1x32xf32>
    %c4 = arith.constant 4 : index
    %c0_41 = arith.constant 0 : index
    %137 = vector.load %arg5[%c4, %c0_41] : memref<12x32xf32, #tpu.memory_space<vmem>>, vector<1x32xf32>
    %cst_42 = arith.constant dense<0.000000e+00> : vector<128xf32>
    %138 = vector.multi_reduction <add>, %135, %cst_42 [1] : vector<128x32xf32> to vector<128xf32>
    %139 = vector.shape_cast %138 : vector<128xf32> to vector<128x1xf32>
    %cst_43 = arith.constant 3.200000e+01 : f32
    %140 = vector.broadcast %cst_43 : f32 to vector<128x1xf32>
    %141 = arith.divf %139, %140 : vector<128x1xf32>
    %142 = vector.broadcast %141 : vector<128x1xf32> to vector<128x32xf32>
    %143 = arith.subf %135, %142 : vector<128x32xf32>
    %144 = arith.mulf %143, %143 : vector<128x32xf32>
    %cst_44 = arith.constant dense<0.000000e+00> : vector<128xf32>
    %145 = vector.multi_reduction <add>, %144, %cst_44 [1] : vector<128x32xf32> to vector<128xf32>
    %146 = vector.shape_cast %145 : vector<128xf32> to vector<128x1xf32>
    %cst_45 = arith.constant 3.200000e+01 : f32
    %147 = vector.broadcast %cst_45 : f32 to vector<128x1xf32>
    %148 = arith.divf %146, %147 : vector<128x1xf32>
    %149 = vector.broadcast %141 : vector<128x1xf32> to vector<128x32xf32>
    %150 = arith.subf %135, %149 : vector<128x32xf32>
    %cst_46 = arith.constant 9.99999974E-6 : f32
    %151 = vector.broadcast %cst_46 : f32 to vector<128x1xf32>
    %152 = arith.addf %148, %151 : vector<128x1xf32>
    %153 = math.rsqrt %152 : vector<128x1xf32>
    %154 = vector.broadcast %153 : vector<128x1xf32> to vector<128x32xf32>
    %155 = arith.mulf %150, %154 : vector<128x32xf32>
    %156 = vector.broadcast %136 : vector<1x32xf32> to vector<128x32xf32>
    %157 = arith.mulf %155, %156 : vector<128x32xf32>
    %158 = vector.broadcast %137 : vector<1x32xf32> to vector<128x32xf32>
    %159 = arith.addf %157, %158 : vector<128x32xf32>
    %160 = arith.truncf %159 : vector<128x32xf32> to vector<128x32xbf16>
    %c0_47 = arith.constant 0 : index
    %c0_48 = arith.constant 0 : index
    %161 = vector.load %arg8[%c0_47, %c0_48] : memref<32x64xbf16, #tpu.memory_space<vmem>>, vector<32x64xbf16>
    %cst_49 = arith.constant dense<0.000000e+00> : vector<128x64xf32>
    %162 = tpu.matmul %160, %161, %cst_49 {dimension_numbers = #tpu.dot_dimension_numbers<[1], [0], [0], [1], [0, 0, 1, 1], [], []>} : vector<128x32xbf16>, vector<32x64xbf16>, vector<128x64xf32> -> vector<128x64xf32>
    %c0_50 = arith.constant 0 : index
    %c0_51 = arith.constant 0 : index
    %163 = vector.load %arg9[%c0_50, %c0_51] : memref<1x64xf32, #tpu.memory_space<vmem>>, vector<1x64xf32>
    %164 = vector.broadcast %163 : vector<1x64xf32> to vector<128x64xf32>
    %165 = arith.addf %162, %164 : vector<128x64xf32>
    %cst_52 = arith.constant 0.000000e+00 : f32
    %166 = vector.broadcast %cst_52 : f32 to vector<128x64xf32>
    %167 = arith.maximumf %165, %166 : vector<128x64xf32>
    %168 = arith.truncf %167 : vector<128x64xf32> to vector<128x64xbf16>
    %c0_53 = arith.constant 0 : index
    %c0_54 = arith.constant 0 : index
    %169 = vector.load %arg10[%c0_53, %c0_54] : memref<64x32xbf16, #tpu.memory_space<vmem>>, vector<64x32xbf16>
    %cst_55 = arith.constant dense<0.000000e+00> : vector<128x32xf32>
    %170 = tpu.matmul %168, %169, %cst_55 {dimension_numbers = #tpu.dot_dimension_numbers<[1], [0], [0], [1], [0, 0, 1, 1], [], []>} : vector<128x64xbf16>, vector<64x32xbf16>, vector<128x32xf32> -> vector<128x32xf32>
    %c5 = arith.constant 5 : index
    %c0_56 = arith.constant 0 : index
    %171 = vector.load %arg5[%c5, %c0_56] : memref<12x32xf32, #tpu.memory_space<vmem>>, vector<1x32xf32>
    %172 = vector.broadcast %171 : vector<1x32xf32> to vector<128x32xf32>
    %173 = arith.addf %170, %172 : vector<128x32xf32>
    %174 = arith.addf %159, %173 : vector<128x32xf32>
    %c6 = arith.constant 6 : index
    %c0_57 = arith.constant 0 : index
    %175 = vector.load %arg5[%c6, %c0_57] : memref<12x32xf32, #tpu.memory_space<vmem>>, vector<1x32xf32>
    %c7 = arith.constant 7 : index
    %c0_58 = arith.constant 0 : index
    %176 = vector.load %arg5[%c7, %c0_58] : memref<12x32xf32, #tpu.memory_space<vmem>>, vector<1x32xf32>
    %cst_59 = arith.constant dense<0.000000e+00> : vector<128xf32>
    %177 = vector.multi_reduction <add>, %174, %cst_59 [1] : vector<128x32xf32> to vector<128xf32>
    %178 = vector.shape_cast %177 : vector<128xf32> to vector<128x1xf32>
    %cst_60 = arith.constant 3.200000e+01 : f32
    %179 = vector.broadcast %cst_60 : f32 to vector<128x1xf32>
    %180 = arith.divf %178, %179 : vector<128x1xf32>
    %181 = vector.broadcast %180 : vector<128x1xf32> to vector<128x32xf32>
    %182 = arith.subf %174, %181 : vector<128x32xf32>
    %183 = arith.mulf %182, %182 : vector<128x32xf32>
    %cst_61 = arith.constant dense<0.000000e+00> : vector<128xf32>
    %184 = vector.multi_reduction <add>, %183, %cst_61 [1] : vector<128x32xf32> to vector<128xf32>
    %185 = vector.shape_cast %184 : vector<128xf32> to vector<128x1xf32>
    %cst_62 = arith.constant 3.200000e+01 : f32
    %186 = vector.broadcast %cst_62 : f32 to vector<128x1xf32>
    %187 = arith.divf %185, %186 : vector<128x1xf32>
    %188 = vector.broadcast %180 : vector<128x1xf32> to vector<128x32xf32>
    %189 = arith.subf %174, %188 : vector<128x32xf32>
    %cst_63 = arith.constant 9.99999974E-6 : f32
    %190 = vector.broadcast %cst_63 : f32 to vector<128x1xf32>
    %191 = arith.addf %187, %190 : vector<128x1xf32>
    %192 = math.rsqrt %191 : vector<128x1xf32>
    %193 = vector.broadcast %192 : vector<128x1xf32> to vector<128x32xf32>
    %194 = arith.mulf %189, %193 : vector<128x32xf32>
    %195 = vector.broadcast %175 : vector<1x32xf32> to vector<128x32xf32>
    %196 = arith.mulf %194, %195 : vector<128x32xf32>
    %197 = vector.broadcast %176 : vector<1x32xf32> to vector<128x32xf32>
    %198 = arith.addf %196, %197 : vector<128x32xf32>
    %199 = vector.shape_cast %198 : vector<128x32xf32> to vector<8x16x32xf32>
    %cst_64 = arith.constant dense<0.000000e+00> : vector<8x32xf32>
    %200 = vector.multi_reduction <add>, %199, %cst_64 [1] : vector<8x16x32xf32> to vector<8x32xf32>
    %cst_65 = arith.constant 1.600000e+01 : f32
    %201 = vector.broadcast %cst_65 : f32 to vector<8x32xf32>
    %202 = arith.divf %200, %201 : vector<8x32xf32>
    %203 = arith.truncf %202 : vector<8x32xf32> to vector<8x32xbf16>
    %c0_66 = arith.constant 0 : index
    %c0_67 = arith.constant 0 : index
    %204 = vector.load %arg11[%c0_66, %c0_67] : memref<32x8xbf16, #tpu.memory_space<vmem>>, vector<32x8xbf16>
    %cst_68 = arith.constant dense<0.000000e+00> : vector<8x8xf32>
    %205 = tpu.matmul %203, %204, %cst_68 {dimension_numbers = #tpu.dot_dimension_numbers<[1], [0], [0], [1], [0, 0, 1, 1], [], []>} : vector<8x32xbf16>, vector<32x8xbf16>, vector<8x8xf32> -> vector<8x8xf32>
    %c0_69 = arith.constant 0 : index
    %c0_70 = arith.constant 0 : index
    %206 = vector.load %arg12[%c0_69, %c0_70] : memref<1x8xf32, #tpu.memory_space<vmem>>, vector<1x8xf32>
    %207 = vector.broadcast %206 : vector<1x8xf32> to vector<8x8xf32>
    %208 = arith.addf %205, %207 : vector<8x8xf32>
    %c0_71 = arith.constant 0 : index
    %c0_72 = arith.constant 0 : index
    %c0_73 = arith.constant 0 : index
    %209 = vector.load %arg13[%c0_71, %c0_72, %c0_73] : memref<1x8x8xf32, #tpu.memory_space<vmem>>, vector<1x8x8xf32>
    %210 = vector.shape_cast %209 : vector<1x8x8xf32> to vector<8x8xf32>
    %211 = vector.shape_cast %208 : vector<8x8xf32> to vector<1x8x8xf32>
    tpu.vector_store %arg13[%c0_71, %c0_72, %c0_73], %211 {strides = array<i32>} : memref<1x8x8xf32, #tpu.memory_space<vmem>>, vector<1x8x8xf32>,
    return
  }
  func.func @transform_0(%arg0: i32) -> (i32, i32, i32) {
    %c0_i32 = arith.constant 0 : i32
    %c0_i32_0 = arith.constant 0 : i32
    %c0_i32_1 = arith.constant 0 : i32
    return %arg0, %c0_i32, %c0_i32_0 : i32, i32, i32
  }
  func.func @transform_1(%arg0: i32) -> (i32, i32) {
    %c0_i32 = arith.constant 0 : i32
    %c0_i32_0 = arith.constant 0 : i32
    %c0_i32_1 = arith.constant 0 : i32
    return %c0_i32, %c0_i32_0 : i32, i32
  }
  func.func @transform_2(%arg0: i32) -> (i32, i32) {
    %c0_i32 = arith.constant 0 : i32
    %c0_i32_0 = arith.constant 0 : i32
    %c0_i32_1 = arith.constant 0 : i32
    return %c0_i32, %c0_i32_0 : i32, i32
  }
  func.func @transform_3(%arg0: i32) -> (i32, i32) {
    %c0_i32 = arith.constant 0 : i32
    %c0_i32_0 = arith.constant 0 : i32
    %c0_i32_1 = arith.constant 0 : i32
    return %c0_i32, %c0_i32_0 : i32, i32
  }
  func.func @transform_4(%arg0: i32) -> (i32, i32) {
    %c0_i32 = arith.constant 0 : i32
    %c0_i32_0 = arith.constant 0 : i32
    %c0_i32_1 = arith.constant 0 : i32
    return %c0_i32, %c0_i32_0 : i32, i32
  }
  func.func @transform_5(%arg0: i32) -> (i32, i32) {
    %c0_i32 = arith.constant 0 : i32
    %c0_i32_0 = arith.constant 0 : i32
    %c0_i32_1 = arith.constant 0 : i32
    return %c0_i32, %c0_i32_0 : i32, i32
  }
  func.func @transform_6(%arg0: i32) -> (i32, i32) {
    %c0_i32 = arith.constant 0 : i32
    %c0_i32_0 = arith.constant 0 : i32
    %c0_i32_1 = arith.constant 0 : i32
    return %c0_i32, %c0_i32_0 : i32, i32
  }
  func.func @transform_7(%arg0: i32) -> (i32, i32) {
    %c0_i32 = arith.constant 0 : i32
    %c0_i32_0 = arith.constant 0 : i32
    %c0_i32_1 = arith.constant 0 : i32
    return %c0_i32, %c0_i32_0 : i32, i32
  }
  func.func @transform_8(%arg0: i32) -> (i32, i32) {
    %c0_i32 = arith.constant 0 : i32
    %c0_i32_0 = arith.constant 0 : i32
    %c0_i32_1 = arith.constant 0 : i32
    return %c0_i32, %c0_i32_0 : i32, i32
  }
  func.func @transform_9(%arg0: i32) -> (i32, i32) {
    %c0_i32 = arith.constant 0 : i32
    %c0_i32_0 = arith.constant 0 : i32
    %c0_i32_1 = arith.constant 0 : i32
    return %c0_i32, %c0_i32_0 : i32, i32
  }
  func.func @transform_10(%arg0: i32) -> (i32, i32) {
    %c0_i32 = arith.constant 0 : i32
    %c0_i32_0 = arith.constant 0 : i32
    %c0_i32_1 = arith.constant 0 : i32
    return %c0_i32, %c0_i32_0 : i32, i32
  }
  func.func @transform_11(%arg0: i32) -> (i32, i32) {
    %c0_i32 = arith.constant 0 : i32
    %c0_i32_0 = arith.constant 0 : i32
    %c0_i32_1 = arith.constant 0 : i32
    return %c0_i32, %c0_i32_0 : i32, i32
  }
  func.func @transform_12(%arg0: i32) -> (i32, i32, i32) {
    %c0_i32 = arith.constant 0 : i32
    %c0_i32_0 = arith.constant 0 : i32
    %c0_i32_1 = arith.constant 0 : i32
    return %arg0, %c0_i32, %c0_i32_0 : i32, i32, i32
  }
}

</mosaic_0001>

<bundles_post_ra>
// kernel: convtran_forward.1
= control target key start
LH: loop header
LB: loop body
LE: loop exit
PB: predicated region body
PF: predicated region fallthrough
CT: control target
= control target key end

     0   :  { %17 = vsyncpa [#allocation3], 0  ;;  %s11488_s0 = inlined_call_operand.hbm [shape: bf16[1,128,8], index: 0, kind: input, shape index: {}]   ;;  %s11489_s1 = inlined_call_operand.hbm [shape: bf16[8,128], index: 1, kind: input, shape index: {}]   ;;  %s11490_s2 = inlined_call_operand.hbm [shape: f32[1,128], index: 2, kind: input, shape index: {}]   ;;  %s11491_s3 = inlined_call_operand.hbm [shape: bf16[128,32], index: 3, kind: input, shape index: {}]   ;;  %s11492_s4 = inlined_call_operand.hbm [shape: f32[12,32], index: 4, kind: input, shape index: {}]   ;;  %s11493_s5 = inlined_call_operand.hbm [shape: f32[16,32], index: 5, kind: input, shape index: {}]   ;;  %s11494_s6 = inlined_call_operand.hbm [shape: bf16[32,96], index: 6, kind: input, shape index: {}]   ;;  %s11495_s7 = inlined_call_operand.hbm [shape: bf16[32,64], index: 7, kind: input, shape index: {}]   ;;  %s11496_s8 = inlined_call_operand.hbm [shape: f32[1,64], index: 8, kind: input, shape index: {}]   ;;  %s11497_s9 = inlined_call_operand.hbm [shape: bf16[64,32], index: 9, kind: input, shape index: {}]   ;;  %s11498_s10 = inlined_call_operand.hbm [shape: bf16[32,8], index: 10, kind: input, shape index: {}]   ;;  %s11499_s11 = inlined_call_operand.hbm [shape: f32[1,8], index: 11, kind: input, shape index: {}]   ;;  %s11500_s12 = inlined_call_operand.hbm [shape: f32[1,8,8], index: 12, kind: output, shape index: {}]  }
   0x1   :  { %18 = vsyncpa [#allocation6], 0 }
   0x2   :  { %19 = vsyncpa [#allocation9], 0 }
   0x3   :  { %20 = vsyncpa [#allocation12], 0 }
   0x4   :  { %21 = vsyncpa [#allocation15], 0 }
   0x5   :  { %22 = vsyncpa [#allocation18], 0 }
   0x6   :  { %23 = vsyncpa [#allocation21], 0 }
   0x7   :  { %24 = vsyncpa [#allocation4], 0  ;;  %s8465_s21 = smov [#allocation5]   ;;  %s8163_s25 = scalar_lea.hbm %s11489_s1, 64 }
   0x8   :  { %s43_s22 = sshll.u32 %s8465_s21, 4  ;;  %p8164_p0 = scmp.ne.s32.totalorder %s11489_s1, %s8163_s25  ;;  %s44_s22 = int_to_ptr.vmem [resolvable:$true] %s43_s22 }
   0x9   :  { %p8167_p1 = scmp.lt.u32.totalorder %s8163_s25, %s11489_s1 }
   0xb   :  { %p8169_p2 = pnand %p8167_p1, %p8164_p0 }
   0xd   :  { %8172 = shalt.err (!%p8169_p2)
}
   0xe   :  { %s8173_s30 = scalar_lea.vmem %s44_s22, 64  ;;  %p8178_p4 = scmp.lt.s32.totalorder %s44_s22, %s44_s22 }
   0xf   :  { %p8174_p3 = scmp.ne.s32.totalorder %s44_s22, %s8173_s30  ;;  %p8179_p5 = scmp.lt.s32.totalorder %s8173_s30, %s8173_s30 }
  0x11   :  { %p8180_p6 = por %p8179_p5, %p8178_p4 }
  0x13   :  { %p8181_p7 = pnand %p8180_p6, %p8174_p3 }
  0x15   :  { %8184 = shalt.err (!%p8181_p7)
}
  0x16   :  { %46 = dma.hbm_to_vmem [thread:$0]  %s11489_s1, 64, %s44_s22, [#allocation6]  }
  0x17   :  { %s8466_s15 = smov [#allocation8]   ;;  %s8185_s19 = scalar_lea.hbm %s11491_s3, 1024 }
  0x18   :  { %s62_s16 = sshll.u32 %s8466_s15, 4  ;;  %p8186_p8 = scmp.ne.s32.totalorder %s11491_s3, %s8185_s19  ;;  %s63_s16 = int_to_ptr.vmem [resolvable:$true] %s62_s16 }
  0x19   :  { %p8189_p9 = scmp.lt.u32.totalorder %s8185_s19, %s11491_s3 }
  0x1b   :  { %p8191_p10 = pnand %p8189_p9, %p8186_p8 }
  0x1d   :  { %8194 = shalt.err (!%p8191_p10)
}
  0x1e   :  { %s8195_s25 = scalar_lea.vmem %s63_s16, 1024  ;;  %p8200_p12 = scmp.lt.s32.totalorder %s63_s16, %s63_s16 }
  0x1f   :  { %p8196_p11 = scmp.ne.s32.totalorder %s63_s16, %s8195_s25  ;;  %p8201_p13 = scmp.lt.s32.totalorder %s8195_s25, %s8195_s25 }
  0x21   :  { %p8202_p0 = por %p8201_p13, %p8200_p12 }
  0x23   :  { %p8203_p1 = pnand %p8202_p0, %p8196_p11 }
  0x25   :  { %8206 = shalt.err (!%p8203_p1)
}
  0x26   :  { %s8467_s1 = smov 64   ;;  %s8468_s22 = smov 4  }
  0x27   :  { %68 = dma.hbm_to_vmem [thread:$0]  %s11491_s3, 1024, %s63_s16, [#allocation9], %s8467_s1, %s8467_s1, %s8468_s22  }
  0x28   :  { %s8469_s28 = smov [#allocation11]   ;;  %s8470_s30 = smov [#allocation14]  }
  0x29   :  { %s86_s29 = sshll.u32 %s8469_s28, 4  ;;  %s110_s13 = sshll.u32 %s8470_s30, 4  ;;  %s87_s29 = int_to_ptr.vmem [resolvable:$true] %s86_s29  ;;  %s8580_s13 = int_to_ptr.vmem [resolvable:$true] %s110_s13 }
  0x2a   :  { %s8207_s17 = scalar_lea.hbm %s11493_s5, 256 }
  0x2b   :  { %p8208_p2 = scmp.ne.s32.totalorder %s11493_s5, %s8207_s17  ;;  %p8211_p3 = scmp.lt.u32.totalorder %s8207_s17, %s11493_s5 }
  0x2d   :  { %p8213_p4 = pnand %p8211_p3, %p8208_p2 }
  0x2f   :  { %8216 = shalt.err (!%p8213_p4)
}
  0x30   :  { %s8217_s3 = scalar_lea.vmem %s87_s29, 256  ;;  %p8222_p6 = scmp.lt.s32.totalorder %s87_s29, %s87_s29 }
  0x31   :  { %p8218_p5 = scmp.ne.s32.totalorder %s87_s29, %s8217_s3  ;;  %p8223_p7 = scmp.lt.s32.totalorder %s8217_s3, %s8217_s3 }
  0x33   :  { %p8224_p8 = por %p8223_p7, %p8222_p6 }
  0x35   :  { %p8225_p9 = pnand %p8224_p8, %p8218_p5 }
  0x37   :  { %8228 = shalt.err (!%p8225_p9)
}
  0x38   :  { %s8471_s16 = smov 128   ;;  %s8472_s23 = smov 8  }
  0x39   :  { %92 = dma.hbm_to_vmem [thread:$0]  %s11493_s5, 256, %s87_s29, [#allocation12], %s8471_s16, %s8471_s16, %s8472_s23  }
  0x3a   :  { %s8229_s28 = scalar_lea.hbm %s11495_s7, 256 }
  0x3b   :  { %p8230_p10 = scmp.ne.s32.totalorder %s11495_s7, %s8229_s28  ;;  %p8233_p11 = scmp.lt.u32.totalorder %s8229_s28, %s11495_s7 }
  0x3d   :  { %p8235_p12 = pnand %p8233_p11, %p8230_p10 }
  0x3f   :  { %8238 = shalt.err (!%p8235_p12)
}
  0x40   :  { %s8239_s18 = scalar_lea.vmem %s8580_s13, 256  ;;  %p8244_p0 = scmp.lt.s32.totalorder %s8580_s13, %s8580_s13 }
  0x41   :  { %p8240_p13 = scmp.ne.s32.totalorder %s8580_s13, %s8239_s18  ;;  %p8245_p1 = scmp.lt.s32.totalorder %s8239_s18, %s8239_s18 }
  0x43   :  { %p8246_p2 = por %p8245_p1, %p8244_p0 }
  0x45   :  { %p8247_p3 = pnand %p8246_p2, %p8240_p13 }
  0x47   :  { %8250 = shalt.err (!%p8247_p3)
}
  0x48   :  { %116 = dma.hbm_to_vmem [thread:$0]  %s11495_s7, 256, %s8580_s13, [#allocation15], %s8467_s1, %s8467_s1, %s8468_s22  }
  0x49   :  { %s8473_s19 = smov [#allocation17]   ;;  %s8474_s21 = smov [#allocation2]  }
  0x4a   :  { %s132_s20 = sshll.u32 %s8473_s19, 4  ;;  %s30_s3 = sshll.u32 %s8474_s21, 4  ;;  %s133_s20 = int_to_ptr.vmem [resolvable:$true] %s132_s20  ;;  %s8617_s3 = int_to_ptr.vmem [resolvable:$true] %s30_s3 }
  0x4b   :  { %s8251_s26 = scalar_lea.hbm %s11497_s9, 512 }
  0x4c   :  { %p8252_p4 = scmp.ne.s32.totalorder %s11497_s9, %s8251_s26  ;;  %p8255_p5 = scmp.lt.u32.totalorder %s8251_s26, %s11497_s9 }
  0x4e   :  { %p8257_p6 = pnand %p8255_p5, %p8252_p4 }
  0x50   :  { %8260 = shalt.err (!%p8257_p6)
}
  0x51   :  { %s8261_s7 = scalar_lea.vmem %s133_s20, 512  ;;  %p8266_p8 = scmp.lt.s32.totalorder %s133_s20, %s133_s20 }
  0x52   :  { %p8262_p7 = scmp.ne.s32.totalorder %s133_s20, %s8261_s7  ;;  %p8267_p9 = scmp.lt.s32.totalorder %s8261_s7, %s8261_s7 }
  0x54   :  { %p8268_p10 = por %p8267_p9, %p8266_p8 }
  0x56   :  { %p8269_p11 = pnand %p8268_p10, %p8262_p7 }
  0x58   :  { %8272 = shalt.err (!%p8269_p11)
}
  0x59   :  { %138 = dma.hbm_to_vmem [thread:$0]  %s11497_s9, 512, %s133_s20, [#allocation18], %s8467_s1, %s8467_s1, %s8468_s22  }
  0x5a   :  { %s8273_s5 = scalar_lea.hbm %s11488_s0, 1024 }
  0x5b   :  { %p8274_p12 = scmp.ne.s32.totalorder %s11488_s0, %s8273_s5  ;;  %p8277_p13 = scmp.lt.u32.totalorder %s8273_s5, %s11488_s0 }
  0x5d   :  { %p8279_p0 = pnand %p8277_p13, %p8274_p12 }
  0x5f   :  { %8282 = shalt.err (!%p8279_p0)
}
  0x60   :  { %s8283_s25 = scalar_lea.vmem %s8617_s3, 1024  ;;  %p8288_p2 = scmp.lt.s32.totalorder %s8617_s3, %s8617_s3 }
  0x61   :  { %p8284_p1 = scmp.ne.s32.totalorder %s8617_s3, %s8283_s25  ;;  %p8289_p3 = scmp.lt.s32.totalorder %s8283_s25, %s8283_s25 }
  0x63   :  { %p8290_p4 = por %p8289_p3, %p8288_p2 }
  0x65   :  { %p8291_p5 = pnand %p8290_p4, %p8284_p1 }
  0x67   :  { %8294 = shalt.err (!%p8291_p5)
}
  0x68   :  { %36 = dma.hbm_to_vmem [thread:$0]  %s11488_s0, 1024, %s8617_s3, [#allocation3], %s8467_s1, %s8467_s1, %s8468_s22  }
  0x69   :  { %s8475_s26 = smov [#allocation7]   ;;  %s8476_s28 = smov [#allocation10]  }
  0x6a   :  { %s53_s27 = sshll.u32 %s8475_s26, 4  ;;  %s74_s30 = sshll.u32 %s8476_s28, 4  ;;  %s54_s27 = int_to_ptr.vmem [resolvable:$true] %s53_s27  ;;  %s8654_s30 = int_to_ptr.vmem [resolvable:$true] %s74_s30 }
  0x6b   :  { %s8295_s13 = scalar_lea.hbm %s11490_s2, 16 }
  0x6c   :  { %p8296_p6 = scmp.ne.s32.totalorder %s11490_s2, %s8295_s13  ;;  %p8299_p7 = scmp.lt.u32.totalorder %s8295_s13, %s11490_s2 }
  0x6e   :  { %p8301_p8 = pnand %p8299_p7, %p8296_p6 }
  0x70   :  { %8304 = shalt.err (!%p8301_p8)
}
  0x71   :  { %s8305_s0 = scalar_lea.vmem %s54_s27, 16  ;;  %s8309_s3 = scalar_lea.vmem %s54_s27, 32 }
  0x72   :  { %p8306_p9 = scmp.ne.s32.totalorder %s54_s27, %s8305_s0  ;;  %p8310_p10 = scmp.lt.s32.totalorder %s54_s27, %s54_s27 }
  0x73   :  { %p8311_p11 = scmp.lt.s32.totalorder %s8309_s3, %s8305_s0 }
  0x75   :  { %p8312_p12 = por %p8311_p11, %p8310_p10 }
  0x77   :  { %p8313_p13 = pnand %p8312_p12, %p8306_p9 }
  0x79   :  { %8316 = shalt.err (!%p8313_p13)
}
  0x7a   :  { %56 = dma.hbm_to_vmem [thread:$0]  %s11490_s2, 16, %s54_s27, [#allocation6]  }
  0x7b   :  { %s8317_s25 = scalar_lea.hbm %s11492_s4, 256 }
  0x7c   :  { %p8318_p0 = scmp.ne.s32.totalorder %s11492_s4, %s8317_s25  ;;  %p8321_p1 = scmp.lt.u32.totalorder %s8317_s25, %s11492_s4 }
  0x7e   :  { %p8323_p2 = pnand %p8321_p1, %p8318_p0 }
  0x80   :  { %8326 = shalt.err (!%p8323_p2)
}
  0x81   :  { %s8327_s14 = scalar_lea.vmem %s8654_s30, 256  ;;  %p8332_p4 = scmp.lt.s32.totalorder %s8654_s30, %s8654_s30 }
  0x82   :  { %p8328_p3 = scmp.ne.s32.totalorder %s8654_s30, %s8327_s14  ;;  %p8333_p5 = scmp.lt.s32.totalorder %s8327_s14, %s8327_s14 }
  0x84   :  { %p8334_p6 = por %p8333_p5, %p8332_p4 }
  0x86   :  { %p8335_p7 = pnand %p8334_p6, %p8328_p3 }
  0x88   :  { %8338 = shalt.err (!%p8335_p7)
}
  0x89   :  { %80 = dma.hbm_to_vmem [thread:$0]  %s11492_s4, 256, %s8654_s30, [#allocation9], %s8471_s16, %s8471_s16, %s8472_s23  }
  0x8a   :  { %s8477_s7 = smov [#allocation13]   ;;  %s8478_s15 = smov [#allocation16]  }
  0x8b   :  { %s98_s13 = sshll.u32 %s8477_s7, 4  ;;  %s123_s17 = sshll.u32 %s8478_s15, 4  ;;  %s99_s13 = int_to_ptr.vmem [resolvable:$true] %s98_s13  ;;  %s124_s17 = int_to_ptr.vmem [resolvable:$true] %s123_s17 }
  0x8c   :  { %s8339_s0 = scalar_lea.hbm %s11494_s6, 256 }
  0x8d   :  { %p8340_p8 = scmp.ne.s32.totalorder %s11494_s6, %s8339_s0  ;;  %p8343_p9 = scmp.lt.u32.totalorder %s8339_s0, %s11494_s6 }
  0x8f   :  { %p8345_p10 = pnand %p8343_p9, %p8340_p8 }
  0x91   :  { %8348 = shalt.err (!%p8345_p10)
}
  0x92   :  { %s8349_s4 = scalar_lea.vmem %s99_s13, 256  ;;  %p8354_p12 = scmp.lt.s32.totalorder %s99_s13, %s99_s13 }
  0x93   :  { %p8350_p11 = scmp.ne.s32.totalorder %s99_s13, %s8349_s4  ;;  %p8355_p13 = scmp.lt.s32.totalorder %s8349_s4, %s8349_s4 }
  0x95   :  { %p8356_p0 = por %p8355_p13, %p8354_p12 }
  0x97   :  { %p8357_p1 = pnand %p8356_p0, %p8350_p11 }
  0x99   :  { %8360 = shalt.err (!%p8357_p1)
}
  0x9a   :  { %104 = dma.hbm_to_vmem [thread:$0]  %s11494_s6, 256, %s99_s13, [#allocation12], %s8467_s1, %s8467_s1, %s8468_s22  }
  0x9b   :  { %s8361_s25 = scalar_lea.hbm %s11496_s8, 16 }
  0x9c   :  { %p8362_p2 = scmp.ne.s32.totalorder %s11496_s8, %s8361_s25  ;;  %p8365_p3 = scmp.lt.u32.totalorder %s8361_s25, %s11496_s8 }
  0x9e   :  { %p8367_p4 = pnand %p8365_p3, %p8362_p2 }
  0xa0   :  { %8370 = shalt.err (!%p8367_p4)
}
  0xa1   :  { %s8371_s14 = scalar_lea.vmem %s124_s17, 16  ;;  %s8375_s2 = scalar_lea.vmem %s124_s17, 32 }
  0xa2   :  { %p8372_p5 = scmp.ne.s32.totalorder %s124_s17, %s8371_s14  ;;  %p8376_p6 = scmp.lt.s32.totalorder %s124_s17, %s124_s17 }
  0xa3   :  { %p8377_p7 = scmp.lt.s32.totalorder %s8375_s2, %s8371_s14 }
  0xa5   :  { %p8378_p8 = por %p8377_p7, %p8376_p6 }
  0xa7   :  { %p8379_p9 = pnand %p8378_p8, %p8372_p5 }
  0xa9   :  { %8382 = shalt.err (!%p8379_p9)
}
  0xaa   :  { %126 = dma.hbm_to_vmem [thread:$0]  %s11496_s8, 16, %s124_s17, [#allocation15]  }
  0xab   :  { %s8479_s7 = smov [#allocation19]   ;;  %s8480_s15 = smov [#allocation20]  }
  0xac   :  { %s144_s13 = sshll.u32 %s8479_s7, 4  ;;  %s157_s18 = sshll.u32 %s8480_s15, 4  ;;  %s145_s13 = int_to_ptr.vmem [resolvable:$true] %s144_s13  ;;  %s158_s18 = int_to_ptr.vmem [resolvable:$true] %s157_s18 }
  0xad   :  { %s8383_s3 = scalar_lea.hbm %s11498_s10, 256 }
  0xae   :  { %p8384_p10 = scmp.ne.s32.totalorder %s11498_s10, %s8383_s3  ;;  %p8387_p11 = scmp.lt.u32.totalorder %s8383_s3, %s11498_s10 }
  0xb0   :  { %p8389_p12 = pnand %p8387_p11, %p8384_p10 }
  0xb2   :  { %8392 = shalt.err (!%p8389_p12)
}
  0xb3   :  { %s8393_s8 = scalar_lea.vmem %s145_s13, 256  ;;  %p8398_p0 = scmp.lt.s32.totalorder %s145_s13, %s145_s13 }
  0xb4   :  { %p8394_p13 = scmp.ne.s32.totalorder %s145_s13, %s8393_s8  ;;  %p8399_p1 = scmp.lt.s32.totalorder %s8393_s8, %s8393_s8 }
  0xb6   :  { %p8400_p2 = por %p8399_p1, %p8398_p0 }
  0xb8   :  { %p8401_p3 = pnand %p8400_p2, %p8394_p13 }
  0xba   :  { %8404 = shalt.err (!%p8401_p3)
}
  0xbb   :  { %150 = dma.hbm_to_vmem [thread:$0]  %s11498_s10, 256, %s145_s13, [#allocation18], %s8467_s1, %s8467_s1, %s8468_s22  }
  0xbc   :  { %s8405_s24 = scalar_lea.hbm %s11499_s11, 16 }
  0xbd   :  { %p8406_p4 = scmp.ne.s32.totalorder %s11499_s11, %s8405_s24  ;;  %p8409_p5 = scmp.lt.u32.totalorder %s8405_s24, %s11499_s11 }
  0xbf   :  { %p8411_p6 = pnand %p8409_p5, %p8406_p4 }
  0xc1   :  { %8414 = shalt.err (!%p8411_p6)
}
  0xc2   :  { %s8415_s28 = scalar_lea.vmem %s158_s18, 16  ;;  %s8419_s14 = scalar_lea.vmem %s158_s18, 32 }
  0xc3   :  { %p8416_p7 = scmp.ne.s32.totalorder %s158_s18, %s8415_s28  ;;  %p8420_p8 = scmp.lt.s32.totalorder %s158_s18, %s158_s18 }
  0xc4   :  { %p8421_p9 = scmp.lt.s32.totalorder %s8419_s14, %s8415_s28 }
  0xc6   :  { %p8422_p10 = por %p8421_p9, %p8420_p8 }
  0xc8   :  { %p8423_p11 = pnand %p8422_p10, %p8416_p7 }
  0xca   :  { %8426 = shalt.err (!%p8423_p11)
}
  0xcb   :  { %160 = dma.hbm_to_vmem [thread:$0]  %s11499_s11, 16, %s158_s18, [#allocation21]  }
  0xcc   :  { %8449 = dma.done.wait [#allocation3], 1024  }
  0xcd   :  { %8450 = vsyncadd [#allocation3], 4294966272 }
  0xce   :  { %8451 = dma.done.wait [#allocation6], 80  }
  0xcf   :  { %8452 = vsyncadd [#allocation6], 4294967216 }
  0xd0   :  { %8453 = dma.done.wait [#allocation9], 1280  }
  0xd1   :  { %8454 = vsyncadd [#allocation9], 4294966016 }
  0xd2   :  { %8455 = dma.done.wait [#allocation12], 512  }
  0xd3   :  { %8456 = vsyncadd [#allocation12], 4294966784 }
  0xd4   :  { %8457 = dma.done.wait [#allocation15], 272  }
  0xd5   :  { %8458 = vsyncadd [#allocation15], 4294967024 }
  0xd6   :  { %8459 = dma.done.wait [#allocation18], 768  }
  0xd7   :  { %8460 = vsyncadd [#allocation18], 4294966528 }
  0xd8   :  { %8461 = dma.done.wait [#allocation21], 16  }
  0xd9   :  { %8462 = vsyncadd [#allocation21], 4294967280  ;;  %vm287_vm0 = vcmask 1043456   ;;  %vm262_vm1 = vcmask 64512   ;;  %v214_v0 = vld [vmem:[#allocation5] sm:$0xf] }
  0xda   :  { %7577 = vmatprep.subr.msk.bf16.mxu0 %vm287_vm0, %v214_v0  ;;  %v289_v1 = vsel %vm287_vm0, %v214_v0, 0  ;;  %v7721_v2 = vld [vmem:[#allocation2] sm:$0xff]   ;;  %v7722_v3 = vld [vmem:[#allocation2 + $0x8] sm:$0xff]   ;;  %v7723_v4 = vld [vmem:[#allocation2 + $0x10] sm:$0xff]   ;;  %vm892_vm2 = vcmask 261120   ;;  %s8481_s11 = smov 120  }
  0xdb   :  { %6976 = vmatpush3.bf16.msra.mxu0 %v289_v1  ;;  %6977 = vmatprep.mubr.msk.bf16.mxu0 %vm262_vm1, %v7721_v2  ;;  %v7724_v5 = vld [vmem:[#allocation2 + $0x18] sm:$0xff]   ;;  %v7725_v6 = vld [vmem:[#allocation2 + $0x20] sm:$0xff]   ;;  %v7726_v7 = vld [vmem:[#allocation2 + $0x28] sm:$0xff]   ;;  %vm8483_vm3 = vmmov 0   ;;  %s8484_s2 = smov 96   ;;  %s8485_s6 = smov 112  }
  0xdc   :  { %v7727_v8 = vld [vmem:[#allocation2 + $0x30] sm:$0xff]   ;;  %v7728_v9 = vld [vmem:[#allocation2 + $0x38] sm:$0xff]   ;;  %v7729_v10 = vld [vmem:[#allocation8] sm:$0xff]   ;;  %s8486_s27 = smov 104   ;;  %vm3002_vm4 = vcmask 130048   ;;  %vm6053_vm5 = vcmask 523264  }
  0xdd   :  { %6993 = vmatprep.subr.bf16.mxu1 %v7729_v10  ;;  %v7730_v11 = vld [vmem:[#allocation8 + $0x8] sm:$0xff]   ;;  %v7731_v12 = vld [vmem:[#allocation8 + $0x10] sm:$0xff]   ;;  %v7732_v13 = vld [vmem:[#allocation8 + $0x18] sm:$0xff]   ;;  %vm6557_vm6 = vcmask 1041409   ;;  %vm6559_vm7 = vcmask 1042434   ;;  %vm6561_vm8 = vcmask 1043459  }
  0xde   :  { %6978 = vmatmul.mubr.msk.bf16.vlgmr.msra.gmra.mrb[0].mxu0 %vm262_vm1, %v7722_v3  ;;  %6994 = vmatpush3.bf16.msra.mxu1 %v7729_v10  ;;  %v7733_v14 = vld [vmem:[#allocation8 + $0x20] sm:$0xff]   ;;  %v7734_v15 = vld [vmem:[#allocation8 + $0x28] sm:$0xff]   ;;  %v7735_v16 = vld [vmem:[#allocation8 + $0x30] sm:$0xff]   ;;  %vm6563_vm9 = vcmask 1044484   ;;  %vm6565_vm10 = vcmask 1045509   ;;  %vm6567_vm11 = vcmask 1046534  }
  0xdf   :  { %6981 = vmatprep.mubr.msk.bf16.mxu0 %vm262_vm1, %v7723_v4  ;;  %6995 = vmatprep.subr.bf16.mxu1 %v7730_v11  ;;  %v7736_v17 = vld [vmem:[#allocation8 + $0x38] sm:$0xff]   ;;  %vm6569_vm12 = vcmask 1047559  }
  0xe0   :  { %v8750_v18 = vld [vmem:[#allocation7] ss:$0 sm:$0xff] }
  0xe2   :  { %6996 = vmatpush3.bf16.msra.mxu1 %v7730_v11 }
  0xe3   :  { %6997 = vmatprep.subr.bf16.mxu1 %v7731_v12 }
  0xe6   :  { %6982 = vmatmul.mubr.msk.bf16.gmra.mrb[4].mxu0 %vm262_vm1, %v7724_v5  ;;  %6998 = vmatpush3.bf16.msra.mxu1 %v7731_v12 }
  0xe7   :  { %6985 = vmatprep.mubr.msk.bf16.mxu0 %vm262_vm1, %v7725_v6  ;;  %6999 = vmatprep.subr.bf16.mxu1 %v7732_v13 }
  0xea   :  { %7000 = vmatpush3.bf16.msra.mxu1 %v7732_v13 }
  0xeb   :  { %7001 = vmatprep.subr.bf16.mxu1 %v7733_v14 }
  0xee   :  { %6986 = vmatmul.mubr.msk.bf16.gmra.mrb[8].mxu0 %vm262_vm1, %v7726_v7  ;;  %7002 = vmatpush3.bf16.msra.mxu1 %v7733_v14 }
  0xef   :  { %6989 = vmatprep.mubr.msk.bf16.mxu0 %vm262_vm1, %v7727_v8  ;;  %7003 = vmatprep.subr.bf16.mxu1 %v7734_v15 }
  0xf2   :  { %7004 = vmatpush3.bf16.msra.mxu1 %v7734_v15 }
  0xf3   :  { %7005 = vmatprep.subr.bf16.mxu1 %v7735_v16 }
  0xf6   :  { %6990 = vmatmul.mubr.msk.bf16.gmra.mrb[12].mxu0 %vm262_vm1, %v7728_v9  ;;  %7006 = vmatpush3.bf16.msra.mxu1 %v7735_v16 }
  0xf7   :  { %7007 = vmatprep.subr.bf16.mxu1 %v7736_v17 }
  0xfa   :  { %7008 = vmatpush3.bf16.msra.mxu1 %v7736_v17 }
 0x1b1   :  { %v6979_v19 = vpop.f32.mrb[0].mxu0 }
 0x1b2   :  { %v334_v20 = vadd.f32 %v6979_v19, %v8750_v18  ;;  %v325_v21 = vpop.f32.mrb[1].mxu0 }
 0x1b3   :  { %v326_v22 = vadd.f32 %v8750_v18, %v325_v21  ;;  %v6980_v23 = vpop.f32.mrb[2].mxu0 }
 0x1b4   :  { %v406_v24 = vmul.f32 0.044715, %v334_v20  ;;  %v8755_v25 = vadd.f32 %v6980_v23, %v8750_v18  ;;  %v328_v26 = vpop.f32.mrb[3].mxu0  ;;  %v390_v5 = vmul.f32 0.5, %v334_v20 }
 0x1b5   :  { %v404_v27 = vmul.f32 0.044715, %v326_v22  ;;  %v8758_v28 = vadd.f32 %v8750_v18, %v328_v26  ;;  %v388_v14 = vmul.f32 0.5, %v326_v22 }
 0x1b6   :  { %v422_v29 = vmul.f32 %v406_v24, %v334_v20  ;;  %v407_v30 = vmul.f32 0.044715, %v8755_v25 }
 0x1b7   :  { %v405_v31 = vmul.f32 0.044715, %v8758_v28  ;;  %v420_v32 = vmul.f32 %v404_v27, %v326_v22 }
 0x1b8   :  { %v438_v33 = vmul.f32 %v422_v29, %v334_v20  ;;  %v423_v34 = vmul.f32 %v407_v30, %v8755_v25 }
 0x1b9   :  { %v6983_v35 = vpop.f32.mrb[4].mxu0  ;;  %v421_v36 = vmul.f32 %v405_v31, %v8758_v28  ;;  %v436_v37 = vmul.f32 %v420_v32, %v326_v22  ;;  %v389_v32 = vmul.f32 0.5, %v8758_v28 }
 0x1ba   :  { %v439_v38 = vmul.f32 %v423_v34, %v8755_v25  ;;  %v8766_v39 = vadd.f32 %v6983_v35, %v8750_v18  ;;  %v341_v40 = vpop.f32.mrb[5].mxu0  ;;  %v454_v41 = vadd.f32 %v438_v33, %v334_v20  ;;  %v391_v33 = vmul.f32 0.5, %v8755_v25 }
 0x1bb   :  { %v342_v42 = vadd.f32 %v8750_v18, %v341_v40  ;;  %v6984_v43 = vpop.f32.mrb[6].mxu0  ;;  %v437_v44 = vmul.f32 %v421_v36, %v8758_v28  ;;  %v452_v45 = vadd.f32 %v436_v37, %v326_v22 }
 0x1bc   :  { %v410_v46 = vmul.f32 0.044715, %v8766_v39  ;;  %v8772_v47 = vadd.f32 %v6984_v43, %v8750_v18  ;;  %v344_v48 = vpop.f32.mrb[7].mxu0  ;;  %v455_v49 = vadd.f32 %v439_v38, %v8755_v25  ;;  %v470_v50 = vmul.f32 0.7978846, %v454_v41 }
 0x1bd   :  { %v408_v51 = vmul.f32 0.044715, %v342_v42  ;;  %v8776_v52 = vadd.f32 %v8750_v18, %v344_v48  ;;  %v453_v53 = vadd.f32 %v437_v44, %v8758_v28  ;;  %v468_v54 = vmul.f32 0.7978846, %v452_v45 }
 0x1be   :  { %v426_v55 = vmul.f32 %v410_v46, %v8766_v39  ;;  %v411_v56 = vmul.f32 0.044715, %v8772_v47  ;;  %v471_v57 = vmul.f32 0.7978846, %v455_v49  ;;  %7747 = vtanh.f32 %v470_v50 }
 0x1bf   :  { %v424_v58 = vmul.f32 %v408_v51, %v342_v42  ;;  %v409_v59 = vmul.f32 0.044715, %v8776_v52  ;;  %v469_v60 = vmul.f32 0.7978846, %v453_v53  ;;  %7749 = vtanh.f32 %v468_v54 }
 0x1c0   :  { %v442_v61 = vmul.f32 %v426_v55, %v8766_v39  ;;  %v427_v62 = vmul.f32 %v411_v56, %v8772_v47  ;;  %7751 = vtanh.f32 %v471_v57  ;;  %v392_v38 = vmul.f32 0.5, %v342_v42 }
 0x1c1   :  { %v440_v63 = vmul.f32 %v424_v58, %v342_v42  ;;  %v425_v0 = vmul.f32 %v409_v59, %v8776_v52  ;;  %v6987_v1 = vpop.f32.mrb[8].mxu0  ;;  %7753 = vtanh.f32 %v469_v60 }
 0x1c2   :  { %v443_v2 = vmul.f32 %v427_v62, %v8772_v47  ;;  %v8787_v3 = vadd.f32 %v6987_v1, %v8750_v18  ;;  %v357_v4 = vpop.f32.mrb[9].mxu0  ;;  %v458_v10 = vadd.f32 %v442_v61, %v8766_v39 }
 0x1c3   :  { %v441_v6 = vmul.f32 %v425_v0, %v8776_v52  ;;  %v8791_v7 = vadd.f32 %v8750_v18, %v357_v4  ;;  %v6988_v8 = vpop.f32.mrb[10].mxu0  ;;  %v456_v9 = vadd.f32 %v440_v63, %v342_v42 }
 0x1c4   :  { %v414_v11 = vmul.f32 0.044715, %v8787_v3  ;;  %v8796_v12 = vadd.f32 %v6988_v8, %v8750_v18  ;;  %v360_v13 = vpop.f32.mrb[11].mxu0  ;;  %v459_v15 = vadd.f32 %v443_v2, %v8772_v47  ;;  %v474_v24 = vmul.f32 0.7978846, %v458_v10 }
 0x1c5   :  { %v412_v16 = vmul.f32 0.044715, %v8791_v7  ;;  %v8801_v17 = vadd.f32 %v8750_v18, %v360_v13  ;;  %v457_v19 = vadd.f32 %v441_v6, %v8776_v52  ;;  %v472_v20 = vmul.f32 0.7978846, %v456_v9 }
 0x1c6   :  { %v430_v21 = vmul.f32 %v414_v11, %v8787_v3  ;;  %v415_v23 = vmul.f32 0.044715, %v8796_v12  ;;  %v475_v26 = vmul.f32 0.7978846, %v459_v15  ;;  %v394_v13 = vmul.f32 0.5, %v8766_v39 }
 0x1c7   :  { %v428_v27 = vmul.f32 %v412_v16, %v8791_v7  ;;  %v413_v22 = vmul.f32 0.044715, %v8801_v17  ;;  %v473_v29 = vmul.f32 0.7978846, %v457_v19  ;;  %7755 = vtanh.f32 %v472_v20 }
 0x1c8   :  { %v7748_v30 = vpop.eup %7747  ;;  %v431_v31 = vmul.f32 %v415_v23, %v8796_v12  ;;  %7757 = vtanh.f32 %v474_v24  ;;  %v446_v25 = vmul.f32 %v430_v21, %v8787_v3 }
 0x1c9   :  { %v7750_v34 = vpop.eup %7749  ;;  %v429_v35 = vmul.f32 %v413_v22, %v8801_v17  ;;  %v6991_v36 = vpop.f32.mrb[12].mxu0  ;;  %v502_v37 = vadd.f32 1.0, %v7748_v30  ;;  %7759 = vtanh.f32 %v473_v29  ;;  %v444_v41 = vmul.f32 %v428_v27, %v8791_v7 }
 0x1ca   :  { %v7752_v40 = vpop.eup %7751  ;;  %v8814_v43 = vadd.f32 %v6991_v36, %v8750_v18  ;;  %v373_v44 = vpop.f32.mrb[13].mxu0  ;;  %v500_v45 = vadd.f32 1.0, %v7750_v34  ;;  %7761 = vtanh.f32 %v475_v26  ;;  %v447_v50 = vmul.f32 %v431_v31, %v8796_v12 }
 0x1cb   :  { %v7754_v28 = vpop.eup %7753  ;;  %v445_v46 = vmul.f32 %v429_v35, %v8801_v17  ;;  %v8819_v48 = vadd.f32 %v8750_v18, %v373_v44  ;;  %v6992_v49 = vpop.f32.mrb[14].mxu0  ;;  %v503_v42 = vadd.f32 1.0, %v7752_v40  ;;  %v518_v58 = vmul.f32 %v502_v37, %v390_v5 }
 0x1cc   :  { %v418_v51 = vmul.f32 0.044715, %v8814_v43  ;;  %v8824_v53 = vadd.f32 %v6992_v49, %v8750_v18  ;;  %v376_v54 = vpop.f32.mrb[15].mxu0  ;;  %v501_v55 = vadd.f32 1.0, %v7754_v28  ;;  %v516_v61 = vmul.f32 %v500_v45, %v388_v14 }
 0x1cd   :  { %v416_v56 = vmul.f32 0.044715, %v8819_v48  ;;  %v8828_v57 = vadd.f32 %v8750_v18, %v376_v54  ;;  %v519_v59 = vmul.f32 %v503_v42, %v391_v33  ;;  %v460_v63 = vadd.f32 %v444_v41, %v8791_v7 }
 0x1ce   :  { %v419_v60 = vmul.f32 0.044715, %v8824_v53  ;;  %v517_v62 = vmul.f32 %v501_v55, %v389_v32  ;;  %v461_v4 = vadd.f32 %v445_v46, %v8801_v17  ;;  %v434_v6 = vmul.f32 %v418_v51, %v8814_v43 }
 0x1cf   :  { %v432_v0 = vmul.f32 %v416_v56, %v8819_v48  ;;  %v417_v1 = vmul.f32 0.044715, %v8828_v57  ;;  %v533_v2 = vpack.c.bf16 %v519_v59, %v518_v58  ;;  %v393_v18 = vmul.f32 0.5, %v8776_v52 }
 0x1d0   :  { %v532_v8 = vpack.c.bf16 %v517_v62, %v516_v61  ;;  %v476_v5 = vmul.f32 0.7978846, %v460_v63  ;;  %v435_v10 = vmul.f32 %v419_v60, %v8824_v53  ;;  %v477_v14 = vmul.f32 0.7978846, %v461_v4 }
 0x1d1   :  { %v7756_v9 = vpop.eup %7755  ;;  %v433_v11 = vmul.f32 %v417_v1, %v8828_v57  ;;  %v448_v16 = vmul.f32 %v432_v0, %v8819_v48  ;;  %v462_v20 = vadd.f32 %v446_v25, %v8787_v3  ;;  %v463_v24 = vadd.f32 %v447_v50, %v8796_v12 }
 0x1d2   :  { %v7758_v15 = vpop.eup %7757  ;;  %7009 = vmatprep.mubr.bf16.mxu1 %v532_v8  ;;  %v504_v19 = vadd.f32 1.0, %v7756_v9  ;;  %7763 = vtanh.f32 %v476_v5  ;;  %v450_v39 = vmul.f32 %v434_v6, %v8814_v43  ;;  %v395_v22 = vmul.f32 0.5, %v8772_v47 }
 0x1d3   :  { %v7760_v21 = vpop.eup %7759  ;;  %v449_v52 = vmul.f32 %v433_v11, %v8828_v57  ;;  %7010 = vmatmul.mubr.bf16.vlgmr.msra.gmra.mrb[0].mxu1 %v533_v2  ;;  %v506_v23 = vadd.f32 1.0, %v7758_v15  ;;  %7765 = vtanh.f32 %v477_v14  ;;  %v478_v29 = vmul.f32 0.7978846, %v462_v20 }
 0x1d4   :  { %v7762_v26 = vpop.eup %7761  ;;  %v505_v27 = vadd.f32 1.0, %v7760_v21  ;;  %v451_v30 = vmul.f32 %v435_v10, %v8824_v53  ;;  %v520_v31 = vmul.f32 %v504_v19, %v392_v38  ;;  %v479_v33 = vmul.f32 0.7978846, %v463_v24 }
 0x1d5   :  { %v507_v32 = vadd.f32 1.0, %v7762_v26  ;;  %7767 = vtanh.f32 %v478_v29  ;;  %v464_v35 = vadd.f32 %v448_v16, %v8819_v48  ;;  %v465_v36 = vadd.f32 %v449_v52, %v8828_v57 }
 0x1d6   :  { %v521_v34 = vmul.f32 %v505_v27, %v393_v18  ;;  %v522_v37 = vmul.f32 %v506_v23, %v394_v13  ;;  %7769 = vtanh.f32 %v479_v33  ;;  %v466_v47 = vadd.f32 %v450_v39, %v8814_v43 }
 0x1d7   :  { %v523_v40 = vmul.f32 %v507_v32, %v395_v22  ;;  %v480_v44 = vmul.f32 0.7978846, %v464_v35  ;;  %v481_v45 = vmul.f32 0.7978846, %v465_v36  ;;  %v467_v25 = vadd.f32 %v451_v30, %v8824_v53 }
 0x1d8   :  { %v534_v41 = vpack.c.bf16 %v521_v34, %v520_v31  ;;  %v482_v38 = vmul.f32 0.7978846, %v466_v47  ;;  %v396_v51 = vmul.f32 0.5, %v8791_v7  ;;  %v397_v54 = vmul.f32 0.5, %v8801_v17 }
 0x1d9   :  { %v535_v28 = vpack.c.bf16 %v523_v40, %v522_v37  ;;  %7771 = vtanh.f32 %v480_v44  ;;  %v483_v46 = vmul.f32 0.7978846, %v467_v25  ;;  %v398_v63 = vmul.f32 0.5, %v8787_v3 }
 0x1da   :  { %7013 = vmatprep.mubr.bf16.mxu1 %v534_v41  ;;  %7773 = vtanh.f32 %v481_v45  ;;  %v399_v0 = vmul.f32 0.5, %v8796_v12  ;;  %v400_v5 = vmul.f32 0.5, %v8819_v48  ;;  %v401_v9 = vmul.f32 0.5, %v8828_v57  ;;  %v7737_v48 = vld [vmem:[#allocation13] sm:$0xff]   ;;  %v7738_v57 = vld [vmem:[#allocation13 + $0x8] sm:$0xff]  }
 0x1db   :  { %7014 = vmatmul.mubr.bf16.gmra.mrb[4].mxu1 %v535_v28  ;;  %7775 = vtanh.f32 %v482_v38  ;;  %v402_v13 = vmul.f32 0.5, %v8814_v43  ;;  %v403_v15 = vmul.f32 0.5, %v8824_v53  ;;  %7025 = vmatprep.subr.bf16.mxu0 %v7737_v48  ;;  %v8859_v43 = vld [vmem:[#allocation10] ss:$0 sm:$0xff] }
 0x1dc   :  { %v7764_v49 = vpop.eup %7763  ;;  %7777 = vtanh.f32 %v483_v46  ;;  %7026 = vmatpush3.bf16.msra.mxu0 %v7737_v48 }
 0x1dd   :  { %v7766_v42 = vpop.eup %7765  ;;  %v508_v50 = vadd.f32 1.0, %v7764_v49  ;;  %7027 = vmatprep.subr.bf16.mxu0 %v7738_v57 }
 0x1de   :  { %v509_v55 = vadd.f32 1.0, %v7766_v42 }
 0x1df   :  { %v7768_v56 = vpop.eup %7767  ;;  %v524_v58 = vmul.f32 %v508_v50, %v396_v51 }
 0x1e0   :  { %v525_v59 = vmul.f32 %v509_v55, %v397_v54  ;;  %v7770_v60 = vpop.eup %7769  ;;  %v510_v61 = vadd.f32 1.0, %v7768_v56  ;;  %7028 = vmatpush3.bf16.msra.mxu0 %v7738_v57 }
 0x1e1   :  { %v511_v1 = vadd.f32 1.0, %v7770_v60 }
 0x1e2   :  { %v536_v62 = vpack.c.bf16 %v525_v59, %v524_v58  ;;  %v526_v4 = vmul.f32 %v510_v61, %v398_v63 }
 0x1e3   :  { %v7772_v2 = vpop.eup %7771  ;;  %v527_v6 = vmul.f32 %v511_v1, %v399_v0 }
 0x1e4   :  { %7017 = vmatprep.mubr.bf16.mxu1 %v536_v62  ;;  %v7774_v8 = vpop.eup %7773  ;;  %v512_v7 = vadd.f32 1.0, %v7772_v2 }
 0x1e5   :  { %v7776_v18 = vpop.eup %7775  ;;  %v537_v17 = vpack.c.bf16 %v527_v6, %v526_v4  ;;  %v513_v10 = vadd.f32 1.0, %v7774_v8 }
 0x1e6   :  { %v7778_v11 = vpop.eup %7777  ;;  %v514_v3 = vadd.f32 1.0, %v7776_v18  ;;  %v528_v12 = vmul.f32 %v512_v7, %v400_v5 }
 0x1e7   :  { %7018 = vmatmul.mubr.bf16.gmra.mrb[8].mxu1 %v537_v17  ;;  %v529_v14 = vmul.f32 %v513_v10, %v401_v9  ;;  %v515_v16 = vadd.f32 1.0, %v7778_v11 }
 0x1e8   :  { %v530_v20 = vmul.f32 %v514_v3, %v402_v13 }
 0x1e9   :  { %v538_v19 = vpack.c.bf16 %v529_v14, %v528_v12  ;;  %v531_v21 = vmul.f32 %v515_v16, %v403_v15 }
 0x1eb   :  { %7021 = vmatprep.mubr.bf16.mxu1 %v538_v19  ;;  %v539_v52 = vpack.c.bf16 %v531_v21, %v530_v20 }
 0x1ef   :  { %7022 = vmatmul.mubr.bf16.gmra.mrb[12].mxu1 %v539_v52 }
 0x2a6   :  { %v7011_v23 = vpop.f32.mrb[0].mxu1 }
 0x2a7   :  { %v652_v24 = vadd.f32 %v7011_v23, %v8859_v43  ;;  %v643_v26 = vpop.f32.mrb[1].mxu1 }
 0x2a8   :  { %v644_v53 = vadd.f32 %v8859_v43, %v643_v26  ;;  %v7012_v39 = vpop.f32.mrb[2].mxu1 }
 0x2a9   :  { %v724_v27 = vmul.f32 0.044715, %v652_v24  ;;  %v655_v22 = vadd.f32 %v7012_v39, %v8859_v43  ;;  %v646_v29 = vpop.f32.mrb[3].mxu1  ;;  %v708_v3 = vmul.f32 0.5, %v652_v24 }
 0x2aa   :  { %v722_v30 = vmul.f32 0.044715, %v644_v53  ;;  %v647_v31 = vadd.f32 %v8859_v43, %v646_v29  ;;  %v8872_v20 = vmul.f32 0.5, %v644_v53 }
 0x2ab   :  { %v740_v32 = vmul.f32 %v724_v27, %v652_v24  ;;  %v725_v33 = vmul.f32 0.044715, %v655_v22  ;;  %v709_v21 = vmul.f32 0.5, %v655_v22 }
 0x2ac   :  { %v738_v34 = vmul.f32 %v722_v30, %v644_v53  ;;  %v723_v35 = vmul.f32 0.044715, %v647_v31  ;;  %v8877_v23 = vmul.f32 0.5, %v647_v31 }
 0x2ad   :  { %v756_v36 = vmul.f32 %v740_v32, %v652_v24  ;;  %v741_v37 = vmul.f32 %v725_v33, %v655_v22 }
 0x2ae   :  { %v754_v40 = vmul.f32 %v738_v34, %v644_v53  ;;  %v739_v41 = vmul.f32 %v723_v35, %v647_v31  ;;  %v7015_v44 = vpop.f32.mrb[4].mxu1 }
 0x2af   :  { %v772_v45 = vadd.f32 %v756_v36, %v652_v24  ;;  %v757_v47 = vmul.f32 %v741_v37, %v655_v22  ;;  %v668_v28 = vadd.f32 %v7015_v44, %v8859_v43  ;;  %v659_v25 = vpop.f32.mrb[5].mxu1 }
 0x2b0   :  { %v755_v38 = vmul.f32 %v739_v41, %v647_v31  ;;  %v660_v46 = vadd.f32 %v8859_v43, %v659_v25  ;;  %v7016_v49 = vpop.f32.mrb[6].mxu1  ;;  %v770_v50 = vadd.f32 %v754_v40, %v644_v53 }
 0x2b1   :  { %v788_v42 = vmul.f32 0.7978846, %v772_v45  ;;  %v773_v51 = vadd.f32 %v757_v47, %v655_v22  ;;  %v728_v54 = vmul.f32 0.044715, %v668_v28  ;;  %v662_v55 = vpop.f32.mrb[7].mxu1  ;;  %v671_v61 = vadd.f32 %v7016_v49, %v8859_v43 }
 0x2b2   :  { %v771_v56 = vadd.f32 %v755_v38, %v647_v31  ;;  %v726_v58 = vmul.f32 0.044715, %v660_v46  ;;  %v663_v63 = vadd.f32 %v8859_v43, %v662_v55  ;;  %v786_v0 = vmul.f32 0.7978846, %v770_v50  ;;  %v8910_v55 = vld [vmem:[#allocation11 + $0x8] sm:$0xff] }
 0x2b3   :  { %7779 = vtanh.f32 %v788_v42  ;;  %v789_v59 = vmul.f32 0.7978846, %v773_v51  ;;  %v744_v60 = vmul.f32 %v728_v54, %v668_v28  ;;  %v729_v2 = vmul.f32 0.044715, %v671_v61 }
 0x2b4   :  { %v742_v62 = vmul.f32 %v726_v58, %v660_v46  ;;  %v787_v4 = vmul.f32 0.7978846, %v771_v56  ;;  %v727_v8 = vmul.f32 0.044715, %v663_v63  ;;  %v8879_v26 = vmul.f32 0.5, %v668_v28 }
 0x2b5   :  { %7781 = vtanh.f32 %v789_v59  ;;  %v760_v1 = vmul.f32 %v744_v60, %v668_v28  ;;  %v745_v7 = vmul.f32 %v729_v2, %v671_v61  ;;  %v8882_v29 = vmul.f32 0.5, %v660_v46 }
 0x2b6   :  { %v758_v6 = vmul.f32 %v742_v62, %v660_v46  ;;  %v743_v17 = vmul.f32 %v727_v8, %v663_v63  ;;  %7783 = vtanh.f32 %v786_v0  ;;  %v8894_v40 = vmul.f32 0.5, %v671_v61 }
 0x2b7   :  { %v776_v18 = vadd.f32 %v760_v1, %v668_v28  ;;  %v761_v9 = vmul.f32 %v745_v7, %v671_v61  ;;  %7785 = vtanh.f32 %v787_v4  ;;  %v8896_v41 = vmul.f32 0.5, %v663_v63 }
 0x2b8   :  { %v774_v5 = vadd.f32 %v758_v6, %v660_v46  ;;  %v759_v10 = vmul.f32 %v743_v17, %v663_v63 }
 0x2b9   :  { %v777_v11 = vadd.f32 %v761_v9, %v671_v61  ;;  %v792_v12 = vmul.f32 0.7978846, %v776_v18  ;;  %v8928_v9 = vld [vmem:[#allocation11] sm:$0xff] }
 0x2ba   :  { %v7019_v13 = vpop.f32.mrb[8].mxu1  ;;  %v775_v14 = vadd.f32 %v759_v10, %v663_v63  ;;  %v790_v52 = vmul.f32 0.7978846, %v774_v5 }
 0x2bb   :  { %v8870_v15 = vadd.f32 %v7019_v13, %v8859_v43  ;;  %v675_v16 = vpop.f32.mrb[9].mxu1  ;;  %v793_v30 = vmul.f32 0.7978846, %v777_v11  ;;  %7787 = vtanh.f32 %v792_v12 }
 0x2bc   :  { %v8875_v48 = vadd.f32 %v8859_v43, %v675_v16  ;;  %v7020_v57 = vpop.f32.mrb[10].mxu1  ;;  %v791_v24 = vmul.f32 0.7978846, %v775_v14  ;;  %7789 = vtanh.f32 %v790_v52 }
 0x2bd   :  { %v7780_v19 = vpop.eup %7779  ;;  %v732_v39 = vmul.f32 0.044715, %v8870_v15  ;;  %v8886_v22 = vadd.f32 %v7020_v57, %v8859_v43  ;;  %v678_v32 = vpop.f32.mrb[11].mxu1 }
 0x2be   :  { %v730_v53 = vmul.f32 0.044715, %v8875_v48  ;;  %v820_v33 = vadd.f32 1.0, %v7780_v19  ;;  %v8892_v37 = vadd.f32 %v8859_v43, %v678_v32  ;;  %7791 = vtanh.f32 %v791_v24 }
 0x2bf   :  { %v7782_v27 = vpop.eup %7781  ;;  %v748_v31 = vmul.f32 %v732_v39, %v8870_v15  ;;  %v733_v36 = vmul.f32 0.044715, %v8886_v22  ;;  %7793 = vtanh.f32 %v793_v30 }
 0x2c0   :  { %v821_v34 = vadd.f32 1.0, %v7782_v27  ;;  %v746_v35 = vmul.f32 %v730_v53, %v8875_v48  ;;  %v7784_v45 = vpop.eup %7783  ;;  %v731_v25 = vmul.f32 0.044715, %v8892_v37  ;;  %v8902_v49 = vmul.f32 %v820_v33, %v708_v3 }
 0x2c1   :  { %v764_v44 = vmul.f32 %v748_v31, %v8870_v15  ;;  %v749_v28 = vmul.f32 %v733_v36, %v8886_v22  ;;  %v7786_v46 = vpop.eup %7785  ;;  %v818_v2 = vadd.f32 1.0, %v7784_v45 }
 0x2c2   :  { %v762_v47 = vmul.f32 %v746_v35, %v8875_v48  ;;  %v7023_v38 = vpop.f32.mrb[12].mxu1  ;;  %11554 = vst [vmem:[#allocation31_spill] sm:$0xff] %v8902_v49  ;;  %v8904_v42 = vmul.f32 %v821_v34, %v709_v21  ;;  %v747_v59 = vmul.f32 %v731_v25, %v8892_v37  ;;  %v819_v7 = vadd.f32 1.0, %v7786_v46 }
 0x2c3   :  { %v780_v50 = vadd.f32 %v764_v44, %v8870_v15  ;;  %v8908_v51 = vadd.f32 %v7023_v38, %v8859_v43  ;;  %v691_v54 = vpop.f32.mrb[13].mxu1  ;;  %v765_v58 = vmul.f32 %v749_v28, %v8886_v22  ;;  %v8938_v19 = vmul.f32 %v818_v2, %v8872_v20 }
 0x2c4   :  { %11555 = vst [vmem:[#allocation32_spill] sm:$0xff] %v8904_v42  ;;  %v778_v56 = vadd.f32 %v762_v47, %v8875_v48  ;;  %v8916_v60 = vadd.f32 %v8859_v43, %v691_v54  ;;  %v7024_v61 = vpop.f32.mrb[14].mxu1  ;;  %v763_v8 = vmul.f32 %v747_v59, %v8892_v37  ;;  %v855_v18 = vadd.f32 %v8910_v55, %v8904_v42 }
 0x2c5   :  { %v796_v62 = vmul.f32 0.7978846, %v780_v50  ;;  %v736_v63 = vmul.f32 0.044715, %v8908_v51  ;;  %v8920_v0 = vadd.f32 %v7024_v61, %v8859_v43  ;;  %v694_v1 = vpop.f32.mrb[15].mxu1  ;;  %v781_v6 = vadd.f32 %v765_v58, %v8886_v22  ;;  %v7788_v3 = vpop.eup %7787  ;;  %11556 = vst [vmem:[#allocation33_spill] sm:$0xff] %v8938_v19 }
 0x2c6   :  { %v794_v4 = vmul.f32 0.7978846, %v778_v56  ;;  %v734_v5 = vmul.f32 0.044715, %v8916_v60  ;;  %v779_v11 = vadd.f32 %v763_v8, %v8892_v37  ;;  %v8935_v16 = vadd.f32 %v8859_v43, %v694_v1  ;;  %v7790_v21 = vpop.eup %7789 }
 0x2c7   :  { %7795 = vtanh.f32 %v796_v62  ;;  %v752_v17 = vmul.f32 %v736_v63, %v8908_v51  ;;  %v797_v10 = vmul.f32 0.7978846, %v781_v6  ;;  %v737_v13 = vmul.f32 0.044715, %v8920_v0 }
 0x2c8   :  { %7797 = vtanh.f32 %v794_v4  ;;  %v750_v14 = vmul.f32 %v734_v5, %v8916_v60  ;;  %v795_v52 = vmul.f32 0.7978846, %v779_v11  ;;  %v8942_v24 = vmul.f32 %v819_v7, %v8877_v23  ;;  %v7792_v39 = vpop.eup %7791 }
 0x2c9   :  { %v768_v12 = vmul.f32 %v752_v17, %v8908_v51  ;;  %7799 = vtanh.f32 %v797_v10  ;;  %v753_v57 = vmul.f32 %v737_v13, %v8920_v0  ;;  %v854_v27 = vadd.f32 %v8928_v9, %v8902_v49  ;;  %v7794_v20 = vpop.eup %7793 }
 0x2ca   :  { %11557 = vst [vmem:[#allocation34_spill] sm:$0xff] %v8942_v24  ;;  %v766_v43 = vmul.f32 %v750_v14, %v8916_v60  ;;  %v735_v53 = vmul.f32 0.044715, %v8935_v16  ;;  %7801 = vtanh.f32 %v795_v52  ;;  %v852_v33 = vadd.f32 %v8928_v9, %v8938_v19 }
 0x2cb   :  { %v784_v30 = vadd.f32 %v768_v12, %v8908_v51  ;;  %v769_v32 = vmul.f32 %v753_v57, %v8920_v0  ;;  %v853_v23 = vadd.f32 %v8910_v55, %v8942_v24  ;;  %v869_v36 = vpack.c.bf16 %v855_v18, %v854_v27 }
 0x2cc   :  { %v782_v31 = vadd.f32 %v766_v43, %v8916_v60  ;;  %v751_v35 = vmul.f32 %v735_v53, %v8935_v16  ;;  %v822_v47 = vadd.f32 1.0, %v7790_v21  ;;  %v823_v28 = vadd.f32 1.0, %v7792_v39 }
 0x2cd   :  { %v800_v34 = vmul.f32 0.7978846, %v784_v30  ;;  %v785_v44 = vadd.f32 %v769_v32, %v8920_v0  ;;  %v868_v45 = vpack.c.bf16 %v853_v23, %v852_v33  ;;  %v824_v46 = vadd.f32 1.0, %v7788_v3 }
 0x2ce   :  { %v798_v25 = vmul.f32 0.7978846, %v782_v31  ;;  %v767_v38 = vmul.f32 %v751_v35, %v8935_v16  ;;  %v8960_v54 = vmul.f32 %v822_v47, %v8882_v29  ;;  %v8963_v56 = vmul.f32 %v823_v28, %v8896_v41 }
 0x2cf   :  { %7803 = vtanh.f32 %v800_v34  ;;  %v801_v50 = vmul.f32 0.7978846, %v785_v44  ;;  %7029 = vmatprep.mubr.msk.bf16.mxu0 %vm892_vm2, %v868_v45  ;;  %v825_v58 = vadd.f32 1.0, %v7794_v20  ;;  %v8968_v62 = vmul.f32 %v824_v46, %v8879_v26 }
 0x2d0   :  { %11558 = vst [vmem:[#allocation35_spill] sm:$0xff] %v8960_v54  ;;  %11559 = vst [vmem:[#allocation36_spill] sm:$0xff] %v8963_v56  ;;  %7805 = vtanh.f32 %v798_v25  ;;  %v783_v61 = vadd.f32 %v767_v38, %v8935_v16  ;;  %7030 = vmatmul.mubr.msk.bf16.vlgmr.msra.gmra.mrb[16].mxu0 %vm892_vm2, %v869_v36  ;;  %v856_v1 = vadd.f32 %v8928_v9, %v8960_v54  ;;  %v714_v8 = vmul.f32 0.5, %v8875_v48 }
 0x2d1   :  { %v7796_v59 = vpop.eup %7795  ;;  %11560 = vst [vmem:[#allocation37_spill] sm:$0xff] %v8968_v62  ;;  %7807 = vtanh.f32 %v801_v50  ;;  %v857_v29 = vadd.f32 %v8910_v55, %v8963_v56  ;;  %v8975_v41 = vmul.f32 %v825_v58, %v8894_v40  ;;  %v717_v7 = vmul.f32 0.5, %v8886_v22 }
 0x2d2   :  { %v7798_v63 = vpop.eup %7797  ;;  %v799_v2 = vmul.f32 0.7978846, %v783_v61  ;;  %v858_v17 = vadd.f32 %v8928_v9, %v8968_v62  ;;  %v828_v5 = vadd.f32 1.0, %v7796_v59  ;;  %v716_v40 = vmul.f32 0.5, %v8870_v15 }
 0x2d3   :  { %11561 = vst [vmem:[#allocation38_spill] sm:$0xff] %v8975_v41  ;;  %v826_v4 = vadd.f32 1.0, %v7798_v63  ;;  %v7800_v6 = vpop.eup %7799  ;;  %v870_v26 = vpack.c.bf16 %v857_v29, %v856_v1  ;;  %v859_v18 = vadd.f32 %v8910_v55, %v8975_v41  ;;  %v715_v13 = vmul.f32 0.5, %v8892_v37 }
 0x2d4   :  { %7809 = vtanh.f32 %v799_v2  ;;  %v829_v10 = vadd.f32 1.0, %v7800_v6  ;;  %v7802_v11 = vpop.eup %7801  ;;  %v8993_v52 = vmul.f32 %v828_v5, %v716_v40  ;;  %v721_v30 = vmul.f32 0.5, %v8920_v0 }
 0x2d5   :  { %7033 = vmatprep.mubr.msk.bf16.mxu0 %vm892_vm2, %v870_v26  ;;  %v871_v48 = vpack.c.bf16 %v859_v18, %v858_v17  ;;  %v827_v3 = vadd.f32 1.0, %v7802_v11  ;;  %v8986_v22 = vmul.f32 %v826_v4, %v714_v8  ;;  %v718_v23 = vmul.f32 0.5, %v8916_v60 }
 0x2d6   :  { %v8988_v12 = vmul.f32 %v829_v10, %v717_v7  ;;  %11565 = vst [vmem:[#allocation42_spill] sm:$0xff] %v8993_v52  ;;  %v862_v20 = vadd.f32 %v8928_v9, %v8993_v52  ;;  %v720_v31 = vmul.f32 0.5, %v8908_v51  ;;  %v719_v44 = vmul.f32 0.5, %v8935_v16 }
 0x2d7   :  { %11562 = vst [vmem:[#allocation39_spill] sm:$0xff] %v8986_v22  ;;  %v8991_v21 = vmul.f32 %v827_v3, %v715_v13  ;;  %v860_v15 = vadd.f32 %v8928_v9, %v8986_v22 }
 0x2d8   :  { %11563 = vst [vmem:[#allocation40_spill] sm:$0xff] %v8988_v12  ;;  %7034 = vmatmul.mubr.msk.bf16.gmra.mrb[20].mxu0 %vm892_vm2, %v871_v48  ;;  %v863_v39 = vadd.f32 %v8910_v55, %v8988_v12 }
 0x2d9   :  { %v7804_v14 = vpop.eup %7803  ;;  %11564 = vst [vmem:[#allocation41_spill] sm:$0xff] %v8991_v21  ;;  %v861_v37 = vadd.f32 %v8910_v55, %v8991_v21 }
 0x2da   :  { %v7806_v57 = vpop.eup %7805  ;;  %v832_v32 = vadd.f32 1.0, %v7804_v14  ;;  %v873_v35 = vpack.c.bf16 %v863_v39, %v862_v20  ;;  %v11506_v14 = vmov 0.0  }
 0x2db   :  { %v7808_v27 = vpop.eup %7807  ;;  %v830_v43 = vadd.f32 1.0, %v7806_v57  ;;  %v872_v53 = vpack.c.bf16 %v861_v37, %v860_v15  ;;  %7051 = vmatprep.subr.bf16.mxu0 %v11506_v14  ;;  %7045 = vmatprep.subr.bf16.mxu1 %v11506_v14 }
 0x2dc   :  { %v833_v33 = vadd.f32 1.0, %v7808_v27  ;;  %v9013_v47 = vmul.f32 %v832_v32, %v720_v31  ;;  %7047 = vmatprep.mubr.msk.bf16.mxu1 %vm8483_vm3, %v11506_v14 }
 0x2dd   :  { %7037 = vmatprep.mubr.msk.bf16.mxu0 %vm892_vm2, %v872_v53  ;;  %v9010_v45 = vmul.f32 %v830_v43, %v718_v23 }
 0x2de   :  { %v7810_v34 = vpop.eup %7809  ;;  %v9007_v36 = vmul.f32 %v833_v33, %v721_v30  ;;  %11568 = vst [vmem:[#allocation45_spill] sm:$0xff] %v9013_v47  ;;  %v866_v16 = vadd.f32 %v8928_v9, %v9013_v47 }
 0x2df   :  { %v831_v0 = vadd.f32 1.0, %v7810_v34  ;;  %11567 = vst [vmem:[#allocation44_spill] sm:$0xff] %v9010_v45  ;;  %v864_v51 = vadd.f32 %v8928_v9, %v9010_v45 }
 0x2e0   :  { %11566 = vst [vmem:[#allocation43_spill] sm:$0xff] %v9007_v36  ;;  %7038 = vmatmul.mubr.msk.bf16.gmra.mrb[24].mxu0 %vm892_vm2, %v873_v35  ;;  %v867_v60 = vadd.f32 %v8910_v55, %v9007_v36 }
 0x2e1   :  { %v9015_v28 = vmul.f32 %v831_v0, %v719_v44 }
 0x2e2   :  { %v875_v46 = vpack.c.bf16 %v867_v60, %v866_v16 }
 0x2e3   :  { %11569 = vst [vmem:[#allocation46_spill] sm:$0xff] %v9015_v28  ;;  %v865_v25 = vadd.f32 %v8910_v55, %v9015_v28 }
 0x2e5   :  { %v874_v38 = vpack.c.bf16 %v865_v25, %v864_v51 }
 0x2e7   :  { %7041 = vmatprep.mubr.msk.bf16.mxu0 %vm892_vm2, %v874_v38 }
 0x2e8   :  { %7042 = vmatmul.mubr.msk.bf16.gmra.mrb[28].mxu0 %vm892_vm2, %v875_v46 }
 0x2e9   :  { %7053 = vmatprep.mubr.msk.bf16.mxu0 %vm8483_vm3, %v11506_v14 }
 0x3a3   :  { %v9027_v50 = vpop.f32.mrb[16].mxu0 }
 0x3a4   :  { %v9029_v58 = vpop.f32.mrb[17].mxu0 }
 0x3a5   :  { %v9031_v59 = vpop.f32.mrb[18].mxu0 }
 0x3a6   :  { %v9033_v61 = vpop.f32.mrb[19].mxu0  ;;  %v9037_v55 = vpack.i.bf16 %v9031_v59, %v9027_v50  ;;  %v9041_v9 = vpack.c.bf16 %v9031_v59, %v9027_v50 }
 0x3a7   :  { %v9045_v63 = vpack.i.bf16 %v9033_v61, %v9029_v58  ;;  %v9049_v1 = vpack.c.bf16 %v9033_v61, %v9029_v58 }
 0x3a9   :  { %7602 = vrot.lane.b32.xlu0 %v9045_v63, %s8481_s11 }
 0x3ab   :  { %v9053_v29 = vpop.f32.mrb[20].mxu0 }
 0x3ac   :  { %v9055_v2 = vpop.f32.mrb[21].mxu0 }
 0x3ad   :  { %7607 = vrot.lane.b32.xlu0 %v9037_v55, %s8481_s11  ;;  %v9059_v4 = vpop.f32.mrb[22].mxu0 }
 0x3ae   :  { %v9061_v6 = vpop.f32.mrb[23].mxu0  ;;  %v9065_v8 = vpack.i.bf16 %v9059_v4, %v9053_v29  ;;  %v9069_v7 = vpack.c.bf16 %v9059_v4, %v9053_v29 }
 0x3af   :  { %v9073_v26 = vpack.i.bf16 %v9061_v6, %v9055_v2  ;;  %v9077_v18 = vpack.c.bf16 %v9061_v6, %v9055_v2 }
 0x3b1   :  { %7612 = vrot.lane.b32.xlu1 %v9073_v26, %s8481_s11 }
 0x3b3   :  { %v9081_v17 = vpop.f32.mrb[24].mxu0 }
 0x3b4   :  { %v9083_v5 = vpop.f32.mrb[25].mxu0 }
 0x3b5   :  { %7617 = vrot.lane.b32.xlu1 %v9065_v8, %s8481_s11  ;;  %v9087_v10 = vpop.f32.mrb[26].mxu0 }
 0x3b6   :  { %v9089_v11 = vpop.f32.mrb[27].mxu0  ;;  %v9093_v40 = vpack.i.bf16 %v9087_v10, %v9081_v17  ;;  %v9097_v13 = vpack.c.bf16 %v9087_v10, %v9081_v17 }
 0x3b7   :  { %v9101_v48 = vpack.i.bf16 %v9089_v11, %v9083_v5  ;;  %v9105_v3 = vpack.c.bf16 %v9089_v11, %v9083_v5 }
 0x3b9   :  { %7627 = vrot.lane.b32.xlu1 %v9093_v40, %s8481_s11  ;;  %7622 = vrot.lane.b32.xlu0 %v9101_v48, %s8481_s11 }
 0x3bb   :  { %v9113_v57 = vpop.f32.mrb[28].mxu0 }
 0x3bc   :  { %v9115_v15 = vpop.f32.mrb[29].mxu0 }
 0x3bd   :  { %v9117_v37 = vpop.f32.mrb[30].mxu0 }
 0x3be   :  { %v9119_v39 = vpop.f32.mrb[31].mxu0  ;;  %v9123_v27 = vpack.i.bf16 %v9117_v37, %v9113_v57  ;;  %v9127_v30 = vpack.c.bf16 %v9117_v37, %v9113_v57 }
 0x3bf   :  { %v9135_v43 = vpack.i.bf16 %v9119_v39, %v9115_v15  ;;  %v9139_v53 = vpack.c.bf16 %v9119_v39, %v9115_v15 }
 0x3c0   :  { %7632 = vrot.lane.b32.xlu1 %v9123_v27, %s8481_s11 }
 0x3c1   :  { %7637 = vrot.lane.b32.xlu0 %v9135_v43, %s8481_s11 }
 0x3c4   :  { %1389 = vrot.lane.b32.xlu1 %v9041_v9, %s8484_s2 }
 0x3c5   :  { %1339 = vrot.lane.b32.xlu0 %v9049_v1, %s8484_s2 }
 0x3c8   :  { %7647 = vrot.lane.b32.xlu1 %v9037_v55, %s8485_s6 }
 0x3c9   :  { %7642 = vrot.lane.b32.xlu0 %v9045_v63, %s8485_s6 }
 0x3cc   :  { %1489 = vrot.lane.b32.xlu1 %v9069_v7, %s8484_s2 }
 0x3cd   :  { %1439 = vrot.lane.b32.xlu0 %v9077_v18, %s8484_s2 }
 0x3d0   :  { %7657 = vrot.lane.b32.xlu1 %v9065_v8, %s8485_s6 }
 0x3d1   :  { %7652 = vrot.lane.b32.xlu0 %v9073_v26, %s8485_s6 }
 0x3d4   :  { %1589 = vrot.lane.b32.xlu1 %v9097_v13, %s8484_s2 }
 0x3d5   :  { %1539 = vrot.lane.b32.xlu0 %v9105_v3, %s8484_s2 }
 0x3d8   :  { %7667 = vrot.lane.b32.xlu1 %v9093_v40, %s8485_s6 }
 0x3d9   :  { %7662 = vrot.lane.b32.xlu0 %v9101_v48, %s8485_s6 }
 0x3dc   :  { %1689 = vrot.lane.b32.xlu1 %v9127_v30, %s8484_s2 }
 0x3dd   :  { %1639 = vrot.lane.b32.xlu0 %v9139_v53, %s8484_s2 }
 0x3e0   :  { %7677 = vrot.lane.b32.xlu1 %v9123_v27, %s8485_s6 }
 0x3e1   :  { %7672 = vrot.lane.b32.xlu0 %v9135_v43, %s8485_s6 }
 0x41b   :  { %v7603_v20 = vpop.permute.xlu0 %7602 }
 0x41c   :  { %v7605_v32 = vunpack.i.h.bf16 %v7603_v20  ;;  %v7604_v33 = vunpack.i.l.bf16 %v7603_v20 }
 0x41e   :  { %v9169_v23 = vpack.c.bf16 %v7605_v32, %v7604_v33 }
 0x41f   :  { %v7608_v34 = vpop.permute.xlu0 %7607 }
 0x420   :  { %v7610_v31 = vunpack.i.h.bf16 %v7608_v34  ;;  %v7609_v35 = vunpack.i.l.bf16 %v7608_v34  ;;  %1739 = vrot.lane.b32.xlu0 %v9169_v23, %s8484_s2 }
 0x422   :  { %v9173_v44 = vpack.c.bf16 %v7610_v31, %v7609_v35 }
 0x423   :  { %v7613_v0 = vpop.permute.xlu1 %7612 }
 0x424   :  { %v7615_v60 = vunpack.i.h.bf16 %v7613_v0  ;;  %v7614_v51 = vunpack.i.l.bf16 %v7613_v0  ;;  %1789 = vrot.lane.b32.xlu1 %v9173_v44, %s8484_s2  ;;  %7682 = vrot.lane.b32.xlu0 %v9045_v63, %s8486_s27 }
 0x426   :  { %v9179_v25 = vpack.c.bf16 %v7615_v60, %v7614_v51 }
 0x427   :  { %v7618_v16 = vpop.permute.xlu1 %7617 }
 0x428   :  { %v7620_v38 = vunpack.i.h.bf16 %v7618_v16  ;;  %v7619_v46 = vunpack.i.l.bf16 %v7618_v16  ;;  %7687 = vrot.lane.b32.xlu1 %v9037_v55, %s8486_s27  ;;  %1839 = vrot.lane.b32.xlu0 %v9179_v25, %s8484_s2 }
 0x42a   :  { %v9185_v20 = vpack.c.bf16 %v7620_v38, %v7619_v46 }
 0x42b   :  { %v7628_v32 = vpop.permute.xlu1 %7627  ;;  %v7623_v33 = vpop.permute.xlu0 %7622 }
 0x42c   :  { %v7625_v34 = vunpack.i.h.bf16 %v7623_v33  ;;  %v7624_v31 = vunpack.i.l.bf16 %v7623_v33  ;;  %1889 = vrot.lane.b32.xlu1 %v9185_v20, %s8484_s2  ;;  %7692 = vrot.lane.b32.xlu0 %v9073_v26, %s8486_s27  ;;  %v7630_v63 = vunpack.i.h.bf16 %v7628_v32  ;;  %v7629_v35 = vunpack.i.l.bf16 %v7628_v32 }
 0x42e   :  { %v9191_v0 = vpack.c.bf16 %v7625_v34, %v7624_v31  ;;  %v9197_v60 = vpack.c.bf16 %v7630_v63, %v7629_v35 }
 0x430   :  { %7697 = vrot.lane.b32.xlu1 %v9065_v8, %s8486_s27  ;;  %1939 = vrot.lane.b32.xlu0 %v9191_v0, %s8484_s2 }
 0x432   :  { %v7633_v55 = vpop.permute.xlu1 %7632 }
 0x433   :  { %v7638_v51 = vpop.permute.xlu0 %7637  ;;  %v7635_v26 = vunpack.i.h.bf16 %v7633_v55  ;;  %v7634_v46 = vunpack.i.l.bf16 %v7633_v55 }
 0x434   :  { %v7640_v16 = vunpack.i.h.bf16 %v7638_v51  ;;  %v7639_v38 = vunpack.i.l.bf16 %v7638_v51  ;;  %1989 = vrot.lane.b32.xlu1 %v9197_v60, %s8484_s2  ;;  %7702 = vrot.lane.b32.xlu0 %v9101_v48, %s8486_s27 }
 0x435   :  { %v9211_v48 = vpack.c.bf16 %v7635_v26, %v7634_v46 }
 0x436   :  { %v1390_v32 = vpop.permute.xlu1 %1389  ;;  %v9203_v33 = vpack.c.bf16 %v7640_v16, %v7639_v38 }
 0x437   :  { %v1395_v8 = vsel %vm262_vm1, %v1390_v32, 0  ;;  %v1340_v34 = vpop.permute.xlu0 %1339 }
 0x438   :  { %v1345_v31 = vsel %vm262_vm1, %v1340_v34, 0  ;;  %7052 = vmatpush3.bf16.xpose.msra.mxu0 %v1395_v8  ;;  %7707 = vrot.lane.b32.xlu1 %v9093_v40, %s8486_s27 }
 0x439   :  { %2039 = vrot.lane.b32.xlu0 %v9203_v33, %s8484_s2  ;;  %7046 = vmatpush3.bf16.xpose.msra.mxu1 %v1345_v31 }
 0x43a   :  { %v7648_v63 = vpop.permute.xlu1 %7647  ;;  %7063 = vmatprep.subr.bf16.mxu0 %v11506_v14  ;;  %7057 = vmatprep.subr.bf16.mxu1 %v11506_v14 }
 0x43b   :  { %v7643_v35 = vpop.permute.xlu0 %7642  ;;  %v7650_v40 = vunpack.i.h.bf16 %v7648_v63  ;;  %v7649_v16 = vunpack.i.l.bf16 %v7648_v63 }
 0x43c   :  { %v7645_v55 = vunpack.i.h.bf16 %v7643_v35  ;;  %v7644_v51 = vunpack.i.l.bf16 %v7643_v35  ;;  %2089 = vrot.lane.b32.xlu1 %v9211_v48, %s8484_s2 }
 0x43d   :  { %7712 = vrot.lane.b32.xlu0 %v9135_v43, %s8486_s27  ;;  %v9231_v34 = vpack.c.bf16 %v7650_v40, %v7649_v16 }
 0x43e   :  { %v1490_v38 = vpop.permute.xlu1 %1489  ;;  %v9219_v32 = vpack.c.bf16 %v7645_v55, %v7644_v51 }
 0x43f   :  { %v1495_v26 = vsel %vm262_vm1, %v1490_v38, 0  ;;  %7054 = vmatmul.mubr.msk.bf16.vlgmr.msra.gmra.mrb[32].mxu0 %vm262_vm1, %v9041_v9  ;;  %v1440_v46 = vpop.permute.xlu0 %1439 }
 0x440   :  { %v1445_v8 = vsel %vm262_vm1, %v1440_v46, 0  ;;  %7064 = vmatpush3.bf16.xpose.msra.mxu0 %v1495_v26  ;;  %7717 = vrot.lane.b32.xlu1 %v9123_v27, %s8486_s27 }
 0x441   :  { %7048 = vmatmul.mubr.msk.bf16.vlgmr.msra.gmra.mrb[16].mxu1 %vm262_vm1, %v9049_v1  ;;  %2139 = vrot.lane.b32.xlu0 %v9219_v32, %s8484_s2 }
 0x442   :  { %7058 = vmatpush3.bf16.xpose.msra.mxu1 %v1445_v8  ;;  %v7658_v43 = vpop.permute.xlu1 %7657  ;;  %7065 = vmatprep.mubr.msk.bf16.mxu0 %vm8483_vm3, %v11506_v14 }
 0x443   :  { %v7660_v9 = vunpack.i.h.bf16 %v7658_v43  ;;  %v7659_v31 = vunpack.i.l.bf16 %v7658_v43  ;;  %v7653_v63 = vpop.permute.xlu0 %7652  ;;  %7059 = vmatprep.mubr.msk.bf16.mxu1 %vm8483_vm3, %v11506_v14  ;;  %7075 = vmatprep.subr.bf16.mxu0 %v11506_v14 }
 0x444   :  { %v7655_v27 = vunpack.i.h.bf16 %v7653_v63  ;;  %v7654_v1 = vunpack.i.l.bf16 %v7653_v63  ;;  %2189 = vrot.lane.b32.xlu1 %v9231_v34, %s8484_s2  ;;  %7069 = vmatprep.subr.bf16.mxu1 %v11506_v14 }
 0x445   :  { %v9241_v35 = vpack.c.bf16 %v7660_v9, %v7659_v31 }
 0x446   :  { %v1590_v55 = vpop.permute.xlu1 %1589  ;;  %v9243_v51 = vpack.c.bf16 %v7655_v27, %v7654_v1 }
 0x447   :  { %v1595_v40 = vsel %vm262_vm1, %v1590_v55, 0  ;;  %7066 = vmatmul.mubr.msk.bf16.vlgmr.msra.gmra.mrb[36].mxu0 %vm262_vm1, %v9069_v7  ;;  %v1540_v16 = vpop.permute.xlu0 %1539 }
 0x448   :  { %v1545_v38 = vsel %vm262_vm1, %v1540_v16, 0  ;;  %7076 = vmatpush3.bf16.xpose.msra.mxu0 %v1595_v40  ;;  %2289 = vrot.lane.b32.xlu1 %v9241_v35, %s8484_s2 }
 0x449   :  { %7060 = vmatmul.mubr.msk.bf16.vlgmr.msra.gmra.mrb[20].mxu1 %vm262_vm1, %v9077_v18  ;;  %2239 = vrot.lane.b32.xlu0 %v9243_v51, %s8484_s2 }
 0x44a   :  { %7070 = vmatpush3.bf16.xpose.msra.mxu1 %v1545_v38  ;;  %v7668_v26 = vpop.permute.xlu1 %7667  ;;  %7077 = vmatprep.mubr.msk.bf16.mxu0 %vm8483_vm3, %v11506_v14 }
 0x44b   :  { %v7670_v46 = vunpack.i.h.bf16 %v7668_v26  ;;  %v7669_v7 = vunpack.i.l.bf16 %v7668_v26  ;;  %v7663_v8 = vpop.permute.xlu0 %7662  ;;  %7087 = vmatprep.subr.bf16.mxu0 %v11506_v14  ;;  %7071 = vmatprep.mubr.msk.bf16.mxu1 %vm8483_vm3, %v11506_v14 }
 0x44c   :  { %v7665_v43 = vunpack.i.h.bf16 %v7663_v8  ;;  %v7664_v9 = vunpack.i.l.bf16 %v7663_v8  ;;  %7081 = vmatprep.subr.bf16.mxu1 %v11506_v14 }
 0x44d   :  { %v9261_v18 = vpack.c.bf16 %v7670_v46, %v7669_v7 }
 0x44e   :  { %v1690_v31 = vpop.permute.xlu1 %1689  ;;  %v9263_v63 = vpack.c.bf16 %v7665_v43, %v7664_v9 }
 0x44f   :  { %v1695_v27 = vsel %vm262_vm1, %v1690_v31, 0  ;;  %7078 = vmatmul.mubr.msk.bf16.vlgmr.msra.gmra.mrb[40].mxu0 %vm262_vm1, %v9097_v13  ;;  %2389 = vrot.lane.b32.xlu1 %v9261_v18, %s8484_s2  ;;  %v1640_v1 = vpop.permute.xlu0 %1639 }
 0x450   :  { %v1645_v55 = vsel %vm262_vm1, %v1640_v1, 0  ;;  %7088 = vmatpush3.bf16.xpose.msra.mxu0 %v1695_v27  ;;  %2339 = vrot.lane.b32.xlu0 %v9263_v63, %s8484_s2 }
 0x451   :  { %7072 = vmatmul.mubr.msk.bf16.vlgmr.msra.gmra.mrb[24].mxu1 %vm262_vm1, %v9105_v3  ;;  %7089 = vmatprep.mubr.msk.bf16.mxu0 %vm8483_vm3, %v11506_v14 }
 0x452   :  { %7082 = vmatpush3.bf16.xpose.msra.mxu1 %v1645_v55  ;;  %v7678_v40 = vpop.permute.xlu1 %7677  ;;  %7083 = vmatprep.mubr.msk.bf16.mxu1 %vm8483_vm3, %v11506_v14 }
 0x453   :  { %v7680_v13 = vunpack.i.h.bf16 %v7678_v40  ;;  %v7679_v16 = vunpack.i.l.bf16 %v7678_v40  ;;  %7093 = vmatprep.subr.bf16.mxu1 %v11506_v14  ;;  %7099 = vmatprep.subr.bf16.mxu0 %v11506_v14  ;;  %v7673_v3 = vpop.permute.xlu0 %7672 }
 0x454   :  { %v7674_v27 = vunpack.i.l.bf16 %v7673_v3 }
 0x455   :  { %v9281_v38 = vpack.c.bf16 %v7680_v13, %v7679_v16 }
 0x457   :  { %7090 = vmatmul.mubr.msk.bf16.vlgmr.msra.gmra.mrb[44].mxu0 %vm262_vm1, %v9127_v30  ;;  %2489 = vrot.lane.b32.xlu1 %v9281_v38, %s8484_s2 }
 0x458   :  { %7101 = vmatprep.mubr.msk.bf16.mxu0 %vm8483_vm3, %v11506_v14 }
 0x459   :  { %7084 = vmatmul.mubr.msk.bf16.vlgmr.msra.gmra.mrb[28].mxu1 %vm262_vm1, %v9139_v53  ;;  %v7675_v53 = vunpack.i.h.bf16 %v7673_v3 }
 0x45a   :  { %7095 = vmatprep.mubr.msk.bf16.mxu1 %vm8483_vm3, %v11506_v14 }
 0x492   :  { %v1740_v26 = vpop.permute.xlu0 %1739 }
 0x493   :  { %v1745_v46 = vsel %vm262_vm1, %v1740_v26, 0 }
 0x494   :  { %7094 = vmatpush3.bf16.xpose.msra.mxu1 %v1745_v46 }
 0x495   :  { %7105 = vmatprep.subr.bf16.mxu1 %v11506_v14 }
 0x496   :  { %v1790_v30 = vpop.permute.xlu1 %1789  ;;  %v7683_v7 = vpop.permute.xlu0 %7682 }
 0x497   :  { %v1795_v8 = vsel %vm262_vm1, %v1790_v30, 0  ;;  %v7685_v43 = vunpack.i.h.bf16 %v7683_v7  ;;  %v7684_v9 = vunpack.i.l.bf16 %v7683_v7  ;;  %v9309_v30 = vpack.c.bf16 %v7675_v53, %v7674_v27 }
 0x498   :  { %7100 = vmatpush3.bf16.xpose.msra.mxu0 %v1795_v8 }
 0x499   :  { %v9296_v31 = vpack.c.bf16 %v7685_v43, %v7684_v9  ;;  %7111 = vmatprep.subr.bf16.mxu0 %v11506_v14 }
 0x49a   :  { %v7688_v1 = vpop.permute.xlu1 %7687  ;;  %v1840_v55 = vpop.permute.xlu0 %1839 }
 0x49b   :  { %v7690_v40 = vunpack.i.h.bf16 %v7688_v1  ;;  %v7689_v13 = vunpack.i.l.bf16 %v7688_v1  ;;  %v1845_v16 = vsel %vm262_vm1, %v1840_v55, 0  ;;  %7096 = vmatmul.mubr.msk.bf16.vlgmr.msra.gmra.mrb[32].mxu1 %vm262_vm1, %v9169_v23  ;;  %2539 = vrot.lane.b32.xlu0 %v9296_v31, %s8484_s2 }
 0x49c   :  { %7106 = vmatpush3.bf16.xpose.msra.mxu1 %v1845_v16  ;;  %7107 = vmatprep.mubr.msk.bf16.mxu1 %vm8483_vm3, %v11506_v14 }
 0x49d   :  { %v9306_v26 = vpack.c.bf16 %v7690_v40, %v7689_v13  ;;  %7117 = vmatprep.subr.bf16.mxu1 %v11506_v14 }
 0x49e   :  { %v1890_v3 = vpop.permute.xlu1 %1889  ;;  %v7693_v46 = vpop.permute.xlu0 %7692 }
 0x49f   :  { %v1895_v7 = vsel %vm262_vm1, %v1890_v3, 0  ;;  %v7695_v8 = vunpack.i.h.bf16 %v7693_v46  ;;  %v7694_v43 = vunpack.i.l.bf16 %v7693_v46  ;;  %7102 = vmatmul.mubr.msk.bf16.vlgmr.msra.gmra.mrb[48].mxu0 %vm262_vm1, %v9173_v44  ;;  %2589 = vrot.lane.b32.xlu1 %v9306_v26, %s8484_s2 }
 0x4a0   :  { %2439 = vrot.lane.b32.xlu0 %v9309_v30, %s8484_s2  ;;  %7112 = vmatpush3.bf16.xpose.msra.mxu0 %v1895_v7 }
 0x4a1   :  { %v9318_v23 = vpack.c.bf16 %v7695_v8, %v7694_v43  ;;  %7113 = vmatprep.mubr.msk.bf16.mxu0 %vm8483_vm3, %v11506_v14  ;;  %7123 = vmatprep.subr.bf16.mxu0 %v11506_v14 }
 0x4a2   :  { %v7698_v9 = vpop.permute.xlu1 %7697  ;;  %v1940_v53 = vpop.permute.xlu0 %1939 }
 0x4a3   :  { %v7700_v27 = vunpack.i.h.bf16 %v7698_v9  ;;  %v7699_v1 = vunpack.i.l.bf16 %v7698_v9  ;;  %v1945_v44 = vsel %vm262_vm1, %v1940_v53, 0  ;;  %7108 = vmatmul.mubr.msk.bf16.vlgmr.msra.gmra.mrb[36].mxu1 %vm262_vm1, %v9179_v25 }
 0x4a4   :  { %2639 = vrot.lane.b32.xlu0 %v9318_v23, %s8484_s2  ;;  %7118 = vmatpush3.bf16.xpose.msra.mxu1 %v1945_v44 }
 0x4a5   :  { %v9328_v55 = vpack.c.bf16 %v7700_v27, %v7699_v1  ;;  %7119 = vmatprep.mubr.msk.bf16.mxu1 %vm8483_vm3, %v11506_v14  ;;  %7129 = vmatprep.subr.bf16.mxu1 %v11506_v14 }
 0x4a6   :  { %v1990_v40 = vpop.permute.xlu1 %1989  ;;  %v7703_v13 = vpop.permute.xlu0 %7702 }
 0x4a7   :  { %v1995_v16 = vsel %vm262_vm1, %v1990_v40, 0  ;;  %v7705_v3 = vunpack.i.h.bf16 %v7703_v13  ;;  %v7704_v46 = vunpack.i.l.bf16 %v7703_v13  ;;  %7114 = vmatmul.mubr.msk.bf16.vlgmr.msra.gmra.mrb[52].mxu0 %vm262_vm1, %v9185_v20  ;;  %2689 = vrot.lane.b32.xlu1 %v9328_v55, %s8484_s2 }
 0x4a8   :  { %7124 = vmatpush3.bf16.xpose.msra.mxu0 %v1995_v16  ;;  %7125 = vmatprep.mubr.msk.bf16.mxu0 %vm8483_vm3, %v11506_v14 }
 0x4a9   :  { %v9340_v25 = vpack.c.bf16 %v7705_v3, %v7704_v46  ;;  %7135 = vmatprep.subr.bf16.mxu0 %v11506_v14 }
 0x4aa   :  { %v7708_v7 = vpop.permute.xlu1 %7707 }
 0x4ab   :  { %v7710_v8 = vunpack.i.h.bf16 %v7708_v7  ;;  %v7709_v43 = vunpack.i.l.bf16 %v7708_v7  ;;  %v2040_v9 = vpop.permute.xlu0 %2039  ;;  %7120 = vmatmul.mubr.msk.bf16.vlgmr.msra.gmra.mrb[40].mxu1 %vm262_vm1, %v9191_v0  ;;  %2739 = vrot.lane.b32.xlu0 %v9340_v25, %s8484_s2 }
 0x4ac   :  { %v2045_v20 = vsel %vm262_vm1, %v2040_v9, 0  ;;  %7131 = vmatprep.mubr.msk.bf16.mxu1 %vm8483_vm3, %v11506_v14 }
 0x4ad   :  { %7130 = vmatpush3.bf16.xpose.msra.mxu1 %v2045_v20  ;;  %v9350_v53 = vpack.c.bf16 %v7710_v8, %v7709_v43  ;;  %v6685_v8 = vld [vmem:[#allocation10 + $0x8] ss:$0 sm:$0xff] }
 0x4ae   :  { %v2090_v27 = vpop.permute.xlu1 %2089  ;;  %7141 = vmatprep.subr.bf16.mxu1 %v11506_v14 }
 0x4af   :  { %v2095_v1 = vsel %vm262_vm1, %v2090_v27, 0  ;;  %v9354_v44 = vpop.permute.xlu0 %7712  ;;  %7126 = vmatmul.mubr.msk.bf16.vlgmr.msra.gmra.mrb[56].mxu0 %vm262_vm1, %v9197_v60  ;;  %2789 = vrot.lane.b32.xlu1 %v9350_v53, %s8484_s2 }
 0x4b0   :  { %7136 = vmatpush3.bf16.xpose.msra.mxu0 %v2095_v1  ;;  %7137 = vmatprep.mubr.msk.bf16.mxu0 %vm8483_vm3, %v11506_v14 }
 0x4b1   :  { %7147 = vmatprep.subr.bf16.mxu0 %v11506_v14 }
 0x4b2   :  { %v7718_v0 = vpop.permute.xlu1 %7717 }
 0x4b3   :  { %v7720_v40 = vunpack.i.h.bf16 %v7718_v0  ;;  %v7719_v13 = vunpack.i.l.bf16 %v7718_v0  ;;  %v2140_v16 = vpop.permute.xlu0 %2139 }
 0x4b4   :  { %v2145_v3 = vsel %vm262_vm1, %v2140_v16, 0  ;;  %7132 = vmatmul.mubr.msk.bf16.vlgmr.msra.gmra.mrb[44].mxu1 %vm262_vm1, %v9203_v33 }
 0x4b5   :  { %7142 = vmatpush3.bf16.xpose.msra.mxu1 %v2145_v3  ;;  %v9366_v60 = vpack.c.bf16 %v7720_v40, %v7719_v13  ;;  %7143 = vmatprep.mubr.msk.bf16.mxu1 %vm8483_vm3, %v11506_v14 }
 0x4b6   :  { %v2190_v46 = vpop.permute.xlu1 %2189  ;;  %7153 = vmatprep.subr.bf16.mxu1 %v11506_v14 }
 0x4b7   :  { %v2195_v7 = vsel %vm262_vm1, %v2190_v46, 0  ;;  %7138 = vmatmul.mubr.msk.bf16.vlgmr.msra.gmra.mrb[60].mxu0 %vm262_vm1, %v9211_v48  ;;  %2889 = vrot.lane.b32.xlu1 %v9366_v60, %s8484_s2  ;;  %v6686_v48 = vld [vmem:[#allocation10 + $0x9] ss:$0 sm:$0xff] }
 0x4b8   :  { %7148 = vmatpush3.bf16.xpose.msra.mxu0 %v2195_v7  ;;  %7149 = vmatprep.mubr.msk.bf16.mxu0 %vm8483_vm3, %v11506_v14 }
 0x4b9   :  { %7159 = vmatprep.subr.bf16.mxu0 %v11506_v14 }
 0x4ba   :  { %v2290_v43 = vpop.permute.xlu1 %2289 }
 0x4bb   :  { %v2240_v33 = vpop.permute.xlu0 %2239  ;;  %1212 = vrot.lane.b32.xlu1 %v6685_v8, %s8467_s1  ;;  %v2295_v20 = vsel %vm262_vm1, %v2290_v43, 0 }
 0x4bc   :  { %v2245_v9 = vsel %vm262_vm1, %v2240_v33, 0  ;;  %7144 = vmatmul.mubr.msk.bf16.vlgmr.msra.gmra.mrb[48].mxu1 %vm262_vm1, %v9219_v32 }
 0x4bd   :  { %7154 = vmatpush3.bf16.xpose.msra.mxu1 %v2245_v9  ;;  %7155 = vmatprep.mubr.msk.bf16.mxu1 %vm8483_vm3, %v11506_v14 }
 0x4be   :  { %7165 = vmatprep.subr.bf16.mxu1 %v11506_v14 }
 0x4bf   :  { %7150 = vmatmul.mubr.msk.bf16.vlgmr.msra.gmra.mrb[64].mxu0 %vm262_vm1, %v9231_v34  ;;  %1237 = vrot.lane.b32.xlu1 %v6686_v48, %s8467_s1 }
 0x4c0   :  { %7160 = vmatpush3.bf16.xpose.msra.mxu0 %v2295_v20  ;;  %7161 = vmatprep.mubr.msk.bf16.mxu0 %vm8483_vm3, %v11506_v14 }
 0x4c1   :  { %7171 = vmatprep.subr.bf16.mxu0 %v11506_v14  ;;  %v2390_v1 = vpop.permute.xlu1 %2389 }
 0x4c2   :  { %v2340_v32 = vpop.permute.xlu0 %2339  ;;  %v2395_v34 = vsel %vm262_vm1, %v2390_v1, 0 }
 0x4c3   :  { %v2345_v27 = vsel %vm262_vm1, %v2340_v32, 0 }
 0x4c4   :  { %7156 = vmatmul.mubr.msk.bf16.vlgmr.msra.gmra.mrb[52].mxu1 %vm262_vm1, %v9243_v51 }
 0x4c5   :  { %7166 = vmatpush3.bf16.xpose.msra.mxu1 %v2345_v27  ;;  %7167 = vmatprep.mubr.msk.bf16.mxu1 %vm8483_vm3, %v11506_v14 }
 0x4c6   :  { %7177 = vmatprep.subr.bf16.mxu1 %v11506_v14 }
 0x4c7   :  { %7162 = vmatmul.mubr.msk.bf16.vlgmr.msra.gmra.mrb[68].mxu0 %vm262_vm1, %v9241_v35 }
 0x4c8   :  { %7172 = vmatpush3.bf16.xpose.msra.mxu0 %v2395_v34  ;;  %7173 = vmatprep.mubr.msk.bf16.mxu0 %vm8483_vm3, %v11506_v14 }
 0x4c9   :  { %7183 = vmatprep.subr.bf16.mxu0 %v11506_v14  ;;  %v2490_v0 = vpop.permute.xlu1 %2489 }
 0x4ca   :  { %v2495_v51 = vsel %vm262_vm1, %v2490_v0, 0 }
 0x4cc   :  { %7168 = vmatmul.mubr.msk.bf16.vlgmr.msra.gmra.mrb[56].mxu1 %vm262_vm1, %v9263_v63 }
 0x4cd   :  { %7179 = vmatprep.mubr.msk.bf16.mxu1 %vm8483_vm3, %v11506_v14 }
 0x4cf   :  { %7174 = vmatmul.mubr.msk.bf16.vlgmr.msra.gmra.mrb[72].mxu0 %vm262_vm1, %v9261_v18 }
 0x4d0   :  { %7184 = vmatpush3.bf16.xpose.msra.mxu0 %v2495_v51  ;;  %7185 = vmatprep.mubr.msk.bf16.mxu0 %vm8483_vm3, %v11506_v14 }
 0x4d1   :  { %7195 = vmatprep.subr.bf16.mxu0 %v11506_v14 }
 0x4d7   :  { %7186 = vmatmul.mubr.msk.bf16.vlgmr.msra.gmra.mrb[76].mxu0 %vm262_vm1, %v9281_v38 }
 0x4d8   :  { %7197 = vmatprep.mubr.msk.bf16.mxu0 %vm8483_vm3, %v11506_v14 }
 0x50d   :  { %v2540_v35 = vpop.permute.xlu0 %2539 }
 0x50e   :  { %v2545_v32 = vsel %vm262_vm1, %v2540_v35, 0 }
 0x511   :  { %v2590_v63 = vpop.permute.xlu1 %2589 }
 0x512   :  { %v2595_v40 = vsel %vm262_vm1, %v2590_v63, 0  ;;  %v2440_v13 = vpop.permute.xlu0 %2439  ;;  %v9420_v16 = vpop.f32.mrb[32].mxu0 }
 0x513   :  { %v2445_v18 = vsel %vm262_vm1, %v2440_v13, 0  ;;  %v7055_v3 = vpop.f32.mrb[33].mxu0  ;;  %7196 = vmatpush3.bf16.xpose.msra.mxu0 %v2595_v40 }
 0x514   :  { %v9423_v46 = vpop.f32.mrb[16].mxu1  ;;  %7178 = vmatpush3.bf16.xpose.msra.mxu1 %v2445_v18  ;;  %v9425_v7 = vpop.f32.mrb[34].mxu0  ;;  %7207 = vmatprep.subr.bf16.mxu0 %v11506_v14 }
 0x515   :  { %v7049_v38 = vpop.f32.mrb[17].mxu1  ;;  %v7056_v8 = vpop.f32.mrb[35].mxu0  ;;  %7189 = vmatprep.subr.bf16.mxu1 %v11506_v14 }
 0x516   :  { %v9429_v33 = vpop.f32.mrb[18].mxu1  ;;  %v2640_v35 = vpop.permute.xlu0 %2639 }
 0x517   :  { %v7050_v43 = vpop.f32.mrb[19].mxu1  ;;  %v2645_v18 = vsel %vm262_vm1, %v2640_v35, 0 }
 0x519   :  { %v2690_v9 = vpop.permute.xlu1 %2689 }
 0x51a   :  { %v2695_v48 = vsel %vm262_vm1, %v2690_v9, 0  ;;  %v9432_v20 = vpop.f32.mrb[36].mxu0  ;;  %7198 = vmatmul.mubr.msk.bf16.vlgmr.msra.gmra.mrb[80].mxu0 %vm262_vm1, %v9306_v26 }
 0x51b   :  { %7180 = vmatmul.mubr.msk.bf16.vlgmr.msra.gmra.mrb[60].mxu1 %vm262_vm1, %v9309_v30  ;;  %v7067_v27 = vpop.f32.mrb[37].mxu0  ;;  %7208 = vmatpush3.bf16.xpose.msra.mxu0 %v2695_v48 }
 0x51c   :  { %v9439_v1 = vpop.f32.mrb[20].mxu1  ;;  %7190 = vmatpush3.bf16.xpose.msra.mxu1 %v2545_v32  ;;  %v9441_v34 = vpop.f32.mrb[38].mxu0  ;;  %7209 = vmatprep.mubr.msk.bf16.mxu0 %vm8483_vm3, %v11506_v14 }
 0x51d   :  { %v7061_v0 = vpop.f32.mrb[21].mxu1  ;;  %v7068_v51 = vpop.f32.mrb[39].mxu0  ;;  %7191 = vmatprep.mubr.msk.bf16.mxu1 %vm8483_vm3, %v11506_v14  ;;  %7201 = vmatprep.subr.bf16.mxu1 %v11506_v14 }
 0x51e   :  { %v9448_v26 = vpop.f32.mrb[22].mxu1  ;;  %7219 = vmatprep.subr.bf16.mxu0 %v11506_v14  ;;  %v2740_v48 = vpop.permute.xlu0 %2739 }
 0x51f   :  { %v7062_v30 = vpop.f32.mrb[23].mxu1  ;;  %v2745_v51 = vsel %vm262_vm1, %v2740_v48, 0 }
 0x521   :  { %v2790_v63 = vpop.permute.xlu1 %2789 }
 0x522   :  { %v2795_v40 = vsel %vm262_vm1, %v2790_v63, 0  ;;  %v9452_v13 = vpop.f32.mrb[40].mxu0  ;;  %7210 = vmatmul.mubr.msk.bf16.vlgmr.msra.gmra.mrb[84].mxu0 %vm262_vm1, %v9328_v55 }
 0x523   :  { %7192 = vmatmul.mubr.msk.bf16.vlgmr.msra.gmra.mrb[64].mxu1 %vm262_vm1, %v9296_v31  ;;  %v7079_v3 = vpop.f32.mrb[41].mxu0  ;;  %7220 = vmatpush3.bf16.xpose.msra.mxu0 %v2795_v40 }
 0x524   :  { %v9459_v38 = vpop.f32.mrb[24].mxu1  ;;  %7202 = vmatpush3.bf16.xpose.msra.mxu1 %v2645_v18  ;;  %v9461_v8 = vpop.f32.mrb[42].mxu0  ;;  %7221 = vmatprep.mubr.msk.bf16.mxu0 %vm8483_vm3, %v11506_v14 }
 0x525   :  { %v7073_v43 = vpop.f32.mrb[25].mxu1  ;;  %v7080_v9 = vpop.f32.mrb[43].mxu0  ;;  %7203 = vmatprep.mubr.msk.bf16.mxu1 %vm8483_vm3, %v11506_v14  ;;  %7213 = vmatprep.subr.bf16.mxu1 %v11506_v14 }
 0x526   :  { %v9468_v55 = vpop.f32.mrb[26].mxu1  ;;  %7231 = vmatprep.subr.bf16.mxu0 %v11506_v14 }
 0x527   :  { %v7074_v31 = vpop.f32.mrb[27].mxu1 }
 0x529   :  { %v2890_v32 = vpop.permute.xlu1 %2889 }
 0x52a   :  { %v2895_v27 = vsel %vm262_vm1, %v2890_v32, 0  ;;  %v9472_v0 = vpop.f32.mrb[44].mxu0  ;;  %7222 = vmatmul.mubr.msk.bf16.vlgmr.msra.gmra.mrb[88].mxu0 %vm262_vm1, %v9350_v53 }
 0x52b   :  { %7204 = vmatmul.mubr.msk.bf16.vlgmr.msra.gmra.mrb[68].mxu1 %vm262_vm1, %v9318_v23  ;;  %v7091_v30 = vpop.f32.mrb[45].mxu0  ;;  %7232 = vmatpush3.bf16.xpose.msra.mxu0 %v2895_v27 }
 0x52c   :  { %v9479_v35 = vpop.f32.mrb[28].mxu1  ;;  %7214 = vmatpush3.bf16.xpose.msra.mxu1 %v2745_v51  ;;  %v9481_v63 = vpop.f32.mrb[46].mxu0  ;;  %7233 = vmatprep.mubr.msk.bf16.mxu0 %vm8483_vm3, %v11506_v14 }
 0x52d   :  { %v7085_v40 = vpop.f32.mrb[29].mxu1  ;;  %v1213_v18 = vpop.permute.xlu1 %1212  ;;  %7215 = vmatprep.mubr.msk.bf16.mxu1 %vm8483_vm3, %v11506_v14  ;;  %7243 = vmatprep.subr.bf16.mxu0 %v11506_v14 }
 0x52e   :  { %v9488_v53 = vpop.f32.mrb[30].mxu1  ;;  %v7092_v23 = vpop.f32.mrb[47].mxu0  ;;  %v1215_v3 = vmul.f32 %v1213_v18, %v9029_v58  ;;  %v1216_v43 = vmul.f32 %v1213_v18, %v9033_v61  ;;  %v1217_v9 = vmul.f32 %v9027_v50, %v1213_v18  ;;  %v1218_v31 = vmul.f32 %v9031_v59, %v1213_v18  ;;  %7225 = vmatprep.subr.bf16.mxu1 %v11506_v14 }
 0x52f   :  { %v7086_v48 = vpop.f32.mrb[31].mxu1  ;;  %v1219_v32 = vmul.f32 %v1213_v18, %v9055_v2  ;;  %v1220_v27 = vmul.f32 %v1213_v18, %v9061_v6  ;;  %v1221_v51 = vmul.f32 %v9053_v29, %v1213_v18  ;;  %v1222_v23 = vmul.f32 %v9059_v4, %v1213_v18 }
 0x530   :  { %v1306_v30 = vpack.c.bf16 %v1216_v43, %v1215_v3  ;;  %v1307_v40 = vpack.c.bf16 %v1218_v31, %v1217_v9  ;;  %v1223_v36 = vmul.f32 %v1213_v18, %v9083_v5  ;;  %v1224_v45 = vmul.f32 %v1213_v18, %v9089_v11  ;;  %v6687_v9 = vld [vmem:[#allocation10 + $0xa] ss:$0 sm:$0xff] }
 0x531   :  { %v1238_v47 = vpop.permute.xlu1 %1237  ;;  %v1308_v28 = vpack.c.bf16 %v1220_v27, %v1219_v32  ;;  %v1225_v12 = vmul.f32 %v9081_v17, %v1213_v18  ;;  %v1226_v48 = vmul.f32 %v9087_v10, %v1213_v18  ;;  %v1309_v14 = vpack.c.bf16 %v1222_v23, %v1221_v51 }
 0x532   :  { %7234 = vmatmul.mubr.msk.bf16.vlgmr.msra.gmra.mrb[92].mxu0 %vm262_vm1, %v9366_v60  ;;  %3740 = vrot.lane.b32.xlu1 %v1306_v30, %s8467_s1  ;;  %v1227_v3 = vmul.f32 %v1213_v18, %v9115_v15  ;;  %v1228_v43 = vmul.f32 %v1213_v18, %v9119_v39  ;;  %v1310_v31 = vpack.c.bf16 %v1224_v45, %v1223_v36  ;;  %v11570_v23 = vmov 0.0  }
 0x533   :  { %3788 = vrot.lane.b32.xlu0 %v1307_v40, %s8467_s1  ;;  %7216 = vmatmul.mubr.msk.bf16.vlgmr.msra.gmra.mrb[72].mxu1 %vm262_vm1, %v9340_v25  ;;  %v1311_v32 = vpack.c.bf16 %v1226_v48, %v1225_v12  ;;  %v1229_v27 = vmul.f32 %v9113_v57, %v1213_v18  ;;  %v1230_v60 = vmul.f32 %v9117_v37, %v1213_v18 }
 0x534   :  { %v1312_v52 = vpack.c.bf16 %v1228_v43, %v1227_v3  ;;  %v1240_v30 = vmul.f32 %v1238_v47, %v9029_v58  ;;  %v1241_v51 = vmul.f32 %v1238_v47, %v9033_v61  ;;  %7227 = vmatprep.mubr.msk.bf16.mxu1 %vm8483_vm3, %v11570_v23  ;;  %v1242_v40 = vmul.f32 %v9027_v50, %v1238_v47 }
 0x535   :  { %v1243_v21 = vmul.f32 %v9031_v59, %v1238_v47  ;;  %v1246_v25 = vmul.f32 %v9053_v29, %v1238_v47  ;;  %v1247_v12 = vmul.f32 %v9059_v4, %v1238_v47  ;;  %7245 = vmatprep.mubr.msk.bf16.mxu0 %vm8483_vm3, %v11570_v23  ;;  %v1313_v36 = vpack.c.bf16 %v1230_v60, %v1229_v27 }
 0x536   :  { %1262 = vrot.lane.b32.xlu1 %v6687_v9, %s8467_s1  ;;  %v1314_v45 = vpack.c.bf16 %v1241_v51, %v1240_v30  ;;  %v1244_v18 = vmul.f32 %v1238_v47, %v9055_v2  ;;  %v1245_v48 = vmul.f32 %v1238_v47, %v9061_v6  ;;  %v1250_v22 = vmul.f32 %v9081_v17, %v1238_v47 }
 0x537   :  { %3836 = vrot.lane.b32.xlu0 %v1308_v28, %s8467_s1  ;;  %v1315_v3 = vpack.c.bf16 %v1243_v21, %v1242_v40  ;;  %v1317_v43 = vpack.c.bf16 %v1247_v12, %v1246_v25  ;;  %v1251_v41 = vmul.f32 %v9087_v10, %v1238_v47  ;;  %v1248_v56 = vmul.f32 %v1238_v47, %v9083_v5 }
 0x538   :  { %v1316_v62 = vpack.c.bf16 %v1245_v48, %v1244_v18  ;;  %v1249_v54 = vmul.f32 %v1238_v47, %v9089_v11  ;;  %v1254_v9 = vmul.f32 %v9113_v57, %v1238_v47  ;;  %v1255_v60 = vmul.f32 %v9117_v37, %v1238_v47 }
 0x539   :  { %v1319_v27 = vpack.c.bf16 %v1251_v41, %v1250_v22  ;;  %v1252_v30 = vmul.f32 %v1238_v47, %v9115_v15  ;;  %v1253_v28 = vmul.f32 %v1238_v47, %v9119_v39  ;;  %v7715_v25 = vunpack.i.h.bf16 %v9354_v44 }
 0x53a   :  { %3884 = vrot.lane.b32.xlu1 %v1309_v14, %s8467_s1  ;;  %v1318_v21 = vpack.c.bf16 %v1249_v54, %v1248_v56  ;;  %v1321_v51 = vpack.c.bf16 %v1255_v60, %v1254_v9  ;;  %v7714_v41 = vunpack.i.l.bf16 %v9354_v44  ;;  %v6688_v54 = vld [vmem:[#allocation10 + $0xb] ss:$0 sm:$0xff] }
 0x53b   :  { %3932 = vrot.lane.b32.xlu0 %v1310_v31, %s8467_s1  ;;  %v1320_v40 = vpack.c.bf16 %v1253_v28, %v1252_v30 }
 0x53c   :  { %v9543_v22 = vpack.c.bf16 %v7715_v25, %v7714_v41 }
 0x53e   :  { %3980 = vrot.lane.b32.xlu1 %v1311_v32, %s8467_s1 }
 0x53f   :  { %4028 = vrot.lane.b32.xlu0 %v1312_v52, %s8467_s1 }
 0x542   :  { %4076 = vrot.lane.b32.xlu1 %v1313_v36, %s8467_s1 }
 0x543   :  { %4124 = vrot.lane.b32.xlu0 %v1314_v45, %s8467_s1 }
 0x546   :  { %4172 = vrot.lane.b32.xlu1 %v1315_v3, %s8467_s1 }
 0x547   :  { %2839 = vrot.lane.b32.xlu0 %v9543_v22, %s8484_s2 }
 0x54a   :  { %1287 = vrot.lane.b32.xlu1 %v6688_v54, %s8467_s1 }
 0x54b   :  { %4268 = vrot.lane.b32.xlu0 %v1317_v43, %s8467_s1 }
 0x54e   :  { %4220 = vrot.lane.b32.xlu1 %v1316_v62, %s8467_s1 }
 0x54f   :  { %4364 = vrot.lane.b32.xlu0 %v1319_v27, %s8467_s1 }
 0x552   :  { %4316 = vrot.lane.b32.xlu1 %v1318_v21, %s8467_s1 }
 0x553   :  { %4460 = vrot.lane.b32.xlu0 %v1321_v51, %s8467_s1 }
 0x556   :  { %4412 = vrot.lane.b32.xlu1 %v1320_v40, %s8467_s1 }
 0x56e   :  { %v9555_v56 = vpop.f32.mrb[32].mxu1 }
 0x56f   :  { %v7097_v52 = vpop.f32.mrb[33].mxu1 }
 0x570   :  { %v9557_v47 = vpop.f32.mrb[34].mxu1 }
 0x571   :  { %v7098_v14 = vpop.f32.mrb[35].mxu1 }
 0x572   :  { %v9559_v44 = vpop.f32.mrb[48].mxu0 }
 0x573   :  { %v7103_v31 = vpop.f32.mrb[49].mxu0 }
 0x574   :  { %v9561_v32 = vpop.f32.mrb[50].mxu0 }
 0x575   :  { %v7104_v62 = vpop.f32.mrb[51].mxu0 }
 0x576   :  { %v9563_v12 = vpop.f32.mrb[36].mxu1 }
 0x577   :  { %v7109_v36 = vpop.f32.mrb[37].mxu1 }
 0x578   :  { %v9565_v45 = vpop.f32.mrb[38].mxu1 }
 0x579   :  { %v7110_v18 = vpop.f32.mrb[39].mxu1 }
 0x57a   :  { %v9567_v48 = vpop.f32.mrb[52].mxu0 }
 0x57b   :  { %v7115_v3 = vpop.f32.mrb[53].mxu0 }
 0x57c   :  { %v9569_v43 = vpop.f32.mrb[54].mxu0 }
 0x57d   :  { %v7116_v9 = vpop.f32.mrb[55].mxu0 }
 0x57e   :  { %v9571_v27 = vpop.f32.mrb[40].mxu1 }
 0x57f   :  { %11571 = vst [vmem:[#allocation47_spill] sm:$0xff] %v9571_v27  ;;  %v7121_v60 = vpop.f32.mrb[41].mxu1 }
 0x580   :  { %v9573_v30 = vpop.f32.mrb[42].mxu1 }
 0x581   :  { %11572 = vst [vmem:[#allocation48_spill] sm:$0xff] %v9573_v30  ;;  %v7122_v28 = vpop.f32.mrb[43].mxu1 }
 0x582   :  { %v9575_v21 = vpop.f32.mrb[56].mxu0 }
 0x583   :  { %11573 = vst [vmem:[#allocation49_spill] sm:$0xff] %v9575_v21  ;;  %v7127_v51 = vpop.f32.mrb[57].mxu0 }
 0x584   :  { %v9577_v40 = vpop.f32.mrb[58].mxu0 }
 0x585   :  { %11574 = vst [vmem:[#allocation50_spill] sm:$0xff] %v9577_v40  ;;  %v7128_v25 = vpop.f32.mrb[59].mxu0 }
 0x587   :  { %v9579_v41 = vpop.f32.mrb[44].mxu1 }
 0x588   :  { %11575 = vst [vmem:[#allocation51_spill] sm:$0xff] %v9579_v41  ;;  %v7133_v54 = vpop.f32.mrb[45].mxu1 }
 0x589   :  { %v9581_v52 = vpop.f32.mrb[46].mxu1 }
 0x58a   :  { %11576 = vst [vmem:[#allocation52_spill] sm:$0xff] %v9581_v52  ;;  %v7134_v14 = vpop.f32.mrb[47].mxu1  ;;  %v9583_v31 = vpop.f32.mrb[60].mxu0 }
 0x58b   :  { %11577 = vst [vmem:[#allocation53_spill] sm:$0xff] %v9583_v31  ;;  %v7139_v62 = vpop.f32.mrb[61].mxu0 }
 0x58c   :  { %v9585_v36 = vpop.f32.mrb[62].mxu0 }
 0x58d   :  { %11578 = vst [vmem:[#allocation54_spill] sm:$0xff] %v9585_v36  ;;  %v7140_v18 = vpop.f32.mrb[63].mxu0 }
 0x58f   :  { %v9587_v3 = vpop.f32.mrb[48].mxu1 }
 0x590   :  { %11579 = vst [vmem:[#allocation55_spill] sm:$0xff] %v9587_v3  ;;  %v7145_v9 = vpop.f32.mrb[49].mxu1 }
 0x591   :  { %v9589_v60 = vpop.f32.mrb[50].mxu1 }
 0x592   :  { %11580 = vst [vmem:[#allocation56_spill] sm:$0xff] %v9589_v60  ;;  %v7146_v28 = vpop.f32.mrb[51].mxu1  ;;  %v9591_v51 = vpop.f32.mrb[64].mxu0 }
 0x593   :  { %11581 = vst [vmem:[#allocation57_spill] sm:$0xff] %v9591_v51  ;;  %v7151_v25 = vpop.f32.mrb[65].mxu0 }
 0x594   :  { %v9593_v42 = vpop.f32.mrb[66].mxu0 }
 0x595   :  { %11582 = vst [vmem:[#allocation58_spill] sm:$0xff] %v9593_v42  ;;  %v7152_v54 = vpop.f32.mrb[67].mxu0 }
 0x597   :  { %v9595_v49 = vpop.f32.mrb[52].mxu1 }
 0x598   :  { %11583 = vst [vmem:[#allocation59_spill] sm:$0xff] %v9595_v49  ;;  %v7157_v14 = vpop.f32.mrb[53].mxu1 }
 0x599   :  { %v9597_v24 = vpop.f32.mrb[54].mxu1 }
 0x59a   :  { %11584 = vst [vmem:[#allocation60_spill] sm:$0xff] %v9597_v24  ;;  %v7158_v62 = vpop.f32.mrb[55].mxu1  ;;  %v9599_v19 = vpop.f32.mrb[68].mxu0 }
 0x59b   :  { %11585 = vst [vmem:[#allocation61_spill] sm:$0xff] %v9599_v19  ;;  %v7163_v18 = vpop.f32.mrb[69].mxu0 }
 0x59c   :  { %v9601_v3 = vpop.f32.mrb[70].mxu0 }
 0x59d   :  { %11586 = vst [vmem:[#allocation62_spill] sm:$0xff] %v9601_v3  ;;  %v7164_v9 = vpop.f32.mrb[71].mxu0 }
 0x59f   :  { %v9603_v60 = vpop.f32.mrb[56].mxu1 }
 0x5a0   :  { %11587 = vst [vmem:[#allocation63_spill] sm:$0xff] %v9603_v60  ;;  %v7169_v28 = vpop.f32.mrb[57].mxu1 }
 0x5a1   :  { %v9605_v51 = vpop.f32.mrb[58].mxu1 }
 0x5a2   :  { %11588 = vst [vmem:[#allocation64_spill] sm:$0xff] %v9605_v51  ;;  %v7170_v25 = vpop.f32.mrb[59].mxu1  ;;  %v9607_v42 = vpop.f32.mrb[72].mxu0 }
 0x5a3   :  { %11589 = vst [vmem:[#allocation65_spill] sm:$0xff] %v9607_v42  ;;  %v7175_v54 = vpop.f32.mrb[73].mxu0 }
 0x5a4   :  { %v9609_v49 = vpop.permute.xlu1 %3740  ;;  %v9611_v14 = vpop.f32.mrb[74].mxu0 }
 0x5a5   :  { %11590 = vst [vmem:[#allocation66_spill] sm:$0xff] %v9611_v14  ;;  %v3789_v62 = vpop.permute.xlu0 %3788  ;;  %v7176_v24 = vpop.f32.mrb[75].mxu0 }
 0x5a6   :  { %7244 = vmatpush3.bf16.msra.mxu0 %v3789_v62 }
 0x5a7   :  { %7255 = vmatprep.subr.bf16.mxu0 %v11570_v23 }
 0x5a8   :  { %v1263_v18 = vpop.permute.xlu1 %1262 }
 0x5a9   :  { %v9614_v9 = vpop.permute.xlu0 %3836  ;;  %v1265_v28 = vmul.f32 %v1263_v18, %v9029_v58  ;;  %v1266_v51 = vmul.f32 %v1263_v18, %v9033_v61  ;;  %v1267_v25 = vmul.f32 %v9027_v50, %v1263_v18  ;;  %v1268_v54 = vmul.f32 %v9031_v59, %v1263_v18 }
 0x5aa   :  { %11591 = vst [vmem:[#allocation67_spill] sm:$0xff] %v9614_v9  ;;  %v9620_v60 = vpop.f32.mrb[76].mxu0  ;;  %v1269_v14 = vmul.f32 %v1263_v18, %v9055_v2  ;;  %v1270_v24 = vmul.f32 %v1263_v18, %v9061_v6  ;;  %v1271_v62 = vmul.f32 %v9053_v29, %v1263_v18  ;;  %v1272_v42 = vmul.f32 %v9059_v4, %v1263_v18 }
 0x5ab   :  { %11592 = vst [vmem:[#allocation68_spill] sm:$0xff] %v9620_v60  ;;  %v7187_v3 = vpop.f32.mrb[77].mxu0  ;;  %v1322_v9 = vpack.c.bf16 %v1266_v51, %v1265_v28  ;;  %v1323_v19 = vpack.c.bf16 %v1268_v54, %v1267_v25  ;;  %v1273_v52 = vmul.f32 %v1263_v18, %v9083_v5  ;;  %v1274_v60 = vmul.f32 %v1263_v18, %v9089_v11 }
 0x5ac   :  { %v9627_v36 = vpop.permute.xlu1 %3884  ;;  %v9629_v41 = vpop.f32.mrb[78].mxu0  ;;  %v1324_v31 = vpack.c.bf16 %v1270_v24, %v1269_v14  ;;  %v1325_v27 = vpack.c.bf16 %v1272_v42, %v1271_v62  ;;  %v1275_v30 = vmul.f32 %v9081_v17, %v1263_v18  ;;  %v1276_v3 = vmul.f32 %v9087_v10, %v1263_v18 }
 0x5ad   :  { %11593 = vst [vmem:[#allocation69_spill] sm:$0xff] %v9627_v36  ;;  %v9633_v21 = vpop.permute.xlu0 %3932  ;;  %v7188_v40 = vpop.f32.mrb[79].mxu0  ;;  %4508 = vrot.lane.b32.xlu1 %v1322_v9, %s8467_s1  ;;  %4556 = vrot.lane.b32.xlu0 %v1323_v19, %s8467_s1  ;;  %v1277_v51 = vmul.f32 %v1263_v18, %v9115_v15  ;;  %v1278_v28 = vmul.f32 %v1263_v18, %v9119_v39 }
 0x5ae   :  { %11594 = vst [vmem:[#allocation70_spill] sm:$0xff] %v9633_v21  ;;  %v1326_v25 = vpack.c.bf16 %v1274_v60, %v1273_v52  ;;  %v1279_v42 = vmul.f32 %v9113_v57, %v1263_v18  ;;  %v1280_v14 = vmul.f32 %v9117_v37, %v1263_v18  ;;  %v1327_v54 = vpack.c.bf16 %v1276_v3, %v1275_v30 }
 0x5af   :  { %v1328_v24 = vpack.c.bf16 %v1278_v28, %v1277_v51 }
 0x5b0   :  { %v9642_v62 = vpop.permute.xlu1 %3980  ;;  %v1329_v40 = vpack.c.bf16 %v1280_v14, %v1279_v42 }
 0x5b1   :  { %11595 = vst [vmem:[#allocation71_spill] sm:$0xff] %v9642_v62  ;;  %v9644_v21 = vpop.permute.xlu0 %4028  ;;  %4604 = vrot.lane.b32.xlu1 %v1324_v31, %s8467_s1  ;;  %4652 = vrot.lane.b32.xlu0 %v1325_v27, %s8467_s1  ;;  %v11626_v62 = vld [vmem:[#allocation60_spill] sm:$0xff] }
 0x5b2   :  { %11596 = vst [vmem:[#allocation72_spill] sm:$0xff] %v9644_v21 }
 0x5b4   :  { %v9648_v19 = vpop.permute.xlu1 %4076 }
 0x5b5   :  { %11597 = vst [vmem:[#allocation73_spill] sm:$0xff] %v9648_v19  ;;  %v9650_v9 = vpop.permute.xlu0 %4124  ;;  %4700 = vrot.lane.b32.xlu1 %v1326_v25, %s8467_s1  ;;  %4748 = vrot.lane.b32.xlu0 %v1327_v54, %s8467_s1 }
 0x5b6   :  { %11598 = vst [vmem:[#allocation74_spill] sm:$0xff] %v9650_v9 }
 0x5b8   :  { %v9654_v52 = vpop.permute.xlu1 %4172 }
 0x5b9   :  { %11599 = vst [vmem:[#allocation75_spill] sm:$0xff] %v9654_v52  ;;  %v2840_v30 = vpop.permute.xlu0 %2839  ;;  %4796 = vrot.lane.b32.xlu1 %v1328_v24, %s8467_s1  ;;  %4844 = vrot.lane.b32.xlu0 %v1329_v40, %s8467_s1 }
 0x5ba   :  { %v2845_v60 = vsel %vm262_vm1, %v2840_v30, 0 }
 0x5bb   :  { %7226 = vmatpush3.bf16.xpose.msra.mxu1 %v2845_v60  ;;  %v9727_v60 = vmul.f32 0.17677669, %v9432_v20 }
 0x5bc   :  { %v1288_v31 = vpop.permute.xlu1 %1287  ;;  %7237 = vmatprep.subr.bf16.mxu1 %v11570_v23 }
 0x5bd   :  { %v1290_v27 = vmul.f32 %v1288_v31, %v9029_v58  ;;  %v1291_v18 = vmul.f32 %v1288_v31, %v9033_v61  ;;  %v1292_v3 = vmul.f32 %v9027_v50, %v1288_v31  ;;  %v1293_v51 = vmul.f32 %v9031_v59, %v1288_v31 }
 0x5be   :  { %v1294_v28 = vmul.f32 %v1288_v31, %v9055_v2  ;;  %v1295_v25 = vmul.f32 %v1288_v31, %v9061_v6  ;;  %v1298_v42 = vmul.f32 %v1288_v31, %v9083_v5  ;;  %v1299_v14 = vmul.f32 %v1288_v31, %v9089_v11 }
 0x5bf   :  { %v1330_v54 = vpack.c.bf16 %v1291_v18, %v1290_v27  ;;  %v1331_v24 = vpack.c.bf16 %v1293_v51, %v1292_v3  ;;  %v1296_v40 = vmul.f32 %v9053_v29, %v1288_v31  ;;  %v1297_v58 = vmul.f32 %v9059_v4, %v1288_v31  ;;  %v11608_v4 = vld [vmem:[#allocation47_spill] sm:$0xff] }
 0x5c0   :  { %v1332_v30 = vpack.c.bf16 %v1295_v25, %v1294_v28  ;;  %v1334_v61 = vpack.c.bf16 %v1299_v14, %v1298_v42  ;;  %v9671_v50 = vmul.f32 %v9081_v17, %v1288_v31  ;;  %v9674_v59 = vmul.f32 %v9087_v10, %v1288_v31 }
 0x5c1   :  { %4892 = vrot.lane.b32.xlu1 %v1330_v54, %s8467_s1  ;;  %4940 = vrot.lane.b32.xlu0 %v1331_v24, %s8467_s1  ;;  %v1333_v2 = vpack.c.bf16 %v1297_v58, %v1296_v40  ;;  %v9679_v6 = vmul.f32 %v9113_v57, %v1288_v31  ;;  %v9682_v29 = vmul.f32 %v9117_v37, %v1288_v31  ;;  %v9706_v57 = vmul.f32 0.17677669, %v9420_v16 }
 0x5c2   :  { %7228 = vmatmul.mubr.msk.bf16.vlgmr.msra.gmra.mrb[76].mxu1 %vm262_vm1, %v9543_v22  ;;  %v9689_v17 = vmul.f32 %v1288_v31, %v9115_v15  ;;  %v9692_v5 = vmul.f32 %v1288_v31, %v9119_v39  ;;  %v9714_v37 = vmul.f32 0.17677669, %v9425_v7  ;;  %v9719_v22 = vmul.f32 0.17677669, %v9429_v33 }
 0x5c3   :  { %11600 = vst [vmem:[#allocation76_spill] sm:$0xff] %v9679_v6  ;;  %11601 = vst [vmem:[#allocation77_spill] sm:$0xff] %v9682_v29  ;;  %7238 = vmatpush3.bf16.msra.mxu1 %v9609_v49  ;;  %7239 = vmatprep.mubr.msk.bf16.mxu1 %vm8483_vm3, %v11570_v23  ;;  %v9709_v49 = vmul.f32 0.17677669, %v9423_v46  ;;  %v3009_v15 = vsel %vm3002_vm4, %v9706_v57, -inf  ;;  %v3021_v42 = vsel %vm3002_vm4, %v9727_v60, -inf }
 0x5c4   :  { %11602 = vst [vmem:[#allocation78_spill] sm:$0xff] %v9689_v17  ;;  %11603 = vst [vmem:[#allocation79_spill] sm:$0xff] %v9692_v5  ;;  %7249 = vmatprep.subr.bf16.mxu1 %v11570_v23  ;;  %v9722_v16 = vmul.f32 0.17677669, %v9441_v34  ;;  %v3012_v46 = vsel %vm3002_vm4, %v9714_v37, -inf  ;;  %v3006_v7 = vsel %vm3002_vm4, %v9719_v22, -inf }
 0x5c5   :  { %4988 = vrot.lane.b32.xlu1 %v1332_v30, %s8467_s1  ;;  %5084 = vrot.lane.b32.xlu0 %v1334_v61, %s8467_s1  ;;  %v3003_v39 = vsel %vm3002_vm4, %v9709_v49, -inf  ;;  %v9736_v18 = vmul.f32 0.17677669, %v9448_v26  ;;  %v9743_v51 = vmul.f32 0.17677669, %v9439_v1  ;;  %v11611_v5 = vld [vmem:[#allocation51_spill] sm:$0xff] }
 0x5c6   :  { %v3024_v20 = vsel %vm3002_vm4, %v9722_v16, -inf  ;;  %v9750_v26 = vmul.f32 0.17677669, %v9461_v8  ;;  %v9755_v24 = vmul.f32 0.17677669, %v9452_v13  ;;  %v11613_v29 = vld [vmem:[#allocation52_spill] sm:$0xff] }
 0x5c7   :  { %v3018_v54 = vsel %vm3002_vm4, %v9736_v18, -inf  ;;  %v3015_v1 = vsel %vm3002_vm4, %v9743_v51, -inf  ;;  %v9764_v61 = vmul.f32 0.17677669, %v9468_v55  ;;  %v9778_v55 = vmul.f32 0.17677669, %v9481_v63 }
 0x5c8   :  { %v3036_v13 = vsel %vm3002_vm4, %v9750_v26, -inf  ;;  %v9839_v11 = vmul.f32 0.17677669, %v9567_v48  ;;  %v11604_v48 = vld [vmem:[#allocation50_spill] sm:$0xff]  ;;  %v9881_v6 = vmul.f32 0.17677669, %v11611_v5 }
 0x5c9   :  { %5036 = vrot.lane.b32.xlu1 %v1333_v2, %s8467_s1  ;;  %v11615_v5 = vld [vmem:[#allocation57_spill] sm:$0xff]  ;;  %v9932_v23 = vmul.f32 0.17677669, %v11626_v62 }
 0x5ca   :  { %v9896_v9 = vmul.f32 0.17677669, %v11615_v5 }
 0x5cb   :  { %11627 = vst [vmem:[#allocation52_spill] sm:$0xff] %v9932_v23 }
 0x5cc   :  { %11616 = vst [vmem:[#allocation47_spill] sm:$0xff] %v9896_v9 }
 0x5e4   :  { %3010 = vmax.xlane.f32.xlu0 %v3009_v15  ;;  %v9771_v15 = vmul.f32 0.17677669, %v9459_v38 }
 0x5e6   :  { %v3027_v38 = vsel %vm3002_vm4, %v9771_v15, -inf }
 0x5e8   :  { %3004 = vmax.xlane.f32.xlu0 %v3003_v39 }
 0x5ec   :  { %3013 = vmax.xlane.f32.xlu0 %v3012_v46 }
 0x5ed   :  { %v9731_v31 = vpop.f32.mrb[80].mxu0  ;;  %3007 = vmax.xlane.f32.xlu1 %v3006_v7  ;;  %v3033_v7 = vsel %vm3002_vm4, %v9755_v24, -inf }
 0x5ee   :  { %v9733_v27 = vpop.f32.mrb[60].mxu1  ;;  %v7199_v33 = vpop.f32.mrb[81].mxu0 }
 0x5ef   :  { %v7181_v34 = vpop.f32.mrb[61].mxu1  ;;  %v9738_v3 = vpop.f32.mrb[82].mxu0 }
 0x5f0   :  { %v9745_v28 = vpop.f32.mrb[62].mxu1  ;;  %v7200_v25 = vpop.f32.mrb[83].mxu0  ;;  %3025 = vmax.xlane.f32.xlu0 %v3024_v20  ;;  %v3030_v34 = vsel %vm3002_vm4, %v9764_v61, -inf  ;;  %v9783_v20 = vmul.f32 0.17677669, %v9472_v0  ;;  %v3048_v0 = vsel %vm3002_vm4, %v9778_v55, -inf }
 0x5f1   :  { %v7182_v14 = vpop.f32.mrb[63].mxu1  ;;  %3022 = vmax.xlane.f32.xlu1 %v3021_v42 }
 0x5f4   :  { %3019 = vmax.xlane.f32.xlu0 %v3018_v54  ;;  %v9792_v54 = vmul.f32 0.17677669, %v9488_v53  ;;  %v9806_v53 = vmul.f32 0.17677669, %v9561_v32 }
 0x5f5   :  { %v9759_v40 = vpop.f32.mrb[84].mxu0  ;;  %3016 = vmax.xlane.f32.xlu1 %v3015_v1 }
 0x5f6   :  { %v9761_v58 = vpop.f32.mrb[64].mxu1  ;;  %v7211_v30 = vpop.f32.mrb[85].mxu0 }
 0x5f7   :  { %v7193_v8 = vpop.f32.mrb[65].mxu1  ;;  %v9766_v2 = vpop.f32.mrb[86].mxu0  ;;  %v9799_v30 = vmul.f32 0.17677669, %v9479_v35 }
 0x5f8   :  { %v9773_v39 = vpop.f32.mrb[66].mxu1  ;;  %v7212_v46 = vpop.f32.mrb[87].mxu0  ;;  %3037 = vmax.xlane.f32.xlu0 %v3036_v13 }
 0x5f9   :  { %v7194_v33 = vpop.f32.mrb[67].mxu1  ;;  %3034 = vmax.xlane.f32.xlu1 %v3033_v7  ;;  %v3045_v46 = vsel %vm3002_vm4, %v9783_v20, -inf  ;;  %v3039_v35 = vsel %vm3002_vm4, %v9799_v30, -inf }
 0x5fa   :  { %v3042_v33 = vsel %vm3002_vm4, %v9792_v54, -inf }
 0x5fc   :  { %3031 = vmax.xlane.f32.xlu0 %v3030_v34  ;;  %v9811_v34 = vmul.f32 0.17677669, %v9559_v44  ;;  %v3060_v44 = vsel %vm3002_vm4, %v9806_v53, -inf }
 0x5fd   :  { %v9787_v25 = vpop.f32.mrb[88].mxu0  ;;  %3028 = vmax.xlane.f32.xlu1 %v3027_v38 }
 0x5fe   :  { %v9789_v42 = vpop.f32.mrb[68].mxu1  ;;  %v7223_v14 = vpop.f32.mrb[89].mxu0 }
 0x5ff   :  { %v7205_v63 = vpop.f32.mrb[69].mxu1  ;;  %v9794_v1 = vpop.f32.mrb[90].mxu0 }
 0x600   :  { %v9801_v8 = vpop.f32.mrb[70].mxu1  ;;  %v7224_v13 = vpop.f32.mrb[91].mxu0  ;;  %3049 = vmax.xlane.f32.xlu0 %v3048_v0  ;;  %v9820_v0 = vmul.f32 0.17677669, %v9557_v47  ;;  %v9834_v47 = vmul.f32 0.17677669, %v9569_v43 }
 0x601   :  { %v7206_v7 = vpop.f32.mrb[71].mxu1  ;;  %3046 = vmax.xlane.f32.xlu1 %v3045_v46  ;;  %v9827_v46 = vmul.f32 0.17677669, %v9555_v56  ;;  %v9849_v43 = vmul.f32 0.17677669, %v9563_v12  ;;  %v11606_v12 = vld [vmem:[#allocation48_spill] sm:$0xff] }
 0x603   :  { %v3051_v56 = vsel %vm3002_vm4, %v9827_v46, -inf  ;;  %v3063_v10 = vsel %vm3002_vm4, %v9849_v43, -inf }
 0x604   :  { %3043 = vmax.xlane.f32.xlu0 %v3042_v33 }
 0x605   :  { %v9815_v38 = vpop.f32.mrb[92].mxu0  ;;  %3040 = vmax.xlane.f32.xlu1 %v3039_v35  ;;  %v3057_v35 = vsel %vm3002_vm4, %v9811_v34, -inf }
 0x606   :  { %v9817_v14 = vpop.f32.mrb[72].mxu1  ;;  %v7235_v63 = vpop.f32.mrb[93].mxu0 }
 0x607   :  { %v7217_v32 = vpop.f32.mrb[73].mxu1  ;;  %v9822_v13 = vpop.f32.mrb[94].mxu0 }
 0x608   :  { %v9829_v7 = vpop.f32.mrb[74].mxu1  ;;  %v7236_v33 = vpop.f32.mrb[95].mxu0  ;;  %3061 = vmax.xlane.f32.xlu0 %v3060_v44  ;;  %v3054_v32 = vsel %vm3002_vm4, %v9820_v0, -inf  ;;  %v9844_v44 = vmul.f32 0.17677669, %v9565_v45 }
 0x609   :  { %v7218_v63 = vpop.f32.mrb[75].mxu1  ;;  %3058 = vmax.xlane.f32.xlu1 %v3057_v35  ;;  %v3072_v33 = vsel %vm3002_vm4, %v9834_v47, -inf  ;;  %v3069_v35 = vsel %vm3002_vm4, %v9839_v11, -inf }
 0x60a   :  { %v9854_v63 = vmul.f32 0.17677669, %v11604_v48  ;;  %v9869_v48 = vmul.f32 0.17677669, %v11608_v4 }
 0x60c   :  { %3055 = vmax.xlane.f32.xlu0 %v3054_v32  ;;  %v3066_v32 = vsel %vm3002_vm4, %v9844_v44, -inf }
 0x60d   :  { %3052 = vmax.xlane.f32.xlu1 %v3051_v56  ;;  %v11605_v56 = vld [vmem:[#allocation49_spill] sm:$0xff] }
 0x60e   :  { %v9859_v45 = vmul.f32 0.17677669, %v11605_v56  ;;  %v11609_v56 = vld [vmem:[#allocation53_spill] sm:$0xff] }
 0x610   :  { %3073 = vmax.xlane.f32.xlu0 %v3072_v33  ;;  %v9864_v33 = vmul.f32 0.17677669, %v11606_v12  ;;  %v3081_v17 = vsel %vm3002_vm4, %v9859_v45, -inf  ;;  %v3075_v12 = vsel %vm3002_vm4, %v9869_v48, -inf }
 0x611   :  { %3070 = vmax.xlane.f32.xlu1 %v3069_v35  ;;  %v3084_v35 = vsel %vm3002_vm4, %v9854_v63, -inf }
 0x612   :  { %11607 = vst [vmem:[#allocation50_spill] sm:$0xff] %v9864_v33 }
 0x614   :  { %3067 = vmax.xlane.f32.xlu0 %v3066_v32  ;;  %v9874_v32 = vmul.f32 0.17677669, %v11609_v56  ;;  %v3087_v56 = vsel %vm3002_vm4, %v9881_v6, -inf }
 0x615   :  { %3064 = vmax.xlane.f32.xlu1 %v3063_v10  ;;  %v3078_v10 = vsel %vm3002_vm4, %v9864_v33, -inf }
 0x616   :  { %11610 = vst [vmem:[#allocation49_spill] sm:$0xff] %v9874_v32  ;;  %v3093_v4 = vsel %vm3002_vm4, %v9874_v32, -inf }
 0x618   :  { %3085 = vmax.xlane.f32.xlu0 %v3084_v35  ;;  %v11612_v35 = vld [vmem:[#allocation54_spill] sm:$0xff] }
 0x619   :  { %3082 = vmax.xlane.f32.xlu1 %v3081_v17  ;;  %v9886_v17 = vmul.f32 0.17677669, %v11612_v35  ;;  %v11617_v35 = vpack.c.bf16 %v9674_v59, %v9671_v50  ;;  %v11622_v59 = vld [vmem:[#allocation59_spill] sm:$0xff] }
 0x61c   :  { %3079 = vmax.xlane.f32.xlu0 %v3078_v10  ;;  %v9891_v10 = vmul.f32 0.17677669, %v11613_v29  ;;  %v3105_v29 = vsel %vm3002_vm4, %v9896_v9, -inf  ;;  %v11635_v9 = vld [vmem:[#allocation65_spill] sm:$0xff] }
 0x61d   :  { %3076 = vmax.xlane.f32.xlu1 %v3075_v12  ;;  %v3096_v12 = vsel %vm3002_vm4, %v9886_v17, -inf }
 0x61e   :  { %11614 = vst [vmem:[#allocation48_spill] sm:$0xff] %v9891_v10 }
 0x620   :  { %3094 = vmax.xlane.f32.xlu0 %v3093_v4  ;;  %v3090_v4 = vsel %vm3002_vm4, %v9891_v10, -inf }
 0x624   :  { %3088 = vmax.xlane.f32.xlu0 %v3087_v56  ;;  %v11618_v56 = vld [vmem:[#allocation58_spill] sm:$0xff] }
 0x625   :  { %v9905_v52 = vmul.f32 0.17677669, %v11618_v56 }
 0x627   :  { %11619 = vst [vmem:[#allocation53_spill] sm:$0xff] %v9905_v52  ;;  %v3108_v5 = vsel %vm3002_vm4, %v9905_v52, -inf }
 0x628   :  { %3097 = vmax.xlane.f32.xlu0 %v3096_v12  ;;  %v11620_v12 = vld [vmem:[#allocation56_spill] sm:$0xff] }
 0x629   :  { %v9910_v21 = vmul.f32 0.17677669, %v11620_v12 }
 0x62b   :  { %v3102_v50 = vsel %vm3002_vm4, %v9910_v21, -inf }
 0x62c   :  { %3091 = vmax.xlane.f32.xlu0 %v3090_v4  ;;  %v11621_v4 = vld [vmem:[#allocation61_spill] sm:$0xff] }
 0x62d   :  { %v9915_v19 = vmul.f32 0.17677669, %v11621_v4  ;;  %v9929_v4 = vpop.permute.xlu0 %4268 }
 0x62e   :  { %5132 = vrot.lane.b32.xlu1 %v11617_v35, %s8467_s1  ;;  %v9920_v35 = vmul.f32 0.17677669, %v11622_v59  ;;  %11625 = vst [vmem:[#allocation54_spill] sm:$0xff] %v9929_v4  ;;  %v9936_v59 = vpop.permute.xlu1 %4220 }
 0x62f   :  { %v3117_v56 = vsel %vm3002_vm4, %v9915_v19, -inf  ;;  %11628 = vst [vmem:[#allocation57_spill] sm:$0xff] %v9936_v59 }
 0x630   :  { %3106 = vmax.xlane.f32.xlu0 %v3105_v29  ;;  %v11623_v29 = vld [vmem:[#allocation62_spill] sm:$0xff] }
 0x631   :  { %v9925_v12 = vmul.f32 0.17677669, %v11623_v29  ;;  %v9938_v36 = vpop.permute.xlu0 %4364 }
 0x632   :  { %11629 = vst [vmem:[#allocation58_spill] sm:$0xff] %v9938_v36  ;;  %v9942_v29 = vpop.permute.xlu1 %4316 }
 0x633   :  { %11624 = vst [vmem:[#allocation51_spill] sm:$0xff] %v9925_v12  ;;  %11630 = vst [vmem:[#allocation56_spill] sm:$0xff] %v9942_v29 }
 0x634   :  { %3109 = vmax.xlane.f32.xlu0 %v3108_v5  ;;  %v3111_v5 = vsel %vm3002_vm4, %v9920_v35, -inf }
 0x635   :  { %v9947_v4 = vpop.permute.xlu0 %4460 }
 0x636   :  { %11633 = vst [vmem:[#allocation59_spill] sm:$0xff] %v9947_v4  ;;  %v9949_v62 = vpop.permute.xlu1 %4412 }
 0x637   :  { %11634 = vst [vmem:[#allocation62_spill] sm:$0xff] %v9949_v62 }
 0x638   :  { %3103 = vmax.xlane.f32.xlu0 %v3102_v50  ;;  %v3120_v50 = vsel %vm3002_vm4, %v9925_v12, -inf  ;;  %v9952_v12 = vmul.f32 0.17677669, %v11635_v9 }
 0x639   :  { %v9954_v59 = vpop.permute.xlu0 %4556 }
 0x63a   :  { %11636 = vst [vmem:[#allocation60_spill] sm:$0xff] %v9954_v59  ;;  %v9958_v36 = vpop.permute.xlu1 %4508 }
 0x63c   :  { %3118 = vmax.xlane.f32.xlu0 %v3117_v56  ;;  %v3114_v56 = vsel %vm3002_vm4, %v9932_v23, -inf }
 0x63e   :  { %v9964_v4 = vpop.permute.xlu1 %4604 }
 0x63f   :  { %11639 = vst [vmem:[#allocation80_spill] sm:$0xff] %v9964_v4 }
 0x640   :  { %3112 = vmax.xlane.f32.xlu0 %v3111_v5  ;;  %v11631_v5 = vld [vmem:[#allocation55_spill] sm:$0xff] }
 0x641   :  { %v9945_v52 = vmul.f32 0.17677669, %v11631_v5  ;;  %11637 = vst [vmem:[#allocation55_spill] sm:$0xff] %v9958_v36  ;;  %v9962_v5 = vpop.permute.xlu0 %4652 }
 0x642   :  { %11638 = vst [vmem:[#allocation65_spill] sm:$0xff] %v9962_v5  ;;  %v9968_v9 = vpop.permute.xlu1 %4700 }
 0x643   :  { %11632 = vst [vmem:[#allocation61_spill] sm:$0xff] %v9945_v52  ;;  %11641 = vst [vmem:[#allocation82_spill] sm:$0xff] %v9968_v9 }
 0x644   :  { %3121 = vmax.xlane.f32.xlu0 %v3120_v50  ;;  %v3099_v50 = vsel %vm3002_vm4, %v9945_v52, -inf }
 0x645   :  { %v9966_v62 = vpop.permute.xlu0 %4748 }
 0x646   :  { %11640 = vst [vmem:[#allocation81_spill] sm:$0xff] %v9966_v62  ;;  %v9972_v59 = vpop.permute.xlu1 %4796 }
 0x647   :  { %11643 = vst [vmem:[#allocation84_spill] sm:$0xff] %v9972_v59 }
 0x648   :  { %3115 = vmax.xlane.f32.xlu0 %v3114_v56  ;;  %v3129_v56 = vsel %vm3002_vm4, %v9952_v12, -inf }
 0x649   :  { %v9970_v29 = vpop.permute.xlu0 %4844 }
 0x64a   :  { %11642 = vst [vmem:[#allocation83_spill] sm:$0xff] %v9970_v29 }
 0x64d   :  { %v9974_v23 = vpop.permute.xlu0 %4940 }
 0x64e   :  { %11644 = vst [vmem:[#allocation85_spill] sm:$0xff] %v9974_v23 }
 0x651   :  { %v9978_v36 = vpop.permute.xlu0 %5084 }
 0x652   :  { %3100 = vmax.xlane.f32.xlu1 %v3099_v50  ;;  %v9976_v50 = vpop.permute.xlu1 %4892  ;;  %11646 = vst [vmem:[#allocation87_spill] sm:$0xff] %v9978_v36 }
 0x653   :  { %11645 = vst [vmem:[#allocation86_spill] sm:$0xff] %v9976_v50 }
 0x656   :  { %3130 = vmax.xlane.f32.xlu1 %v3129_v56  ;;  %v9980_v52 = vpop.permute.xlu1 %4988 }
 0x657   :  { %11647 = vst [vmem:[#allocation88_spill] sm:$0xff] %v9980_v52 }
 0x65a   :  { %v9983_v62 = vpop.permute.xlu1 %5036 }
 0x65b   :  { %11648 = vst [vmem:[#allocation89_spill] sm:$0xff] %v9983_v62 }
 0x671   :  { %v3011_v56 = vpop.xlane.xlu0 %3010 }
 0x672   :  { %v3197_v5 = vsub.f32 %v9706_v57, %v3011_v56 }
 0x674   :  { %v3263_v4 = vmul.f32 1.442695, %v3197_v5 }
 0x675   :  { %v3005_v10 = vpop.xlane.xlu0 %3004 }
 0x676   :  { %7811 = vpow2.f32 %v3263_v4  ;;  %v3195_v29 = vsub.f32 %v9709_v49, %v3005_v10 }
 0x678   :  { %v3259_v9 = vmul.f32 1.442695, %v3195_v29 }
 0x679   :  { %v3014_v59 = vpop.xlane.xlu0 %3013 }
 0x67a   :  { %7813 = vpow2.f32 %v3259_v9  ;;  %v3198_v23 = vsub.f32 %v9714_v37, %v3014_v59  ;;  %v3008_v50 = vpop.xlane.xlu1 %3007 }
 0x67b   :  { %v3196_v36 = vsub.f32 %v9719_v22, %v3008_v50 }
 0x67c   :  { %v3265_v32 = vmul.f32 1.442695, %v3198_v23 }
 0x67d   :  { %v3261_v52 = vmul.f32 1.442695, %v3196_v36  ;;  %v3026_v33 = vpop.xlane.xlu0 %3025 }
 0x67e   :  { %7815 = vpow2.f32 %v3265_v32  ;;  %v3023_v57 = vpop.xlane.xlu1 %3022 }
 0x67f   :  { %v3201_v5 = vsub.f32 %v9727_v60, %v3023_v57  ;;  %7817 = vpow2.f32 %v3261_v52 }
 0x680   :  { %v9989_v56 = vpop.eup %7811 }
 0x681   :  { %v3271_v4 = vmul.f32 1.442695, %v3201_v5  ;;  %v3020_v49 = vpop.xlane.xlu0 %3019  ;;  %v3393_v10 = vsel %vm3002_vm4, %v9989_v56, 0.0 }
 0x682   :  { %v3017_v29 = vpop.xlane.xlu1 %3016  ;;  %3394 = vadd.xlane.f32.xlu0 %v3393_v10  ;;  %v3202_v10 = vsub.f32 %v9722_v16, %v3026_v33 }
 0x683   :  { %7819 = vpow2.f32 %v3271_v4  ;;  %v3199_v32 = vsub.f32 %v9743_v51, %v3017_v29 }
 0x684   :  { %v9993_v37 = vpop.eup %7813  ;;  %v3273_v33 = vmul.f32 1.442695, %v3202_v10  ;;  %v11656_v10 = vld [vmem:[#allocation64_spill] sm:$0xff] }
 0x685   :  { %11649 = vst [vmem:[#allocation90_spill] sm:$0xff] %v9993_v37  ;;  %v9995_v23 = vpop.xlane.xlu0 %3037  ;;  %v3387_v36 = vsel %vm3002_vm4, %v9993_v37, 0.0  ;;  %v11653_v37 = vld [vmem:[#allocation68_spill] sm:$0xff] }
 0x686   :  { %v3035_v22 = vpop.xlane.xlu1 %3034  ;;  %3388 = vadd.xlane.f32.xlu0 %v3387_v36 }
 0x687   :  { %v3205_v60 = vsub.f32 %v9755_v24, %v3035_v22  ;;  %v3267_v24 = vmul.f32 1.442695, %v3199_v32  ;;  %v11652_v22 = vld [vmem:[#allocation63_spill] sm:$0xff]  ;;  %v3200_v32 = vsub.f32 %v9736_v18, %v3020_v49 }
 0x688   :  { %v10000_v52 = vpop.eup %7815  ;;  %v10014_v51 = vmul.f32 0.17677669, %v11652_v22 }
 0x689   :  { %11650 = vst [vmem:[#allocation91_spill] sm:$0xff] %v10000_v52  ;;  %v3279_v59 = vmul.f32 1.442695, %v3205_v60  ;;  %v10003_v9 = vpop.xlane.xlu0 %3031  ;;  %v3396_v50 = vsel %vm3002_vm4, %v10000_v52, 0.0  ;;  %v10007_v57 = vpop.eup %7817  ;;  %v10021_v52 = vmul.f32 0.17677669, %v11653_v37 }
 0x68a   :  { %v3029_v5 = vpop.xlane.xlu1 %3028  ;;  %3397 = vadd.xlane.f32.xlu0 %v3396_v50  ;;  %v3390_v62 = vsel %vm3002_vm4, %v10007_v57, 0.0  ;;  %v11654_v50 = vld [vmem:[#allocation66_spill] sm:$0xff]  ;;  %v3269_v18 = vmul.f32 1.442695, %v3200_v32 }
 0x68b   :  { %7821 = vpow2.f32 %v3279_v59  ;;  %v3203_v4 = vsub.f32 %v9771_v15, %v3029_v5  ;;  %v10028_v5 = vmul.f32 0.17677669, %v11654_v50 }
 0x68d   :  { %v10011_v36 = vpop.eup %7819  ;;  %v3275_v29 = vmul.f32 1.442695, %v3203_v4  ;;  %v10016_v60 = vpop.xlane.xlu0 %3049  ;;  %v3132_v50 = vsel %vm3002_vm4, %v10028_v5, -inf }
 0x68e   :  { %11651 = vst [vmem:[#allocation92_spill] sm:$0xff] %v10011_v36  ;;  %v3047_v59 = vpop.xlane.xlu1 %3046  ;;  %3391 = vadd.xlane.f32.xlu0 %v3390_v62  ;;  %v3405_v16 = vsel %vm3002_vm4, %v10011_v36, 0.0  ;;  %v3123_v62 = vsel %vm3002_vm4, %v10014_v51, -inf }
 0x68f   :  { %7823 = vpow2.f32 %v3275_v29  ;;  %v3209_v15 = vsub.f32 %v9783_v20, %v3047_v59  ;;  %3406 = vadd.xlane.f32.xlu1 %v3405_v16  ;;  %v3141_v29 = vsel %vm3002_vm4, %v10021_v52, -inf }
 0x690   :  { %7825 = vpow2.f32 %v3267_v24  ;;  %v10040_v24 = vmul.f32 0.17677669, %v11656_v10 }
 0x691   :  { %v3287_v4 = vmul.f32 1.442695, %v3209_v15  ;;  %v10030_v22 = vpop.xlane.xlu0 %3043 }
 0x692   :  { %v3041_v37 = vpop.xlane.xlu1 %3040  ;;  %3124 = vmax.xlane.f32.xlu0 %v3123_v62  ;;  %11657 = vst [vmem:[#allocation68_spill] sm:$0xff] %v10040_v24 }
 0x693   :  { %7827 = vpow2.f32 %v3287_v4  ;;  %v3207_v20 = vsub.f32 %v9799_v30, %v3041_v37  ;;  %3142 = vmax.xlane.f32.xlu1 %v3141_v29 }
 0x694   :  { %7829 = vpow2.f32 %v3273_v33 }
 0x695   :  { %v10037_v49 = vpop.eup %7821  ;;  %v3283_v59 = vmul.f32 1.442695, %v3207_v20  ;;  %v10042_v16 = vpop.f32.mrb[76].mxu1  ;;  %v3126_v20 = vsel %vm3002_vm4, %v10040_v24, -inf  ;;  %v10083_v24 = vmul.f32 0.17677669, %v9759_v40 }
 0x696   :  { %11655 = vst [vmem:[#allocation63_spill] sm:$0xff] %v10037_v49  ;;  %v3062_v15 = vpop.xlane.xlu0 %3061  ;;  %v7229_v62 = vpop.f32.mrb[77].mxu1  ;;  %3133 = vmax.xlane.f32.xlu0 %v3132_v50  ;;  %v3417_v30 = vsel %vm3002_vm4, %v10037_v49, 0.0 }
 0x697   :  { %7831 = vpow2.f32 %v3283_v59  ;;  %v10048_v33 = vpop.f32.mrb[78].mxu1  ;;  %3418 = vadd.xlane.f32.xlu1 %v3417_v30  ;;  %v10050_v32 = vpop.xlane.xlu1 %3058 }
 0x698   :  { %7833 = vpow2.f32 %v3269_v18  ;;  %v7230_v4 = vpop.f32.mrb[79].mxu1 }
 0x699   :  { %v10052_v37 = vpop.eup %7823 }
 0x69a   :  { %11658 = vst [vmem:[#allocation66_spill] sm:$0xff] %v10052_v37  ;;  %v3056_v29 = vpop.xlane.xlu0 %3055  ;;  %v10056_v10 = vpop.eup %7825  ;;  %3127 = vmax.xlane.f32.xlu0 %v3126_v20  ;;  %v3411_v50 = vsel %vm3002_vm4, %v10052_v37, 0.0  ;;  %v3206_v20 = vsub.f32 %v9750_v26, %v9995_v23  ;;  %v3204_v26 = vsub.f32 %v9764_v61, %v10003_v9  ;;  %v10104_v9 = vmul.f32 0.17677669, %v9629_v41 }
 0x69b   :  { %11659 = vst [vmem:[#allocation64_spill] sm:$0xff] %v10056_v10  ;;  %3412 = vadd.xlane.f32.xlu1 %v3411_v50  ;;  %v3399_v18 = vsel %vm3002_vm4, %v10056_v10, 0.0  ;;  %v10068_v4 = vpop.xlane.xlu1 %3052  ;;  %v10117_v41 = vmul.f32 0.17677669, %v9745_v28 }
 0x69c   :  { %v3277_v61 = vmul.f32 1.442695, %v3204_v26  ;;  %v3144_v26 = vsel %vm3002_vm4, %v10104_v9, -inf }
 0x69d   :  { %v10060_v59 = vpop.eup %7827 }
 0x69e   :  { %11660 = vst [vmem:[#allocation93_spill] sm:$0xff] %v10060_v59  ;;  %v10062_v62 = vpop.xlane.xlu0 %3073  ;;  %v10066_v30 = vpop.eup %7829  ;;  %3400 = vadd.xlane.f32.xlu0 %v3399_v18  ;;  %v3429_v49 = vsel %vm3002_vm4, %v10060_v59, 0.0  ;;  %v10092_v59 = vmul.f32 0.17677669, %v9733_v27  ;;  %v3214_v27 = vsub.f32 %v9806_v53, %v3062_v15  ;;  %v3212_v53 = vsub.f32 %v9820_v0, %v3056_v29 }
 0x69f   :  { %11661 = vst [vmem:[#allocation94_spill] sm:$0xff] %v10066_v30  ;;  %3430 = vadd.xlane.f32.xlu1 %v3429_v49  ;;  %v3408_v36 = vsel %vm3002_vm4, %v10066_v30, 0.0  ;;  %v3281_v49 = vmul.f32 1.442695, %v3206_v20  ;;  %v10089_v23 = vpop.xlane.xlu1 %3070  ;;  %v3165_v20 = vsel %vm3002_vm4, %v10083_v24, -inf  ;;  %v3138_v29 = vsel %vm3002_vm4, %v10117_v41, -inf }
 0x6a0   :  { %v3293_v28 = vmul.f32 1.442695, %v3212_v53 }
 0x6a1   :  { %v10074_v50 = vpop.eup %7831  ;;  %7835 = vpow2.f32 %v3281_v49  ;;  %v3297_v49 = vmul.f32 1.442695, %v3214_v27 }
 0x6a2   :  { %11662 = vst [vmem:[#allocation95_spill] sm:$0xff] %v10074_v50  ;;  %v10076_v37 = vpop.xlane.xlu0 %3067  ;;  %v10080_v10 = vpop.eup %7833  ;;  %3409 = vadd.xlane.f32.xlu0 %v3408_v36  ;;  %v3423_v18 = vsel %vm3002_vm4, %v10074_v50, 0.0  ;;  %v10099_v36 = vmul.f32 0.17677669, %v9789_v42  ;;  %v3135_v50 = vsel %vm3002_vm4, %v10092_v59, -inf  ;;  %7837 = vpow2.f32 %v3277_v61 }
 0x6a3   :  { %3424 = vadd.xlane.f32.xlu1 %v3423_v18  ;;  %v3402_v40 = vsel %vm3002_vm4, %v10080_v10, 0.0  ;;  %v10112_v42 = vmul.f32 0.17677669, %v9787_v25  ;;  %v10125_v25 = vmul.f32 0.17677669, %v9817_v14  ;;  %7839 = vpow2.f32 %v3297_v49 }
 0x6a4   :  { %v10137_v14 = vmul.f32 0.17677669, %v10042_v16  ;;  %7841 = vpow2.f32 %v3293_v28  ;;  %v3218_v49 = vsub.f32 %v9834_v47, %v10062_v62  ;;  %v10153_v28 = vmul.f32 0.17677669, %v9731_v31 }
 0x6a5   :  { %11663 = vst [vmem:[#allocation96_spill] sm:$0xff] %v10112_v42  ;;  %v3210_v47 = vsub.f32 %v9778_v55, %v10016_v60  ;;  %v3208_v55 = vsub.f32 %v9792_v54, %v10030_v22  ;;  %v10182_v54 = vmul.f32 0.17677669, %v9738_v3 }
 0x6a6   :  { %v10094_v30 = vpop.xlane.xlu0 %3085  ;;  %3403 = vadd.xlane.f32.xlu0 %v3402_v40  ;;  %v3065_v40 = vpop.xlane.xlu1 %3064  ;;  %v3305_v62 = vmul.f32 1.442695, %v3218_v49  ;;  %v3153_v60 = vsel %vm3002_vm4, %v10153_v28, -inf }
 0x6a7   :  { %3166 = vmax.xlane.f32.xlu1 %v3165_v20  ;;  %v3159_v20 = vsel %vm3002_vm4, %v10099_v36, -inf  ;;  %v3215_v27 = vsub.f32 %v9849_v43, %v3065_v40  ;;  %v3289_v31 = vmul.f32 1.442695, %v3210_v47  ;;  %v3222_v49 = vsub.f32 %v9854_v63, %v10094_v30 }
 0x6a8   :  { %v3156_v3 = vsel %vm3002_vm4, %v10182_v54, -inf }
 0x6a9   :  { %v3299_v53 = vmul.f32 1.442695, %v3215_v27  ;;  %v3313_v22 = vmul.f32 1.442695, %v3222_v49 }
 0x6aa   :  { %v10107_v18 = vpop.xlane.xlu0 %3079  ;;  %3136 = vmax.xlane.f32.xlu0 %v3135_v50  ;;  %v3177_v50 = vsel %vm3002_vm4, %v10112_v42, -inf  ;;  %v10129_v61 = vpop.xlane.xlu1 %3082  ;;  %v10148_v42 = vmul.f32 0.17677669, %v9822_v13 }
 0x6ab   :  { %3160 = vmax.xlane.f32.xlu1 %v3159_v20  ;;  %v10134_v20 = vpop.eup %7835  ;;  %7843 = vpow2.f32 %v3299_v53 }
 0x6ac   :  { %v3420_v40 = vsel %vm3002_vm4, %v10134_v20, 0.0  ;;  %7845 = vpow2.f32 %v3305_v62 }
 0x6ad   :  { %7847 = vpow2.f32 %v3289_v31  ;;  %v10196_v31 = vmul.f32 0.17677669, %v9773_v39 }
 0x6ae   :  { %v10120_v15 = vpop.xlane.xlu0 %3094  ;;  %3145 = vmax.xlane.f32.xlu0 %v3144_v26  ;;  %v3171_v26 = vsel %vm3002_vm4, %v10125_v25, -inf  ;;  %v3077_v16 = vpop.xlane.xlu1 %3076 }
 0x6af   :  { %3178 = vmax.xlane.f32.xlu1 %v3177_v50  ;;  %v10145_v50 = vpop.eup %7837  ;;  %v3219_v27 = vsub.f32 %v9869_v48, %v3077_v16  ;;  %v10171_v48 = vmul.f32 0.17677669, %v9761_v58  ;;  %v3285_v58 = vmul.f32 1.442695, %v3208_v55  ;;  %v3150_v39 = vsel %vm3002_vm4, %v10196_v31, -inf }
 0x6b0   :  { %v3414_v13 = vsel %vm3002_vm4, %v10145_v50, 0.0 }
 0x6b1   :  { %v3307_v53 = vmul.f32 1.442695, %v3219_v27  ;;  %v3147_v30 = vsel %vm3002_vm4, %v10171_v48, -inf }
 0x6b2   :  { %v3089_v0 = vpop.xlane.xlu0 %3088  ;;  %3139 = vmax.xlane.f32.xlu0 %v3138_v29  ;;  %v3183_v29 = vsel %vm3002_vm4, %v10137_v14, -inf }
 0x6b3   :  { %3172 = vmax.xlane.f32.xlu1 %v3171_v26  ;;  %7849 = vpow2.f32 %v3307_v53  ;;  %v3223_v62 = vsub.f32 %v9881_v6, %v3089_v0 }
 0x6b4   :  { %7851 = vpow2.f32 %v3285_v58 }
 0x6b5   :  { %7853 = vpow2.f32 %v3313_v22  ;;  %v3315_v6 = vmul.f32 1.442695, %v3223_v62 }
 0x6b6   :  { %v3098_v43 = vpop.xlane.xlu0 %3097  ;;  %3421 = vadd.xlane.f32.xlu0 %v3420_v40  ;;  %v3192_v40 = vsel %vm3002_vm4, %v10148_v42, -inf }
 0x6b7   :  { %3184 = vmax.xlane.f32.xlu1 %v3183_v29  ;;  %v10164_v29 = vpop.eup %7839  ;;  %v3226_v0 = vsub.f32 %v9886_v17, %v3098_v43  ;;  %7855 = vpow2.f32 %v3315_v6 }
 0x6b8   :  { %v3444_v47 = vsel %vm3002_vm4, %v10164_v29, 0.0 }
 0x6b9   :  { %v3321_v53 = vmul.f32 1.442695, %v3226_v0 }
 0x6ba   :  { %v10158_v26 = vpop.xlane.xlu0 %3091  ;;  %3415 = vadd.xlane.f32.xlu0 %v3414_v13  ;;  %v10179_v13 = vpop.eup %7841 }
 0x6bb   :  { %3193 = vmax.xlane.f32.xlu1 %v3192_v40  ;;  %v3438_v27 = vsel %vm3002_vm4, %v10179_v13, 0.0  ;;  %v10191_v40 = vpop.eup %7843  ;;  %7857 = vpow2.f32 %v3321_v53 }
 0x6bc   :  { %v10201_v49 = vpop.eup %7845 }
 0x6bd   :  { %v10206_v22 = vpop.eup %7847  ;;  %v3456_v17 = vsel %vm3002_vm4, %v10201_v49, 0.0 }
 0x6be   :  { %v10175_v16 = vpop.xlane.xlu0 %3106  ;;  %3154 = vmax.xlane.f32.xlu0 %v3153_v60  ;;  %v3447_v60 = vsel %vm3002_vm4, %v10191_v40, 0.0  ;;  %v10210_v43 = vpop.eup %7849 }
 0x6bf   :  { %3445 = vadd.xlane.f32.xlu1 %v3444_v47  ;;  %v3459_v6 = vsel %vm3002_vm4, %v10210_v43, 0.0 }
 0x6c2   :  { %v10185_v63 = vpop.xlane.xlu0 %3109  ;;  %3148 = vmax.xlane.f32.xlu0 %v3147_v30 }
 0x6c3   :  { %3439 = vadd.xlane.f32.xlu1 %v3438_v27  ;;  %v10215_v27 = vpop.eup %7851 }
 0x6c4   :  { %v10219_v0 = vpop.eup %7853  ;;  %v3426_v53 = vsel %vm3002_vm4, %v10215_v27, 0.0 }
 0x6c6   :  { %v3104_v55 = vpop.xlane.xlu0 %3103  ;;  %3157 = vmax.xlane.f32.xlu0 %v3156_v3 }
 0x6c7   :  { %3448 = vadd.xlane.f32.xlu1 %v3447_v60  ;;  %v3228_v47 = vsub.f32 %v9910_v21, %v3104_v55  ;;  %v3432_v21 = vsel %vm3002_vm4, %v10206_v22, 0.0  ;;  %v10222_v55 = vmul.f32 0.17677669, %v9766_v2 }
 0x6c9   :  { %v3325_v62 = vmul.f32 1.442695, %v3228_v47  ;;  %v3468_v47 = vsel %vm3002_vm4, %v10219_v0, 0.0 }
 0x6ca   :  { %v3119_v58 = vpop.xlane.xlu0 %3118  ;;  %3151 = vmax.xlane.f32.xlu0 %v3150_v39  ;;  %v10232_v39 = vmul.f32 0.17677669, %v9801_v8 }
 0x6cb   :  { %3457 = vadd.xlane.f32.xlu1 %v3456_v17  ;;  %v3233_v30 = vsub.f32 %v9915_v19, %v3119_v58  ;;  %7859 = vpow2.f32 %v3325_v62  ;;  %v10229_v58 = vpop.eup %7855  ;;  %v3168_v17 = vsel %vm3002_vm4, %v10222_v55, -inf }
 0x6cc   :  { %v10238_v62 = vpop.eup %7857  ;;  %v3162_v8 = vsel %vm3002_vm4, %v10232_v39, -inf }
 0x6cd   :  { %v3335_v60 = vmul.f32 1.442695, %v3233_v30  ;;  %v3213_v30 = vsub.f32 %v9811_v34, %v10050_v32  ;;  %v3211_v34 = vsub.f32 %v9827_v46, %v10068_v4 }
 0x6ce   :  { %v3113_v3 = vpop.xlane.xlu0 %3112  ;;  %3433 = vadd.xlane.f32.xlu0 %v3432_v21  ;;  %v10243_v21 = vmul.f32 0.17677669, %v9794_v1  ;;  %v10256_v1 = vmul.f32 0.17677669, %v9829_v7  ;;  %v10269_v7 = vmul.f32 0.17677669, %v9815_v38 }
 0x6cf   :  { %3460 = vadd.xlane.f32.xlu1 %v3459_v6  ;;  %v3231_v19 = vsub.f32 %v9920_v35, %v3113_v3  ;;  %7861 = vpow2.f32 %v3335_v60  ;;  %v3471_v35 = vsel %vm3002_vm4, %v10229_v58, 0.0  ;;  %v3480_v3 = vsel %vm3002_vm4, %v10238_v62, 0.0  ;;  %v10251_v60 = vpop.permute.xlu1 %5132 }
 0x6d0   :  { %11664 = vst [vmem:[#allocation97_spill] sm:$0xff] %v10251_v60  ;;  %v3180_v32 = vsel %vm3002_vm4, %v10243_v21, -inf  ;;  %v3291_v46 = vmul.f32 1.442695, %v3211_v34  ;;  %v3174_v4 = vsel %vm3002_vm4, %v10256_v1, -inf }
 0x6d1   :  { %v3331_v2 = vmul.f32 1.442695, %v3231_v19  ;;  %v3295_v19 = vmul.f32 1.442695, %v3213_v30  ;;  %v10281_v38 = vmul.f32 0.17677669, %v10048_v33 }
 0x6d2   :  { %3427 = vadd.xlane.f32.xlu0 %v3426_v53 }
 0x6d3   :  { %3469 = vadd.xlane.f32.xlu1 %v3468_v47  ;;  %7863 = vpow2.f32 %v3331_v2  ;;  %v3217_v2 = vsub.f32 %v9839_v11, %v10089_v23  ;;  %v3216_v11 = vsub.f32 %v9844_v44, %v10076_v37  ;;  %v3186_v44 = vsel %vm3002_vm4, %v10281_v38, -inf  ;;  %v11667_v37 = vld [vmem:[#allocation50_spill] sm:$0xff] }
 0x6d4   :  { %7865 = vpow2.f32 %v3295_v19  ;;  %v3189_v19 = vsel %vm3002_vm4, %v10269_v7, -inf }
 0x6d5   :  { %v10249_v6 = vpop.eup %7859  ;;  %7867 = vpow2.f32 %v3291_v46  ;;  %v3220_v46 = vsub.f32 %v11667_v37, %v10107_v18 }
 0x6d6   :  { %3169 = vmax.xlane.f32.xlu0 %v3168_v17  ;;  %v3486_v53 = vsel %vm3002_vm4, %v10249_v6, 0.0 }
 0x6d7   :  { %3472 = vadd.xlane.f32.xlu1 %v3471_v35 }
 0x6d9   :  { %v10262_v47 = vpop.eup %7861 }
 0x6da   :  { %3163 = vmax.xlane.f32.xlu0 %v3162_v8  ;;  %11665 = vst [vmem:[#allocation98_spill] sm:$0xff] %v10262_v47  ;;  %v3501_v35 = vsel %vm3002_vm4, %v10262_v47, 0.0  ;;  %v3303_v8 = vmul.f32 1.442695, %v3217_v2  ;;  %v3221_v2 = vsub.f32 %v9859_v45, %v10129_v61  ;;  %v3309_v45 = vmul.f32 1.442695, %v3220_v46 }
 0x6db   :  { %3481 = vadd.xlane.f32.xlu1 %v3480_v3  ;;  %v11668_v61 = vld [vmem:[#allocation49_spill] sm:$0xff] }
 0x6dc   :  { %7869 = vpow2.f32 %v3303_v8  ;;  %v3311_v33 = vmul.f32 1.442695, %v3221_v2  ;;  %v3225_v8 = vsub.f32 %v11668_v61, %v10120_v15 }
 0x6dd   :  { %v10275_v30 = vpop.eup %7863 }
 0x6de   :  { %3181 = vmax.xlane.f32.xlu0 %v3180_v32  ;;  %11666 = vst [vmem:[#allocation99_spill] sm:$0xff] %v10275_v30  ;;  %v3495_v32 = vsel %vm3002_vm4, %v10275_v30, 0.0 }
 0x6df   :  { %v10266_v17 = vpop.xlane.xlu1 %3100  ;;  %3487 = vadd.xlane.f32.xlu1 %v3486_v53  ;;  %v3301_v53 = vmul.f32 1.442695, %v3216_v11 }
 0x6e2   :  { %3175 = vmax.xlane.f32.xlu0 %v3174_v4 }
 0x6e3   :  { %v3131_v3 = vpop.xlane.xlu1 %3130  ;;  %3502 = vadd.xlane.f32.xlu1 %v3501_v35 }
 0x6e4   :  { %v3237_v23 = vsub.f32 %v9952_v12, %v3131_v3  ;;  %v10291_v12 = vpop.eup %7865 }
 0x6e5   :  { %v3441_v4 = vsel %vm3002_vm4, %v10291_v12, 0.0  ;;  %v10297_v35 = vpop.eup %7867 }
 0x6e6   :  { %v3343_v34 = vmul.f32 1.442695, %v3237_v23  ;;  %3190 = vmax.xlane.f32.xlu0 %v3189_v19  ;;  %v10301_v3 = vpop.eup %7869  ;;  %v3435_v11 = vsel %vm3002_vm4, %v10297_v35, 0.0  ;;  %v3319_v19 = vmul.f32 1.442695, %v3225_v8 }
 0x6e7   :  { %3496 = vadd.xlane.f32.xlu1 %v3495_v32  ;;  %v3453_v15 = vsel %vm3002_vm4, %v10301_v3, 0.0 }
 0x6e8   :  { %7871 = vpow2.f32 %v3343_v34  ;;  %v11670_v34 = vld [vmem:[#allocation48_spill] sm:$0xff] }
 0x6e9   :  { %7873 = vpow2.f32 %v3301_v53  ;;  %v3224_v32 = vsub.f32 %v11670_v34, %v10158_v26 }
 0x6ea   :  { %3187 = vmax.xlane.f32.xlu0 %v3186_v44  ;;  %7875 = vpow2.f32 %v3311_v33  ;;  %v11671_v44 = vld [vmem:[#allocation47_spill] sm:$0xff] }
 0x6eb   :  { %7877 = vpow2.f32 %v3309_v45  ;;  %v3317_v2 = vmul.f32 1.442695, %v3224_v32  ;;  %v3229_v33 = vsub.f32 %v11671_v44, %v10175_v16  ;;  %v11673_v16 = vld [vmem:[#allocation53_spill] sm:$0xff] }
 0x6ec   :  { %7879 = vpow2.f32 %v3319_v19 }
 0x6ed   :  { %7881 = vpow2.f32 %v3317_v2  ;;  %v3327_v26 = vmul.f32 1.442695, %v3229_v33 }
 0x6ee   :  { %3442 = vadd.xlane.f32.xlu0 %v3441_v4  ;;  %v11672_v4 = vld [vmem:[#allocation61_spill] sm:$0xff] }
 0x6ef   :  { %v3227_v45 = vsub.f32 %v11672_v4, %v10266_v17  ;;  %7883 = vpow2.f32 %v3327_v26  ;;  %v11674_v17 = vld [vmem:[#allocation51_spill] sm:$0xff]  ;;  %v11675_v26 = vld [vmem:[#allocation52_spill] sm:$0xff] }
 0x6f1   :  { %v3323_v19 = vmul.f32 1.442695, %v3227_v45 }
 0x6f2   :  { %v10305_v23 = vpop.eup %7871  ;;  %3436 = vadd.xlane.f32.xlu0 %v3435_v11  ;;  %v3122_v11 = vpop.xlane.xlu0 %3121 }
 0x6f3   :  { %11669 = vst [vmem:[#allocation50_spill] sm:$0xff] %v10305_v23  ;;  %v3513_v18 = vsel %vm3002_vm4, %v10305_v23, 0.0  ;;  %v10313_v53 = vpop.eup %7873  ;;  %v3234_v2 = vsub.f32 %v11674_v17, %v3122_v11  ;;  %7885 = vpow2.f32 %v3323_v19 }
 0x6f4   :  { %3514 = vadd.xlane.f32.xlu1 %v3513_v18  ;;  %v3450_v37 = vsel %vm3002_vm4, %v10313_v53, 0.0  ;;  %v10319_v46 = vpop.eup %7875  ;;  %v3230_v18 = vsub.f32 %v11673_v16, %v10185_v63 }
 0x6f5   :  { %v3465_v61 = vsel %vm3002_vm4, %v10319_v46, 0.0  ;;  %v10325_v8 = vpop.eup %7877  ;;  %v3337_v63 = vmul.f32 1.442695, %v3234_v2 }
 0x6f6   :  { %3454 = vadd.xlane.f32.xlu0 %v3453_v15  ;;  %v3462_v34 = vsel %vm3002_vm4, %v10325_v8, 0.0  ;;  %v10331_v32 = vpop.eup %7879  ;;  %v3329_v15 = vmul.f32 1.442695, %v3230_v18  ;;  %v3116_v44 = vpop.xlane.xlu0 %3115 }
 0x6f7   :  { %v3477_v33 = vsel %vm3002_vm4, %v10331_v32, 0.0  ;;  %v3232_v4 = vsub.f32 %v11675_v26, %v3116_v44 }
 0x6f8   :  { %7887 = vpow2.f32 %v3329_v15 }
 0x6f9   :  { %7889 = vpow2.f32 %v3337_v63  ;;  %v3333_v11 = vmul.f32 1.442695, %v3232_v4 }
 0x6fa   :  { %3451 = vadd.xlane.f32.xlu0 %v3450_v37  ;;  %v10336_v37 = vpop.eup %7881 }
 0x6fb   :  { %v3474_v45 = vsel %vm3002_vm4, %v10336_v37, 0.0  ;;  %7891 = vpow2.f32 %v3333_v11 }
 0x6fe   :  { %3466 = vadd.xlane.f32.xlu0 %v3465_v61  ;;  %v10341_v61 = vpop.eup %7883 }
 0x6ff   :  { %11676 = vst [vmem:[#allocation49_spill] sm:$0xff] %v10341_v61  ;;  %v3489_v16 = vsel %vm3002_vm4, %v10341_v61, 0.0  ;;  %v10345_v18 = vpop.eup %7885 }
 0x702   :  { %3463 = vadd.xlane.f32.xlu0 %v3462_v34  ;;  %v3483_v34 = vsel %vm3002_vm4, %v10345_v18, 0.0  ;;  %v10349_v15 = vpop.eup %7887 }
 0x703   :  { %11677 = vst [vmem:[#allocation48_spill] sm:$0xff] %v10349_v15  ;;  %v3492_v2 = vsel %vm3002_vm4, %v10349_v15, 0.0  ;;  %v10353_v44 = vpop.eup %7889 }
 0x704   :  { %11678 = vst [vmem:[#allocation47_spill] sm:$0xff] %v10353_v44  ;;  %v3504_v63 = vsel %vm3002_vm4, %v10353_v44, 0.0 }
 0x705   :  { %v10357_v26 = vpop.eup %7891 }
 0x706   :  { %3478 = vadd.xlane.f32.xlu0 %v3477_v33  ;;  %11679 = vst [vmem:[#allocation61_spill] sm:$0xff] %v10357_v26  ;;  %v3498_v11 = vsel %vm3002_vm4, %v10357_v26, 0.0 }
 0x70a   :  { %3475 = vadd.xlane.f32.xlu0 %v3474_v45 }
 0x70e   :  { %3490 = vadd.xlane.f32.xlu0 %v3489_v16 }
 0x70f   :  { %v3395_v19 = vpop.xlane.xlu0 %3394 }
 0x710   :  { %7893 = vrcp.f32 %v3395_v19 }
 0x712   :  { %3484 = vadd.xlane.f32.xlu0 %v3483_v34 }
 0x713   :  { %v3389_v17 = vpop.xlane.xlu0 %3388 }
 0x716   :  { %3493 = vadd.xlane.f32.xlu0 %v3492_v2 }
 0x717   :  { %v3398_v33 = vpop.xlane.xlu0 %3397 }
 0x718   :  { %7895 = vrcp.f32 %v3398_v33 }
 0x719   :  { %7897 = vrcp.f32 %v3389_v17  ;;  %v11680_v17 = vld [vmem:[#allocation91_spill] sm:$0xff] }
 0x71a   :  { %3505 = vadd.xlane.f32.xlu0 %v3504_v63  ;;  %v7894_v34 = vpop.eup %7893 }
 0x71b   :  { %v3392_v4 = vpop.xlane.xlu0 %3391  ;;  %v3645_v30 = vmul.f32 %v7894_v34, %v9989_v56  ;;  %v11682_v56 = vld [vmem:[#allocation69_spill] sm:$0xff] }
 0x71c   :  { %7899 = vrcp.f32 %v3392_v4  ;;  %v3407_v45 = vpop.xlane.xlu1 %3406 }
 0x71e   :  { %3499 = vadd.xlane.f32.xlu0 %v3498_v11 }
 0x71f   :  { %v3125_v16 = vpop.xlane.xlu0 %3124 }
 0x720   :  { %v3235_v19 = vsub.f32 %v10014_v51, %v3125_v16  ;;  %v3143_v2 = vpop.xlane.xlu1 %3142  ;;  %v11681_v51 = vld [vmem:[#allocation90_spill] sm:$0xff] }
 0x721   :  { %v3241_v33 = vsub.f32 %v10021_v52, %v3143_v2  ;;  %v11684_v2 = vmov 0.0  }
 0x722   :  { %v7896_v60 = vpop.eup %7895  ;;  %v3339_v23 = vmul.f32 1.442695, %v3235_v19 }
 0x723   :  { %v3646_v63 = vmul.f32 %v7896_v60, %v11680_v17  ;;  %v3351_v47 = vmul.f32 1.442695, %v3241_v33  ;;  %v3134_v4 = vpop.xlane.xlu0 %3133  ;;  %v7898_v44 = vpop.eup %7897  ;;  %v11683_v60 = vld [vmem:[#allocation68_spill] sm:$0xff] }
 0x724   :  { %7901 = vpow2.f32 %v3339_v23  ;;  %v3238_v26 = vsub.f32 %v10028_v5, %v3134_v4  ;;  %v3643_v16 = vmul.f32 %v7898_v44, %v11681_v51  ;;  %v3419_v5 = vpop.xlane.xlu1 %3418 }
 0x725   :  { %v3708_v11 = vpack.c.bf16 %v3646_v63, %v3645_v30  ;;  %7903 = vpow2.f32 %v3351_v47 }
 0x726   :  { %v7900_v15 = vpop.eup %7899  ;;  %v3345_v61 = vmul.f32 1.442695, %v3238_v26 }
 0x727   :  { %v3644_v52 = vmul.f32 %v7900_v15, %v10007_v57  ;;  %7246 = vmatmul.mubr.msk.bf16.vlgmr.msra.gmra.mrb[96].mxu0 %vm3002_vm4, %v3708_v11  ;;  %v3128_v19 = vpop.xlane.xlu0 %3127  ;;  %v11685_v57 = vld [vmem:[#allocation67_spill] sm:$0xff] }
 0x728   :  { %7905 = vpow2.f32 %v3345_v61  ;;  %7256 = vmatpush3.bf16.msra.mxu0 %v11682_v56  ;;  %v3236_v34 = vsub.f32 %v11683_v60, %v3128_v19  ;;  %7257 = vmatprep.mubr.msk.bf16.mxu0 %vm8483_vm3, %v11684_v2  ;;  %v3413_v15 = vpop.xlane.xlu1 %3412 }
 0x729   :  { %v3707_v30 = vpack.c.bf16 %v3644_v52, %v3643_v16  ;;  %7267 = vmatprep.subr.bf16.mxu0 %v11684_v2 }
 0x72a   :  { %v3341_v47 = vmul.f32 1.442695, %v3236_v34 }
 0x72b   :  { %7240 = vmatmul.mubr.msk.bf16.vlgmr.msra.gmra.mrb[80].mxu1 %vm3002_vm4, %v3707_v30  ;;  %v3401_v23 = vpop.xlane.xlu0 %3400  ;;  %v11690_v30 = vld [vmem:[#allocation92_spill] sm:$0xff] }
 0x72c   :  { %7907 = vpow2.f32 %v3341_v47  ;;  %7250 = vmatpush3.bf16.msra.mxu1 %v11685_v57  ;;  %7251 = vmatprep.mubr.msk.bf16.mxu1 %vm8483_vm3, %v11684_v2 }
 0x72d   :  { %7261 = vmatprep.subr.bf16.mxu1 %v11684_v2  ;;  %7909 = vrcp.f32 %v3407_v45  ;;  %v10391_v45 = vpop.xlane.xlu1 %3430 }
 0x72e   :  { %v10379_v61 = vpop.eup %7901 }
 0x72f   :  { %11686 = vst [vmem:[#allocation53_spill] sm:$0xff] %v10379_v61  ;;  %v3410_v44 = vpop.xlane.xlu0 %3409  ;;  %v3507_v26 = vsel %vm3002_vm4, %v10379_v61, 0.0  ;;  %v10383_v33 = vpop.eup %7903  ;;  %v11692_v61 = vld [vmem:[#allocation64_spill] sm:$0xff] }
 0x730   :  { %11687 = vst [vmem:[#allocation51_spill] sm:$0xff] %v10383_v33  ;;  %7911 = vrcp.f32 %v3410_v44  ;;  %3508 = vadd.xlane.f32.xlu1 %v3507_v26  ;;  %v3525_v4 = vsel %vm3002_vm4, %v10383_v33, 0.0 }
 0x731   :  { %7913 = vrcp.f32 %v3401_v23  ;;  %v11691_v23 = vld [vmem:[#allocation94_spill] sm:$0xff]  ;;  %v10400_v44 = vpop.xlane.xlu1 %3424 }
 0x732   :  { %v10385_v17 = vpop.eup %7905 }
 0x733   :  { %11688 = vst [vmem:[#allocation52_spill] sm:$0xff] %v10385_v17  ;;  %v3404_v63 = vpop.xlane.xlu0 %3403  ;;  %v3516_v11 = vsel %vm3002_vm4, %v10385_v17, 0.0 }
 0x734   :  { %7915 = vrcp.f32 %v3404_v63  ;;  %3526 = vadd.xlane.f32.xlu1 %v3525_v4  ;;  %3517 = vadd.xlane.f32.xlu0 %v3516_v11 }
 0x736   :  { %v10393_v51 = vpop.eup %7907 }
 0x737   :  { %11689 = vst [vmem:[#allocation91_spill] sm:$0xff] %v10393_v51  ;;  %v3137_v16 = vpop.xlane.xlu0 %3136  ;;  %v3510_v52 = vsel %vm3002_vm4, %v10393_v51, 0.0  ;;  %v7910_v19 = vpop.eup %7909 }
 0x738   :  { %v3239_v56 = vsub.f32 %v10092_v59, %v3137_v16  ;;  %3511 = vadd.xlane.f32.xlu0 %v3510_v52  ;;  %v3649_v47 = vmul.f32 %v7910_v19, %v11690_v30  ;;  %v11693_v52 = vld [vmem:[#allocation71_spill] sm:$0xff] }
 0x73a   :  { %v7912_v60 = vpop.eup %7911  ;;  %v3347_v34 = vmul.f32 1.442695, %v3239_v56  ;;  %v3167_v56 = vpop.xlane.xlu1 %3166 }
 0x73b   :  { %v3650_v57 = vmul.f32 %v7912_v60, %v11691_v23  ;;  %v3146_v26 = vpop.xlane.xlu0 %3145  ;;  %v7914_v63 = vpop.eup %7913 }
 0x73c   :  { %7917 = vpow2.f32 %v3347_v34  ;;  %v3242_v4 = vsub.f32 %v10104_v9, %v3146_v26  ;;  %v3647_v17 = vmul.f32 %v7914_v63, %v11692_v61  ;;  %v11694_v61 = vld [vmem:[#allocation70_spill] sm:$0xff]  ;;  %v3249_v26 = vsub.f32 %v10083_v24, %v3167_v56 }
 0x73d   :  { %v3710_v11 = vpack.c.bf16 %v3650_v57, %v3649_v47  ;;  %v11696_v56 = vld [vmem:[#allocation66_spill] sm:$0xff] }
 0x73e   :  { %v7916_v33 = vpop.eup %7915  ;;  %v3353_v51 = vmul.f32 1.442695, %v3242_v4 }
 0x73f   :  { %v3648_v59 = vmul.f32 %v7916_v33, %v10080_v10  ;;  %7258 = vmatmul.mubr.msk.bf16.vlgmr.msra.gmra.mrb[100].mxu0 %vm3002_vm4, %v3710_v11  ;;  %v3140_v16 = vpop.xlane.xlu0 %3139  ;;  %v3161_v33 = vpop.xlane.xlu1 %3160 }
 0x740   :  { %7919 = vpow2.f32 %v3353_v51  ;;  %7268 = vmatpush3.bf16.msra.mxu0 %v11693_v52  ;;  %v3240_v19 = vsub.f32 %v10117_v41, %v3140_v16  ;;  %7269 = vmatprep.mubr.msk.bf16.mxu0 %vm8483_vm3, %v11684_v2 }
 0x741   :  { %v3709_v9 = vpack.c.bf16 %v3648_v59, %v3647_v17  ;;  %7279 = vmatprep.subr.bf16.mxu0 %v11684_v2  ;;  %7921 = vrcp.f32 %v3419_v5 }
 0x742   :  { %v3349_v60 = vmul.f32 1.442695, %v3240_v19  ;;  %v11695_v19 = vld [vmem:[#allocation63_spill] sm:$0xff] }
 0x743   :  { %7252 = vmatmul.mubr.msk.bf16.vlgmr.msra.gmra.mrb[84].mxu1 %vm3002_vm4, %v3709_v9  ;;  %v3422_v10 = vpop.xlane.xlu0 %3421  ;;  %v3179_v23 = vpop.xlane.xlu1 %3178 }
 0x744   :  { %7923 = vpow2.f32 %v3349_v60  ;;  %7262 = vmatpush3.bf16.msra.mxu1 %v11694_v61  ;;  %7263 = vmatprep.mubr.msk.bf16.mxu1 %vm8483_vm3, %v11684_v2  ;;  %v3247_v61 = vsub.f32 %v10099_v36, %v3161_v33 }
 0x745   :  { %7925 = vrcp.f32 %v3413_v15  ;;  %7273 = vmatprep.subr.bf16.mxu1 %v11684_v2 }
 0x746   :  { %v10416_v41 = vpop.eup %7917  ;;  %7927 = vrcp.f32 %v3422_v10  ;;  %v3367_v10 = vmul.f32 1.442695, %v3249_v26 }
 0x747   :  { %v3416_v17 = vpop.xlane.xlu0 %3415  ;;  %v3519_v5 = vsel %vm3002_vm4, %v10416_v41, 0.0 }
 0x748   :  { %7929 = vrcp.f32 %v3416_v17  ;;  %3520 = vadd.xlane.f32.xlu1 %v3519_v5  ;;  %v3173_v5 = vpop.xlane.xlu1 %3172 }
 0x74a   :  { %v10420_v51 = vpop.eup %7919 }
 0x74b   :  { %v3155_v34 = vpop.xlane.xlu0 %3154  ;;  %v3528_v30 = vsel %vm3002_vm4, %v10420_v51, 0.0  ;;  %v7922_v47 = vpop.eup %7921 }
 0x74c   :  { %v3245_v15 = vsub.f32 %v10153_v28, %v3155_v34  ;;  %3529 = vadd.xlane.f32.xlu0 %v3528_v30  ;;  %v3653_v28 = vmul.f32 %v7922_v47, %v11695_v19 }
 0x74e   :  { %v10425_v57 = vpop.eup %7923  ;;  %v3359_v63 = vmul.f32 1.442695, %v3245_v15 }
 0x74f   :  { %v7926_v4 = vpop.eup %7925  ;;  %v3149_v11 = vpop.xlane.xlu0 %3148  ;;  %v3522_v59 = vsel %vm3002_vm4, %v10425_v57, 0.0 }
 0x750   :  { %v7928_v16 = vpop.eup %7927  ;;  %7931 = vpow2.f32 %v3359_v63  ;;  %v3243_v52 = vsub.f32 %v10171_v48, %v3149_v11  ;;  %3523 = vadd.xlane.f32.xlu0 %v3522_v59  ;;  %v3651_v17 = vmul.f32 %v7926_v4, %v11696_v56  ;;  %v11697_v63 = vld [vmem:[#allocation96_spill] sm:$0xff]  ;;  %v11698_v11 = vld [vmem:[#allocation73_spill] sm:$0xff] }
 0x751   :  { %v3654_v9 = vmul.f32 %v7928_v16, %v10134_v20  ;;  %v3363_v20 = vmul.f32 1.442695, %v3247_v61  ;;  %v3253_v26 = vsub.f32 %v11697_v63, %v3179_v23  ;;  %v10449_v23 = vpop.xlane.xlu1 %3184  ;;  %v3251_v16 = vsub.f32 %v10125_v25, %v3173_v5 }
 0x752   :  { %v7930_v60 = vpop.eup %7929  ;;  %v3355_v24 = vmul.f32 1.442695, %v3243_v52 }
 0x753   :  { %v3652_v34 = vmul.f32 %v7930_v60, %v10145_v50  ;;  %v3712_v30 = vpack.c.bf16 %v3654_v9, %v3653_v28  ;;  %v3158_v15 = vpop.xlane.xlu0 %3157  ;;  %v3375_v59 = vmul.f32 1.442695, %v3253_v26  ;;  %v3371_v28 = vmul.f32 1.442695, %v3251_v16 }
 0x754   :  { %7933 = vpow2.f32 %v3355_v24  ;;  %v3246_v48 = vsub.f32 %v10182_v54, %v3158_v15  ;;  %v11699_v54 = vld [vmem:[#allocation72_spill] sm:$0xff] }
 0x755   :  { %7270 = vmatmul.mubr.msk.bf16.vlgmr.msra.gmra.mrb[104].mxu0 %vm3002_vm4, %v3712_v30  ;;  %v3711_v47 = vpack.c.bf16 %v3652_v34, %v3651_v17  ;;  %7935 = vpow2.f32 %v3367_v10  ;;  %v3194_v9 = vpop.xlane.xlu1 %3193 }
 0x756   :  { %7280 = vmatpush3.bf16.msra.mxu0 %v11698_v11  ;;  %v3361_v36 = vmul.f32 1.442695, %v3246_v48  ;;  %7281 = vmatprep.mubr.msk.bf16.mxu0 %vm8483_vm3, %v11684_v2 }
 0x757   :  { %7264 = vmatmul.mubr.msk.bf16.vlgmr.msra.gmra.mrb[88].mxu1 %vm3002_vm4, %v3711_v47  ;;  %v3152_v50 = vpop.xlane.xlu0 %3151  ;;  %7291 = vmatprep.subr.bf16.mxu0 %v11684_v2 }
 0x758   :  { %7937 = vpow2.f32 %v3361_v36  ;;  %7274 = vmatpush3.bf16.msra.mxu1 %v11699_v54  ;;  %v3244_v33 = vsub.f32 %v10196_v31, %v3152_v50  ;;  %7275 = vmatprep.mubr.msk.bf16.mxu1 %vm8483_vm3, %v11684_v2  ;;  %v11700_v50 = vld [vmem:[#allocation93_spill] sm:$0xff] }
 0x759   :  { %7939 = vrcp.f32 %v10391_v45  ;;  %7285 = vmatprep.subr.bf16.mxu1 %v11684_v2  ;;  %v10473_v15 = vpop.xlane.xlu1 %3445 }
 0x75a   :  { %v10452_v4 = vpop.eup %7931  ;;  %7941 = vpow2.f32 %v3363_v20  ;;  %v3357_v52 = vmul.f32 1.442695, %v3244_v33 }
 0x75b   :  { %7943 = vrcp.f32 %v10400_v44  ;;  %v3434_v19 = vpop.xlane.xlu0 %3433  ;;  %v3537_v31 = vsel %vm3002_vm4, %v10452_v4, 0.0 }
 0x75c   :  { %7945 = vpow2.f32 %v3357_v52  ;;  %3538 = vadd.xlane.f32.xlu1 %v3537_v31 }
 0x75d   :  { %7947 = vrcp.f32 %v3434_v19  ;;  %v11701_v19 = vld [vmem:[#allocation95_spill] sm:$0xff] }
 0x75e   :  { %v10458_v45 = vpop.eup %7933  ;;  %7949 = vpow2.f32 %v3375_v59 }
 0x75f   :  { %v3428_v60 = vpop.xlane.xlu0 %3427  ;;  %v3531_v10 = vsel %vm3002_vm4, %v10458_v45, 0.0  ;;  %v10462_v25 = vpop.eup %7935 }
 0x760   :  { %7951 = vrcp.f32 %v3428_v60  ;;  %3532 = vadd.xlane.f32.xlu1 %v3531_v10  ;;  %v3549_v56 = vsel %vm3002_vm4, %v10462_v25, 0.0 }
 0x761   :  { %7953 = vpow2.f32 %v3371_v28  ;;  %v3440_v28 = vpop.xlane.xlu1 %3439 }
 0x762   :  { %v10464_v44 = vpop.eup %7937 }
 0x763   :  { %v7940_v61 = vpop.eup %7939  ;;  %v3170_v24 = vpop.xlane.xlu0 %3169  ;;  %v3540_v17 = vsel %vm3002_vm4, %v10464_v44, 0.0 }
 0x764   :  { %v10470_v5 = vpop.eup %7941  ;;  %v3250_v34 = vsub.f32 %v10222_v55, %v3170_v24  ;;  %3550 = vadd.xlane.f32.xlu1 %v3549_v56  ;;  %3541 = vadd.xlane.f32.xlu0 %v3540_v17  ;;  %v3657_v55 = vmul.f32 %v7940_v61, %v11700_v50 }
 0x765   :  { %v7944_v30 = vpop.eup %7943  ;;  %v3543_v26 = vsel %vm3002_vm4, %v10470_v5, 0.0 }
 0x766   :  { %v10475_v48 = vpop.eup %7945  ;;  %v3369_v47 = vmul.f32 1.442695, %v3250_v34  ;;  %v3655_v31 = vmul.f32 %v7944_v30, %v11701_v19 }
 0x767   :  { %v7948_v20 = vpop.eup %7947  ;;  %v3164_v63 = vpop.xlane.xlu0 %3163  ;;  %v3534_v11 = vsel %vm3002_vm4, %v10475_v48, 0.0 }
 0x768   :  { %v10481_v36 = vpop.eup %7949  ;;  %v3658_v54 = vmul.f32 %v7948_v20, %v10206_v22  ;;  %7955 = vpow2.f32 %v3369_v47  ;;  %v3248_v33 = vsub.f32 %v10232_v39, %v3164_v63  ;;  %3544 = vadd.xlane.f32.xlu1 %v3543_v26  ;;  %3535 = vadd.xlane.f32.xlu0 %v3534_v11  ;;  %v11702_v39 = vld [vmem:[#allocation75_spill] sm:$0xff]  ;;  %v3449_v20 = vpop.xlane.xlu1 %3448 }
 0x769   :  { %v3561_v24 = vsel %vm3002_vm4, %v10481_v36, 0.0 }
 0x76a   :  { %v7952_v59 = vpop.eup %7951  ;;  %v3365_v16 = vmul.f32 1.442695, %v3248_v33  ;;  %v3714_v52 = vpack.c.bf16 %v3658_v54, %v3657_v55 }
 0x76b   :  { %v3656_v60 = vmul.f32 %v7952_v59, %v10215_v27  ;;  %v3182_v10 = vpop.xlane.xlu0 %3181  ;;  %v10490_v61 = vpop.eup %7953  ;;  %v3258_v27 = vsub.f32 %v10148_v42, %v3194_v9  ;;  %v3255_v9 = vsub.f32 %v10137_v14, %v10449_v23 }
 0x76c   :  { %7957 = vpow2.f32 %v3365_v16  ;;  %7282 = vmatmul.mubr.msk.bf16.vlgmr.msra.gmra.mrb[108].mxu0 %vm3002_vm4, %v3714_v52  ;;  %v3254_v22 = vsub.f32 %v10243_v21, %v3182_v10  ;;  %3562 = vadd.xlane.f32.xlu1 %v3561_v24  ;;  %v3555_v30 = vsel %vm3002_vm4, %v10490_v61, 0.0  ;;  %v11703_v21 = vld [vmem:[#allocation74_spill] sm:$0xff]  ;;  %v3458_v59 = vpop.xlane.xlu1 %3457 }
 0x76d   :  { %7292 = vmatpush3.bf16.msra.mxu0 %v11702_v39  ;;  %v3713_v56 = vpack.c.bf16 %v3656_v60, %v3655_v31  ;;  %7293 = vmatprep.mubr.msk.bf16.mxu0 %vm8483_vm3, %v11684_v2  ;;  %v3385_v63 = vmul.f32 1.442695, %v3258_v27  ;;  %v3379_v54 = vmul.f32 1.442695, %v3255_v9 }
 0x76e   :  { %v3377_v17 = vmul.f32 1.442695, %v3254_v22  ;;  %7303 = vmatprep.subr.bf16.mxu0 %v11684_v2 }
 0x76f   :  { %7276 = vmatmul.mubr.msk.bf16.vlgmr.msra.gmra.mrb[92].mxu1 %vm3002_vm4, %v3713_v56  ;;  %v3176_v34 = vpop.xlane.xlu0 %3175 }
 0x770   :  { %7959 = vpow2.f32 %v3377_v17  ;;  %7286 = vmatpush3.bf16.msra.mxu1 %v11703_v21  ;;  %v3252_v47 = vsub.f32 %v10256_v1, %v3176_v34  ;;  %3556 = vadd.xlane.f32.xlu1 %v3555_v30  ;;  %v3461_v60 = vpop.xlane.xlu1 %3460 }
 0x771   :  { %7287 = vmatprep.mubr.msk.bf16.mxu1 %vm8483_vm3, %v11684_v2  ;;  %7297 = vmatprep.subr.bf16.mxu1 %v11684_v2 }
 0x772   :  { %v10507_v42 = vpop.eup %7955  ;;  %v3373_v26 = vmul.f32 1.442695, %v3252_v47 }
 0x773   :  { %v3191_v11 = vpop.xlane.xlu0 %3190  ;;  %v3552_v50 = vsel %vm3002_vm4, %v10507_v42, 0.0 }
 0x774   :  { %7961 = vpow2.f32 %v3373_v26  ;;  %v3257_v1 = vsub.f32 %v10269_v7, %v3191_v11  ;;  %3553 = vadd.xlane.f32.xlu0 %v3552_v50  ;;  %v3470_v39 = vpop.xlane.xlu1 %3469 }
 0x775   :  { %7963 = vpow2.f32 %v3385_v63 }
 0x776   :  { %v10514_v55 = vpop.eup %7957  ;;  %v3383_v33 = vmul.f32 1.442695, %v3257_v1 }
 0x777   :  { %v3188_v16 = vpop.xlane.xlu0 %3187  ;;  %v3546_v14 = vsel %vm3002_vm4, %v10514_v55, 0.0 }
 0x778   :  { %7965 = vpow2.f32 %v3383_v33  ;;  %v3256_v23 = vsub.f32 %v10281_v38, %v3188_v16  ;;  %3547 = vadd.xlane.f32.xlu0 %v3546_v14  ;;  %v3473_v1 = vpop.xlane.xlu1 %3472 }
 0x779   :  { %7967 = vpow2.f32 %v3379_v54 }
 0x77a   :  { %v10519_v52 = vpop.eup %7959  ;;  %v3381_v19 = vmul.f32 1.442695, %v3256_v23  ;;  %7969 = vrcp.f32 %v10473_v15  ;;  %v11704_v23 = vld [vmem:[#allocation54_spill] sm:$0xff] }
 0x77b   :  { %v3443_v7 = vpop.xlane.xlu0 %3442  ;;  %v3564_v31 = vsel %vm3002_vm4, %v10519_v52, 0.0 }
 0x77c   :  { %7971 = vpow2.f32 %v3381_v19  ;;  %3565 = vadd.xlane.f32.xlu0 %v3564_v31 }
 0x77d   :  { %7973 = vrcp.f32 %v3443_v7 }
 0x77e   :  { %v10524_v10 = vpop.eup %7961  ;;  %7975 = vrcp.f32 %v3440_v28 }
 0x77f   :  { %v3437_v24 = vpop.xlane.xlu0 %3436  ;;  %v3558_v38 = vsel %vm3002_vm4, %v10524_v10, 0.0  ;;  %v10528_v22 = vpop.eup %7963 }
 0x780   :  { %7977 = vrcp.f32 %v3437_v24  ;;  %3559 = vadd.xlane.f32.xlu0 %v3558_v38  ;;  %v3576_v27 = vsel %vm3002_vm4, %v10528_v22, 0.0  ;;  %v11705_v24 = vld [vmem:[#allocation57_spill] sm:$0xff] }
 0x781   :  { %7979 = vrcp.f32 %v3458_v59 }
 0x782   :  { %v10530_v15 = vpop.eup %7965 }
 0x783   :  { %v3455_v56 = vpop.xlane.xlu0 %3454  ;;  %v3573_v17 = vsel %vm3002_vm4, %v10530_v15, 0.0  ;;  %v10536_v28 = vpop.eup %7967 }
 0x784   :  { %7981 = vrcp.f32 %v3455_v56  ;;  %3577 = vadd.xlane.f32.xlu0 %v3576_v27  ;;  %3574 = vadd.xlane.f32.xlu1 %v3573_v17  ;;  %v7970_v34 = vpop.eup %7969  ;;  %v3567_v9 = vsel %vm3002_vm4, %v10536_v28, 0.0  ;;  %v11706_v27 = vld [vmem:[#allocation58_spill] sm:$0xff] }
 0x785   :  { %7983 = vrcp.f32 %v3449_v20  ;;  %v3662_v11 = vmul.f32 %v7970_v34, %v10164_v29 }
 0x786   :  { %v10538_v30 = vpop.eup %7971 }
 0x787   :  { %v7974_v21 = vpop.eup %7973  ;;  %v3452_v47 = vpop.xlane.xlu0 %3451  ;;  %v3570_v63 = vsel %vm3002_vm4, %v10538_v30, 0.0 }
 0x788   :  { %v7976_v26 = vpop.eup %7975  ;;  %v3661_v50 = vmul.f32 %v7974_v21, %v10291_v12  ;;  %7985 = vrcp.f32 %v3452_v47  ;;  %3568 = vadd.xlane.f32.xlu1 %v3567_v9  ;;  %3571 = vadd.xlane.f32.xlu0 %v3570_v63  ;;  %v11707_v9 = vld [vmem:[#allocation56_spill] sm:$0xff]  ;;  %v11708_v63 = vld [vmem:[#allocation77_spill] sm:$0xff] }
 0x789   :  { %7987 = vrcp.f32 %v3470_v39  ;;  %v3660_v33 = vmul.f32 %v7976_v26, %v10179_v13  ;;  %v3482_v13 = vpop.xlane.xlu1 %3481  ;;  %v11709_v26 = vld [vmem:[#allocation76_spill] sm:$0xff] }
 0x78a   :  { %v7978_v54 = vpop.eup %7977  ;;  %v3716_v20 = vpack.c.bf16 %v3662_v11, %v3661_v50  ;;  %v11710_v11 = vpack.c.bf16 %v11708_v63, %v11709_v26  ;;  %v11719_v63 = vld [vmem:[#allocation48_spill] sm:$0xff] }
 0x78b   :  { %v3659_v59 = vmul.f32 %v7978_v54, %v10297_v35  ;;  %v3467_v16 = vpop.xlane.xlu0 %3466  ;;  %v7980_v14 = vpop.eup %7979 }
 0x78c   :  { %7294 = vmatmul.mubr.msk.bf16.vlgmr.msra.gmra.mrb[96].mxu0 %vm3002_vm4, %v3716_v20  ;;  %7989 = vrcp.f32 %v3467_v16  ;;  %v3666_v19 = vmul.f32 %v7980_v14, %v10201_v49 }
 0x78d   :  { %7304 = vmatpush3.bf16.msra.mxu0 %v11704_v23  ;;  %v3715_v29 = vpack.c.bf16 %v3660_v33, %v3659_v59  ;;  %7305 = vmatprep.mubr.msk.bf16.mxu0 %vm8483_vm3, %v11684_v2  ;;  %7991 = vrcp.f32 %v3461_v60  ;;  %v11711_v59 = vld [vmem:[#allocation59_spill] sm:$0xff] }
 0x78e   :  { %v7982_v12 = vpop.eup %7981  ;;  %7315 = vmatprep.subr.bf16.mxu0 %v11684_v2  ;;  %v11712_v23 = vld [vmem:[#allocation79_spill] sm:$0xff] }
 0x78f   :  { %v3665_v35 = vmul.f32 %v7982_v12, %v10301_v3  ;;  %7288 = vmatmul.mubr.msk.bf16.vlgmr.msra.gmra.mrb[80].mxu1 %vm3002_vm4, %v3715_v29  ;;  %v3464_v7 = vpop.xlane.xlu0 %3463  ;;  %v7984_v31 = vpop.eup %7983  ;;  %v11713_v29 = vld [vmem:[#allocation78_spill] sm:$0xff] }
 0x790   :  { %7298 = vmatpush3.bf16.msra.mxu1 %v11705_v24  ;;  %7993 = vrcp.f32 %v3464_v7  ;;  %7299 = vmatprep.mubr.msk.bf16.mxu1 %vm8483_vm3, %v11684_v2  ;;  %v3663_v49 = vmul.f32 %v7984_v31, %v10191_v40  ;;  %v11714_v12 = vpack.c.bf16 %v11712_v23, %v11713_v29  ;;  %v11725_v23 = vld [vmem:[#allocation61_spill] sm:$0xff] }
 0x791   :  { %v3718_v38 = vpack.c.bf16 %v3666_v19, %v3665_v35  ;;  %7309 = vmatprep.subr.bf16.mxu1 %v11684_v2  ;;  %7995 = vrcp.f32 %v3482_v13  ;;  %v11715_v35 = vld [vmem:[#allocation62_spill] sm:$0xff] }
 0x792   :  { %v7986_v60 = vpop.eup %7985 }
 0x793   :  { %v3664_v39 = vmul.f32 %v7986_v60, %v10313_v53  ;;  %v3479_v3 = vpop.xlane.xlu0 %3478  ;;  %v7988_v56 = vpop.eup %7987  ;;  %v11716_v60 = vld [vmem:[#allocation60_spill] sm:$0xff] }
 0x794   :  { %7306 = vmatmul.mubr.msk.bf16.vlgmr.msra.gmra.mrb[100].mxu0 %vm3002_vm4, %v3718_v38  ;;  %7997 = vrcp.f32 %v3479_v3  ;;  %v3670_v21 = vmul.f32 %v7988_v56, %v10219_v0 }
 0x795   :  { %7316 = vmatpush3.bf16.msra.mxu0 %v11706_v27  ;;  %v3717_v17 = vpack.c.bf16 %v3664_v39, %v3663_v49  ;;  %7317 = vmatprep.mubr.msk.bf16.mxu0 %vm8483_vm3, %v11684_v2  ;;  %7999 = vrcp.f32 %v3473_v1  ;;  %v3488_v1 = vpop.xlane.xlu1 %3487 }
 0x796   :  { %v7990_v34 = vpop.eup %7989  ;;  %7327 = vmatprep.subr.bf16.mxu0 %v11684_v2 }
 0x797   :  { %v3669_v40 = vmul.f32 %v7990_v34, %v10319_v46  ;;  %7300 = vmatmul.mubr.msk.bf16.vlgmr.msra.gmra.mrb[84].mxu1 %vm3002_vm4, %v3717_v17  ;;  %v3476_v53 = vpop.xlane.xlu0 %3475  ;;  %v7992_v47 = vpop.eup %7991 }
 0x798   :  { %7310 = vmatpush3.bf16.msra.mxu1 %v11707_v9  ;;  %8001 = vrcp.f32 %v3476_v53  ;;  %7311 = vmatprep.mubr.msk.bf16.mxu1 %vm8483_vm3, %v11684_v2  ;;  %v3667_v46 = vmul.f32 %v7992_v47, %v10210_v43  ;;  %v11718_v47 = vld [vmem:[#allocation49_spill] sm:$0xff] }
 0x799   :  { %5228 = vrot.lane.b32.xlu1 %v11710_v11, %s8467_s1  ;;  %v3720_v50 = vpack.c.bf16 %v3670_v21, %v3669_v40  ;;  %7321 = vmatprep.subr.bf16.mxu1 %v11684_v2  ;;  %8003 = vrcp.f32 %v3488_v1  ;;  %v3503_v7 = vpop.xlane.xlu1 %3502  ;;  %v11720_v11 = vld [vmem:[#allocation80_spill] sm:$0xff]  ;;  %v11722_v1 = vld [vmem:[#allocation47_spill] sm:$0xff] }
 0x79a   :  { %v7994_v0 = vpop.eup %7993 }
 0x79b   :  { %v3668_v54 = vmul.f32 %v7994_v0, %v10325_v8  ;;  %v3491_v20 = vpop.xlane.xlu0 %3490  ;;  %v7996_v33 = vpop.eup %7995 }
 0x79c   :  { %7318 = vmatmul.mubr.msk.bf16.vlgmr.msra.gmra.mrb[104].mxu0 %vm3002_vm4, %v3720_v50  ;;  %v3674_v43 = vmul.f32 %v7996_v33, %v10238_v62  ;;  %v11723_v33 = vld [vmem:[#allocation98_spill] sm:$0xff] }
 0x79d   :  { %7328 = vmatpush3.bf16.msra.mxu0 %v11711_v59  ;;  %v3719_v16 = vpack.c.bf16 %v3668_v54, %v3667_v46  ;;  %7329 = vmatprep.mubr.msk.bf16.mxu0 %vm8483_vm3, %v11684_v2  ;;  %v3497_v39 = vpop.xlane.xlu1 %3496  ;;  %v11721_v46 = vld [vmem:[#allocation65_spill] sm:$0xff] }
 0x79e   :  { %v7998_v14 = vpop.eup %7997  ;;  %5180 = vrot.lane.b32.xlu0 %v11714_v12, %s8467_s1  ;;  %7339 = vmatprep.subr.bf16.mxu0 %v11684_v2  ;;  %s8487_s1 = smov [#allocation22]  }
 0x79f   :  { %v3673_v8 = vmul.f32 %v7998_v14, %v10331_v32  ;;  %7312 = vmatmul.mubr.msk.bf16.vlgmr.msra.gmra.mrb[88].mxu1 %vm3002_vm4, %v3719_v16  ;;  %v3485_v19 = vpop.xlane.xlu0 %3484  ;;  %v8000_v13 = vpop.eup %7999  ;;  %v11724_v16 = vld [vmem:[#allocation99_spill] sm:$0xff]  ;;  %s6634_s7 = sshll.u32 %s8487_s1, 4  ;;  %s6635_s7 = int_to_ptr.vmem [resolvable:$true] %s6634_s7 }
 0x7a0   :  { %7322 = vmatpush3.bf16.msra.mxu1 %v11715_v35  ;;  %8005 = vrcp.f32 %v3485_v19  ;;  %7323 = vmatprep.mubr.msk.bf16.mxu1 %vm8483_vm3, %v11684_v2  ;;  %v3671_v62 = vmul.f32 %v8000_v13, %v10229_v58  ;;  %v11717_v58 = vld [vmem:[#allocation55_spill] sm:$0xff]  ;;  %v11727_v19 = vld [vmem:[#allocation81_spill] sm:$0xff]  ;;  %s8427_s13 = scalar_lea.vmem %s6635_s7, 128  ;;  %p8432_p13 = scmp.lt.s32.totalorder %s6635_s7, %s6635_s7 }
 0x7a1   :  { %v3722_v31 = vpack.c.bf16 %v3674_v43, %v3673_v8  ;;  %7333 = vmatprep.subr.bf16.mxu1 %v11684_v2  ;;  %8007 = vrcp.f32 %v3491_v20  ;;  %v11726_v8 = vld [vmem:[#allocation82_spill] sm:$0xff]  ;;  %v3515_v13 = vpop.xlane.xlu1 %3514  ;;  %p8428_p12 = scmp.ne.s32.totalorder %s6635_s7, %s8427_s13  ;;  %p8433_p0 = scmp.lt.s32.totalorder %s8427_s13, %s8427_s13 }
 0x7a2   :  { %v8002_v24 = vpop.eup %8001 }
 0x7a3   :  { %v3672_v32 = vmul.f32 %v8002_v24, %v10336_v37  ;;  %v3494_v38 = vpop.xlane.xlu0 %3493  ;;  %v8004_v56 = vpop.eup %8003  ;;  %p8434_p1 = por %p8433_p0, %p8432_p13 }
 0x7a4   :  { %7330 = vmatmul.mubr.msk.bf16.vlgmr.msra.gmra.mrb[108].mxu0 %vm3002_vm4, %v3722_v31  ;;  %8009 = vrcp.f32 %v3494_v38  ;;  %v3676_v27 = vmul.f32 %v8004_v56, %v10249_v6  ;;  %v11728_v38 = vld [vmem:[#allocation50_spill] sm:$0xff] }
 0x7a5   :  { %7340 = vmatpush3.bf16.msra.mxu0 %v11716_v60  ;;  %v3721_v49 = vpack.c.bf16 %v3672_v32, %v3671_v62  ;;  %7341 = vmatprep.mubr.msk.bf16.mxu0 %vm8483_vm3, %v11684_v2  ;;  %p8435_p2 = pnand %p8434_p1, %p8428_p12 }
 0x7a6   :  { %7351 = vmatprep.subr.bf16.mxu0 %v11684_v2 }
 0x7a7   :  { %7324 = vmatmul.mubr.msk.bf16.vlgmr.msra.gmra.mrb[92].mxu1 %vm3002_vm4, %v3721_v49  ;;  %v3506_v3 = vpop.xlane.xlu0 %3505  ;;  %v11729_v49 = vld [vmem:[#allocation52_spill] sm:$0xff] }
 0x7a8   :  { %7334 = vmatpush3.bf16.msra.mxu1 %v11717_v58  ;;  %8011 = vrcp.f32 %v3506_v3  ;;  %7335 = vmatprep.mubr.msk.bf16.mxu1 %vm8483_vm3, %v11684_v2  ;;  %v11730_v58 = vld [vmem:[#allocation53_spill] sm:$0xff] }
 0x7a9   :  { %8013 = vrcp.f32 %v3503_v7  ;;  %7345 = vmatprep.subr.bf16.mxu1 %v11684_v2 }
 0x7aa   :  { %v8006_v37 = vpop.eup %8005  ;;  %8015 = vrcp.f32 %v3497_v39 }
 0x7ab   :  { %v3675_v17 = vmul.f32 %v8006_v37, %v10345_v18  ;;  %v3500_v34 = vpop.xlane.xlu0 %3499  ;;  %v8008_v21 = vpop.eup %8007 }
 0x7ac   :  { %8017 = vrcp.f32 %v3500_v34  ;;  %v3677_v9 = vmul.f32 %v8008_v21, %v11718_v47  ;;  %v11732_v34 = vld [vmem:[#allocation83_spill] sm:$0xff] }
 0x7ad   :  { %v3723_v40 = vpack.c.bf16 %v3676_v27, %v3675_v17  ;;  %8019 = vrcp.f32 %v3515_v13  ;;  %v11731_v27 = vld [vmem:[#allocation91_spill] sm:$0xff] }
 0x7ae   :  { %v8010_v53 = vpop.eup %8009 }
 0x7af   :  { %v3678_v26 = vmul.f32 %v8010_v53, %v11719_v63  ;;  %7336 = vmatmul.mubr.msk.bf16.vlgmr.msra.gmra.mrb[80].mxu1 %vm3002_vm4, %v3723_v40  ;;  %v11733_v53 = vld [vmem:[#allocation84_spill] sm:$0xff] }
 0x7b0   :  { %7346 = vmatpush3.bf16.msra.mxu1 %v11720_v11  ;;  %7347 = vmatprep.mubr.msk.bf16.mxu1 %vm8483_vm3, %v11684_v2 }
 0x7b1   :  { %v3724_v50 = vpack.c.bf16 %v3678_v26, %v3677_v9  ;;  %7357 = vmatprep.subr.bf16.mxu1 %v11684_v2 }
 0x7b2   :  { %v8012_v6 = vpop.eup %8011 }
 0x7b3   :  { %v8014_v18 = vpop.eup %8013  ;;  %7342 = vmatmul.mubr.msk.bf16.vlgmr.msra.gmra.mrb[96].mxu0 %vm3002_vm4, %v3724_v50  ;;  %v3682_v54 = vmul.f32 %v8012_v6, %v11722_v1  ;;  %v11734_v50 = vld [vmem:[#allocation51_spill] sm:$0xff] }
 0x7b4   :  { %v8016_v0 = vpop.eup %8015  ;;  %7352 = vmatpush3.bf16.msra.mxu0 %v11721_v46  ;;  %7353 = vmatprep.mubr.msk.bf16.mxu0 %vm8483_vm3, %v11684_v2  ;;  %v3681_v59 = vmul.f32 %v8014_v18, %v11723_v33  ;;  %v11735_v33 = vld [vmem:[#allocation85_spill] sm:$0xff] }
 0x7b5   :  { %7363 = vmatprep.subr.bf16.mxu0 %v11684_v2  ;;  %v3679_v14 = vmul.f32 %v8016_v0, %v11724_v16 }
 0x7b6   :  { %v8018_v20 = vpop.eup %8017  ;;  %v3726_v43 = vpack.c.bf16 %v3682_v54, %v3681_v59 }
 0x7b7   :  { %v3680_v29 = vmul.f32 %v8018_v20, %v11725_v23  ;;  %v8020_v24 = vpop.eup %8019 }
 0x7b8   :  { %v3685_v60 = vmul.f32 %v8020_v24, %v11728_v38  ;;  %v11737_v38 = vld [vmem:[#allocation89_spill] sm:$0xff] }
 0x7b9   :  { %v3725_v12 = vpack.c.bf16 %v3680_v29, %v3679_v14 }
 0x7bb   :  { %7348 = vmatmul.mubr.msk.bf16.vlgmr.msra.gmra.mrb[84].mxu1 %vm3002_vm4, %v3725_v12  ;;  %7354 = vmatmul.mubr.msk.bf16.vlgmr.msra.gmra.mrb[100].mxu0 %vm3002_vm4, %v3726_v43 }
 0x7bc   :  { %7358 = vmatpush3.bf16.msra.mxu1 %v11726_v8  ;;  %7364 = vmatpush3.bf16.msra.mxu0 %v11727_v19 }
 0x7bd   :  { %7365 = vmatprep.mubr.msk.bf16.mxu0 %vm8483_vm3, %v11684_v2  ;;  %7375 = vmatprep.subr.bf16.mxu0 %v11684_v2  ;;  %v3509_v35 = vpop.xlane.xlu1 %3508 }
 0x7be   :  { %7359 = vmatprep.mubr.msk.bf16.mxu1 %vm8483_vm3, %v11684_v2  ;;  %7369 = vmatprep.subr.bf16.mxu1 %v11684_v2 }
 0x7c1   :  { %v3518_v7 = vpop.xlane.xlu0 %3517  ;;  %v3527_v40 = vpop.xlane.xlu1 %3526 }
 0x7c2   :  { %8021 = vrcp.f32 %v3518_v7 }
 0x7c3   :  { %8023 = vrcp.f32 %v3509_v35 }
 0x7c5   :  { %v3512_v31 = vpop.xlane.xlu0 %3511 }
 0x7c6   :  { %8025 = vrcp.f32 %v3512_v31 }
 0x7c7   :  { %8027 = vrcp.f32 %v3527_v40 }
 0x7cc   :  { %v8022_v62 = vpop.eup %8021 }
 0x7cd   :  { %v8024_v32 = vpop.eup %8023  ;;  %v3686_v39 = vmul.f32 %v8022_v62, %v11729_v49 }
 0x7ce   :  { %v3683_v37 = vmul.f32 %v8024_v32, %v11730_v58 }
 0x7cf   :  { %v3728_v56 = vpack.c.bf16 %v3686_v39, %v3685_v60 }
 0x7d0   :  { %v8026_v3 = vpop.eup %8025 }
 0x7d1   :  { %v3684_v17 = vmul.f32 %v8026_v3, %v11731_v27  ;;  %7366 = vmatmul.mubr.msk.bf16.vlgmr.msra.gmra.mrb[104].mxu0 %vm3002_vm4, %v3728_v56  ;;  %v8028_v26 = vpop.eup %8027 }
 0x7d2   :  { %7376 = vmatpush3.bf16.msra.mxu0 %v11732_v34  ;;  %7377 = vmatprep.mubr.msk.bf16.mxu0 %vm8483_vm3, %v11684_v2  ;;  %v3689_v6 = vmul.f32 %v8028_v26, %v11734_v50  ;;  %v11740_v50 = vld [vmem:[#allocation87_spill] sm:$0xff] }
 0x7d3   :  { %v3727_v21 = vpack.c.bf16 %v3684_v17, %v3683_v37  ;;  %7387 = vmatprep.subr.bf16.mxu0 %v11684_v2 }
 0x7d5   :  { %7360 = vmatmul.mubr.msk.bf16.vlgmr.msra.gmra.mrb[88].mxu1 %vm3002_vm4, %v3727_v21  ;;  %v3521_v47 = vpop.xlane.xlu1 %3520 }
 0x7d6   :  { %7370 = vmatpush3.bf16.msra.mxu1 %v11733_v53  ;;  %7371 = vmatprep.mubr.msk.bf16.mxu1 %vm8483_vm3, %v11684_v2 }
 0x7d7   :  { %7381 = vmatprep.subr.bf16.mxu1 %v11684_v2 }
 0x7d9   :  { %v3530_v9 = vpop.xlane.xlu0 %3529 }
 0x7da   :  { %8029 = vrcp.f32 %v3530_v9  ;;  %v11739_v9 = vld [vmem:[#allocation97_spill] sm:$0xff] }
 0x7db   :  { %8031 = vrcp.f32 %v3521_v47 }
 0x7dd   :  { %v3524_v63 = vpop.xlane.xlu0 %3523 }
 0x7de   :  { %8033 = vrcp.f32 %v3524_v63 }
 0x7e4   :  { %v8030_v11 = vpop.eup %8029 }
 0x7e5   :  { %v3690_v18 = vmul.f32 %v8030_v11, %v10420_v51  ;;  %v8032_v0 = vpop.eup %8031  ;;  %v11736_v51 = vld [vmem:[#allocation86_spill] sm:$0xff] }
 0x7e6   :  { %v3687_v54 = vmul.f32 %v8032_v0, %v10416_v41 }
 0x7e7   :  { %v3730_v46 = vpack.c.bf16 %v3690_v18, %v3689_v6 }
 0x7e8   :  { %v8034_v1 = vpop.eup %8033 }
 0x7e9   :  { %v3688_v20 = vmul.f32 %v8034_v1, %v10425_v57  ;;  %7378 = vmatmul.mubr.msk.bf16.vlgmr.msra.gmra.mrb[108].mxu0 %vm3002_vm4, %v3730_v46  ;;  %v3539_v59 = vpop.xlane.xlu1 %3538 }
 0x7ea   :  { %7388 = vmatpush3.bf16.msra.mxu0 %v11735_v33  ;;  %7389 = vmatprep.mubr.msk.bf16.mxu0 %vm8483_vm3, %v11684_v2  ;;  %8035 = vrcp.f32 %v3539_v59 }
 0x7eb   :  { %v3729_v16 = vpack.c.bf16 %v3688_v20, %v3687_v54  ;;  %7399 = vmatprep.subr.bf16.mxu0 %v11684_v2 }
 0x7ed   :  { %7372 = vmatmul.mubr.msk.bf16.vlgmr.msra.gmra.mrb[92].mxu1 %vm3002_vm4, %v3729_v16  ;;  %v3533_v41 = vpop.xlane.xlu1 %3532 }
 0x7ee   :  { %7382 = vmatpush3.bf16.msra.mxu1 %v11736_v51  ;;  %7383 = vmatprep.mubr.msk.bf16.mxu1 %vm8483_vm3, %v11684_v2 }
 0x7ef   :  { %7393 = vmatprep.subr.bf16.mxu1 %v11684_v2 }
 0x7f1   :  { %v3542_v57 = vpop.xlane.xlu0 %3541  ;;  %v3551_v23 = vpop.xlane.xlu1 %3550 }
 0x7f2   :  { %8037 = vrcp.f32 %v3542_v57 }
 0x7f3   :  { %8039 = vrcp.f32 %v3533_v41 }
 0x7f4   :  { %v8036_v29 = vpop.eup %8035 }
 0x7f5   :  { %v3536_v14 = vpop.xlane.xlu0 %3535  ;;  %v3545_v43 = vpop.xlane.xlu1 %3544  ;;  %v3693_v8 = vmul.f32 %v8036_v29, %v10452_v4 }
 0x7f6   :  { %8041 = vrcp.f32 %v3536_v14 }
 0x7f7   :  { %8043 = vrcp.f32 %v3551_v23 }
 0x7f9   :  { %v3563_v32 = vpop.xlane.xlu1 %3562 }
 0x7fc   :  { %v8038_v12 = vpop.eup %8037 }
 0x7fd   :  { %v3694_v19 = vmul.f32 %v8038_v12, %v10464_v44  ;;  %v8040_v13 = vpop.eup %8039 }
 0x7fe   :  { %v3691_v24 = vmul.f32 %v8040_v13, %v10458_v45  ;;  %v11738_v45 = vld [vmem:[#allocation88_spill] sm:$0xff] }
 0x7ff   :  { %v3732_v35 = vpack.c.bf16 %v3694_v19, %v3693_v8 }
 0x800   :  { %v8042_v7 = vpop.eup %8041 }
 0x801   :  { %v3554_v31 = vpop.xlane.xlu0 %3553  ;;  %v3692_v62 = vmul.f32 %v8042_v7, %v10475_v48  ;;  %7390 = vmatmul.mubr.msk.bf16.vlgmr.msra.gmra.mrb[96].mxu0 %vm3002_vm4, %v3732_v35  ;;  %v3557_v48 = vpop.xlane.xlu1 %3556 }
 0x802   :  { %8045 = vrcp.f32 %v3554_v31  ;;  %7400 = vmatpush3.bf16.msra.mxu0 %v11737_v38  ;;  %7401 = vmatprep.mubr.msk.bf16.mxu0 %vm8483_vm3, %v11684_v2  ;;  %v8044_v49 = vpop.eup %8043 }
 0x803   :  { %8047 = vrcp.f32 %v3545_v43  ;;  %v3731_v4 = vpack.c.bf16 %v3692_v62, %v3691_v24  ;;  %7411 = vmatprep.subr.bf16.mxu0 %v11684_v2  ;;  %v3697_v3 = vmul.f32 %v8044_v49, %v10462_v25 }
 0x805   :  { %v3548_v44 = vpop.xlane.xlu0 %3547  ;;  %7384 = vmatmul.mubr.msk.bf16.vlgmr.msra.gmra.mrb[80].mxu1 %vm3002_vm4, %v3731_v4 }
 0x806   :  { %8049 = vrcp.f32 %v3548_v44  ;;  %7394 = vmatpush3.bf16.msra.mxu1 %v11738_v45  ;;  %7395 = vmatprep.mubr.msk.bf16.mxu1 %vm8483_vm3, %v11684_v2 }
 0x807   :  { %8051 = vrcp.f32 %v3563_v32  ;;  %7405 = vmatprep.subr.bf16.mxu1 %v11684_v2 }
 0x809   :  { %v3566_v60 = vpop.xlane.xlu0 %3565 }
 0x80a   :  { %8053 = vrcp.f32 %v3566_v60 }
 0x80b   :  { %8055 = vrcp.f32 %v3557_v48 }
 0x80c   :  { %v8046_v39 = vpop.eup %8045 }
 0x80d   :  { %v3698_v56 = vmul.f32 %v8046_v39, %v10507_v42  ;;  %v3560_v58 = vpop.xlane.xlu0 %3559  ;;  %v8048_v37 = vpop.eup %8047 }
 0x80e   :  { %8057 = vrcp.f32 %v3560_v58  ;;  %v3695_v34 = vmul.f32 %v8048_v37, %v10470_v5 }
 0x80f   :  { %v3734_v27 = vpack.c.bf16 %v3698_v56, %v3697_v3 }
 0x810   :  { %v8050_v17 = vpop.eup %8049 }
 0x811   :  { %v3696_v21 = vmul.f32 %v8050_v17, %v10514_v55  ;;  %v3575_v40 = vpop.xlane.xlu1 %3574  ;;  %7402 = vmatmul.mubr.msk.bf16.vlgmr.msra.gmra.mrb[100].mxu0 %vm3002_vm4, %v3734_v27  ;;  %v3578_v53 = vpop.xlane.xlu0 %3577 }
 0x812   :  { %v8052_v47 = vpop.eup %8051  ;;  %8059 = vrcp.f32 %v3575_v40  ;;  %7412 = vmatpush3.bf16.msra.mxu0 %v11739_v9  ;;  %7413 = vmatprep.mubr.msk.bf16.mxu0 %vm8483_vm3, %v11684_v2 }
 0x813   :  { %8061 = vrcp.f32 %v3578_v53  ;;  %v3733_v25 = vpack.c.bf16 %v3696_v21, %v3695_v34  ;;  %7423 = vmatprep.subr.bf16.mxu0 %v11684_v2  ;;  %v3701_v5 = vmul.f32 %v8052_v47, %v10481_v36 }
 0x814   :  { %v8054_v42 = vpop.eup %8053 }
 0x815   :  { %v3702_v55 = vmul.f32 %v8054_v42, %v10519_v52  ;;  %v3569_v63 = vpop.xlane.xlu1 %3568  ;;  %7396 = vmatmul.mubr.msk.bf16.vlgmr.msra.gmra.mrb[84].mxu1 %vm3002_vm4, %v3733_v25  ;;  %v3572_v26 = vpop.xlane.xlu0 %3571 }
 0x816   :  { %v8056_v11 = vpop.eup %8055  ;;  %8063 = vrcp.f32 %v3569_v63  ;;  %7406 = vmatpush3.bf16.msra.mxu1 %v11740_v50  ;;  %7407 = vmatprep.mubr.msk.bf16.mxu1 %vm8483_vm3, %v11684_v2 }
 0x817   :  { %8065 = vrcp.f32 %v3572_v26  ;;  %v3736_v6 = vpack.c.bf16 %v3702_v55, %v3701_v5  ;;  %7417 = vmatprep.subr.bf16.mxu1 %v11684_v2  ;;  %v3699_v36 = vmul.f32 %v8056_v11, %v10490_v61 }
 0x818   :  { %v8058_v18 = vpop.eup %8057 }
 0x819   :  { %v3700_v52 = vmul.f32 %v8058_v18, %v10524_v10  ;;  %v5229_v0 = vpop.permute.xlu1 %5228  ;;  %7414 = vmatmul.mubr.msk.bf16.vlgmr.msra.gmra.mrb[104].mxu0 %vm3002_vm4, %v3736_v6  ;;  %v5181_v33 = vpop.permute.xlu0 %5180 }
 0x81a   :  { %7424 = vmatpush3.bf16.msra.mxu0 %v5229_v0  ;;  %7425 = vmatprep.mubr.msk.bf16.mxu0 %vm8483_vm3, %v11684_v2 }
 0x81b   :  { %v3735_v46 = vpack.c.bf16 %v3700_v52, %v3699_v36 }
 0x81c   :  { %v8060_v1 = vpop.eup %8059 }
 0x81d   :  { %v8062_v54 = vpop.eup %8061  ;;  %v3705_v20 = vmul.f32 %v8060_v1, %v10530_v15  ;;  %7408 = vmatmul.mubr.msk.bf16.vlgmr.msra.gmra.mrb[88].mxu1 %vm3002_vm4, %v3735_v46 }
 0x81e   :  { %v3706_v59 = vmul.f32 %v8062_v54, %v10528_v22  ;;  %7418 = vmatpush3.bf16.msra.mxu1 %v5181_v33  ;;  %7419 = vmatprep.mubr.msk.bf16.mxu1 %vm8483_vm3, %v11684_v2 }
 0x820   :  { %v8064_v61 = vpop.eup %8063  ;;  %v3738_v10 = vpack.c.bf16 %v3706_v59, %v3705_v20 }
 0x821   :  { %v8066_v16 = vpop.eup %8065  ;;  %v3703_v51 = vmul.f32 %v8064_v61, %v10536_v28 }
 0x822   :  { %v3704_v41 = vmul.f32 %v8066_v16, %v10538_v30  ;;  %7426 = vmatmul.mubr.msk.bf16.vlgmr.msra.gmra.mrb[108].mxu0 %vm3002_vm4, %v3738_v10 }
 0x824   :  { %v3737_v57 = vpack.c.bf16 %v3704_v41, %v3703_v51 }
 0x826   :  { %7420 = vmatmul.mubr.msk.bf16.vlgmr.msra.gmra.mrb[92].mxu1 %vm3002_vm4, %v3737_v57 }
 0x8d4   :  { %v10708_v15 = vpop.f32.mrb[96].mxu0 }
 0x8d5   :  { %v7391_v14 = vpop.f32.mrb[97].mxu0  ;;  %v5331_v19 = vsel %vm892_vm2, %v10708_v15, 0.0 }
 0x8d6   :  { %v10710_v22 = vpop.f32.mrb[98].mxu0 }
 0x8d7   :  { %v7392_v23 = vpop.f32.mrb[99].mxu0  ;;  %v5334_v13 = vsel %vm892_vm2, %v10710_v22, 0.0 }
 0x8d8   :  { %v10712_v29 = vpop.f32.mrb[80].mxu1 }
 0x8d9   :  { %v7385_v12 = vpop.f32.mrb[81].mxu1  ;;  %v5325_v43 = vsel %vm892_vm2, %v10712_v29, 0.0 }
 0x8da   :  { %5326 = vadd.xlane.f32.xlu0 %v5325_v43  ;;  %v4935_v28 = vpop.f32.mrb[82].mxu1 }
 0x8db   :  { %v7386_v30 = vpop.f32.mrb[83].mxu1  ;;  %v5328_v8 = vsel %vm892_vm2, %v4935_v28, 0.0 }
 0x8dc   :  { %5329 = vadd.xlane.f32.xlu1 %v5328_v8 }
 0x8de   :  { %5332 = vadd.xlane.f32.xlu0 %v5331_v19 }
 0x8e2   :  { %5335 = vadd.xlane.f32.xlu0 %v5334_v13 }
 0x8e4   :  { %v10721_v35 = vpop.f32.mrb[100].mxu0 }
 0x8e5   :  { %v7403_v7 = vpop.f32.mrb[101].mxu0  ;;  %v5343_v49 = vsel %vm892_vm2, %v10721_v35, 0.0 }
 0x8e6   :  { %v10723_v31 = vpop.f32.mrb[102].mxu0 }
 0x8e7   :  { %v7404_v24 = vpop.f32.mrb[103].mxu0  ;;  %v5346_v56 = vsel %vm892_vm2, %v10723_v31, 0.0 }
 0x8e8   :  { %v10725_v62 = vpop.f32.mrb[84].mxu1 }
 0x8e9   :  { %v7397_v32 = vpop.f32.mrb[85].mxu1  ;;  %v5337_v38 = vsel %vm892_vm2, %v10725_v62, 0.0 }
 0x8ea   :  { %5338 = vadd.xlane.f32.xlu1 %v5337_v38  ;;  %v10729_v4 = vpop.f32.mrb[86].mxu1 }
 0x8eb   :  { %v7398_v44 = vpop.f32.mrb[87].mxu1  ;;  %v5340_v45 = vsel %vm892_vm2, %v10729_v4, 0.0 }
 0x8ec   :  { %5341 = vadd.xlane.f32.xlu0 %v5340_v45  ;;  %v10733_v48 = vpop.f32.mrb[104].mxu0 }
 0x8ed   :  { %v7415_v60 = vpop.f32.mrb[105].mxu0  ;;  %v5355_v53 = vsel %vm892_vm2, %v10733_v48, 0.0 }
 0x8ee   :  { %5344 = vadd.xlane.f32.xlu1 %v5343_v49  ;;  %v10737_v39 = vpop.f32.mrb[106].mxu0 }
 0x8ef   :  { %v7416_v3 = vpop.f32.mrb[107].mxu0  ;;  %v5358_v25 = vsel %vm892_vm2, %v10737_v39, 0.0 }
 0x8f0   :  { %5347 = vadd.xlane.f32.xlu0 %v5346_v56  ;;  %v10741_v58 = vpop.f32.mrb[88].mxu1 }
 0x8f1   :  { %v7409_v37 = vpop.f32.mrb[89].mxu1  ;;  %v5349_v27 = vsel %vm892_vm2, %v10741_v58, 0.0 }
 0x8f2   :  { %5350 = vadd.xlane.f32.xlu1 %v5349_v27  ;;  %v10745_v17 = vpop.f32.mrb[90].mxu1 }
 0x8f3   :  { %v7410_v34 = vpop.f32.mrb[91].mxu1  ;;  %v5352_v21 = vsel %vm892_vm2, %v10745_v17, 0.0 }
 0x8f4   :  { %5353 = vadd.xlane.f32.xlu0 %v5352_v21 }
 0x8f5   :  { %v10749_v40 = vpop.f32.mrb[108].mxu0 }
 0x8f6   :  { %v7427_v47 = vpop.f32.mrb[109].mxu0  ;;  %5356 = vadd.xlane.f32.xlu1 %v5355_v53  ;;  %v5367_v6 = vsel %vm892_vm2, %v10749_v40, 0.0 }
 0x8f7   :  { %v10753_v9 = vpop.f32.mrb[110].mxu0 }
 0x8f8   :  { %v7428_v42 = vpop.f32.mrb[111].mxu0  ;;  %5359 = vadd.xlane.f32.xlu0 %v5358_v25  ;;  %v5370_v18 = vsel %vm892_vm2, %v10753_v9, 0.0 }
 0x8f9   :  { %v10757_v5 = vpop.f32.mrb[92].mxu1 }
 0x8fa   :  { %v7421_v55 = vpop.f32.mrb[93].mxu1  ;;  %v5361_v63 = vsel %vm892_vm2, %v10757_v5, 0.0 }
 0x8fb   :  { %5362 = vadd.xlane.f32.xlu1 %v5361_v63  ;;  %v10761_v26 = vpop.f32.mrb[94].mxu1 }
 0x8fc   :  { %v7422_v11 = vpop.f32.mrb[95].mxu1  ;;  %v5364_v50 = vsel %vm892_vm2, %v10761_v26, 0.0 }
 0x8fd   :  { %5365 = vadd.xlane.f32.xlu0 %v5364_v50 }
 0x8ff   :  { %5368 = vadd.xlane.f32.xlu1 %v5367_v6 }
 0x901   :  { %5371 = vadd.xlane.f32.xlu0 %v5370_v18 }
 0x967   :  { %v5327_v36 = vpop.xlane.xlu0 %5326 }
 0x968   :  { %v5374_v52 = vmul.f32 0.03125, %v5327_v36 }
 0x969   :  { %v5330_v0 = vpop.xlane.xlu1 %5329 }
 0x96a   :  { %v10770_v46 = vsub.f32 %v10712_v29, %v5374_v52  ;;  %v5375_v1 = vmul.f32 0.03125, %v5330_v0 }
 0x96b   :  { %v5333_v54 = vpop.xlane.xlu0 %5332 }
 0x96c   :  { %v10772_v20 = vsub.f32 %v4935_v28, %v5375_v1  ;;  %v5376_v33 = vmul.f32 0.03125, %v5333_v54  ;;  %v5406_v59 = vmul.f32 %v10770_v46, %v10770_v46 }
 0x96e   :  { %v10777_v61 = vsub.f32 %v10708_v15, %v5376_v33  ;;  %v5422_v10 = vsel %vm892_vm2, %v5406_v59, 0.0  ;;  %v5407_v16 = vmul.f32 %v10772_v20, %v10772_v20 }
 0x96f   :  { %5423 = vadd.xlane.f32.xlu1 %v5422_v10  ;;  %v5336_v51 = vpop.xlane.xlu0 %5335 }
 0x970   :  { %v5377_v41 = vmul.f32 0.03125, %v5336_v51  ;;  %v5425_v57 = vsel %vm892_vm2, %v5407_v16, 0.0  ;;  %v5408_v14 = vmul.f32 %v10777_v61, %v10777_v61 }
 0x971   :  { %5426 = vadd.xlane.f32.xlu0 %v5425_v57 }
 0x972   :  { %v10786_v23 = vsub.f32 %v10710_v22, %v5377_v41  ;;  %v5428_v15 = vsel %vm892_vm2, %v5408_v14, 0.0 }
 0x973   :  { %5429 = vadd.xlane.f32.xlu1 %v5428_v15 }
 0x974   :  { %v5409_v29 = vmul.f32 %v10786_v23, %v10786_v23 }
 0x976   :  { %v5431_v43 = vsel %vm892_vm2, %v5409_v29, 0.0 }
 0x977   :  { %v5339_v12 = vpop.xlane.xlu1 %5338  ;;  %5432 = vadd.xlane.f32.xlu0 %v5431_v43 }
 0x978   :  { %v5378_v28 = vmul.f32 0.03125, %v5339_v12 }
 0x979   :  { %v5342_v30 = vpop.xlane.xlu0 %5341 }
 0x97a   :  { %v10793_v8 = vsub.f32 %v10725_v62, %v5378_v28  ;;  %v5379_v19 = vmul.f32 0.03125, %v5342_v30 }
 0x97b   :  { %v5345_v13 = vpop.xlane.xlu1 %5344 }
 0x97c   :  { %v10796_v22 = vsub.f32 %v10729_v4, %v5379_v19  ;;  %v5380_v7 = vmul.f32 0.03125, %v5345_v13  ;;  %v5410_v24 = vmul.f32 %v10793_v8, %v10793_v8 }
 0x97d   :  { %v5348_v32 = vpop.xlane.xlu0 %5347 }
 0x97e   :  { %v10801_v38 = vsub.f32 %v10721_v35, %v5380_v7  ;;  %v5381_v44 = vmul.f32 0.03125, %v5348_v32  ;;  %v5434_v45 = vsel %vm892_vm2, %v5410_v24, 0.0  ;;  %v5411_v62 = vmul.f32 %v10796_v22, %v10796_v22 }
 0x97f   :  { %v5351_v60 = vpop.xlane.xlu1 %5350  ;;  %5435 = vadd.xlane.f32.xlu1 %v5434_v45 }
 0x980   :  { %v10807_v49 = vsub.f32 %v10723_v31, %v5381_v44  ;;  %v5382_v4 = vmul.f32 0.03125, %v5351_v60  ;;  %v5437_v3 = vsel %vm892_vm2, %v5411_v62, 0.0  ;;  %v5412_v56 = vmul.f32 %v10801_v38, %v10801_v38 }
 0x981   :  { %5438 = vadd.xlane.f32.xlu0 %v5437_v3  ;;  %v5354_v35 = vpop.xlane.xlu0 %5353 }
 0x982   :  { %v10813_v37 = vsub.f32 %v10741_v58, %v5382_v4  ;;  %v5383_v27 = vmul.f32 0.03125, %v5354_v35  ;;  %v5440_v34 = vsel %vm892_vm2, %v5412_v56, 0.0  ;;  %v5413_v21 = vmul.f32 %v10807_v49, %v10807_v49  ;;  %v10864_v35 = vld [vmem:[#allocation10 + $0x1] ss:$0 sm:$0xff] }
 0x983   :  { %v5357_v53 = vpop.xlane.xlu1 %5356  ;;  %5441 = vadd.xlane.f32.xlu1 %v5440_v34 }
 0x984   :  { %v10819_v31 = vsub.f32 %v10745_v17, %v5383_v27  ;;  %v5384_v47 = vmul.f32 0.03125, %v5357_v53  ;;  %v5443_v25 = vsel %vm892_vm2, %v5413_v21, 0.0  ;;  %v5414_v42 = vmul.f32 %v10813_v37, %v10813_v37 }
 0x985   :  { %5444 = vadd.xlane.f32.xlu0 %v5443_v25  ;;  %v5360_v58 = vpop.xlane.xlu0 %5359 }
 0x986   :  { %v10825_v55 = vsub.f32 %v10733_v48, %v5384_v47  ;;  %v5385_v63 = vmul.f32 0.03125, %v5360_v58  ;;  %v5446_v11 = vsel %vm892_vm2, %v5414_v42, 0.0  ;;  %v5415_v50 = vmul.f32 %v10819_v31, %v10819_v31  ;;  %v10867_v47 = vld [vmem:[#allocation10 + $0x2] ss:$0 sm:$0xff] }
 0x987   :  { %5447 = vadd.xlane.f32.xlu1 %v5446_v11 }
 0x988   :  { %v10831_v17 = vsub.f32 %v10737_v39, %v5385_v63  ;;  %v5363_v6 = vpop.xlane.xlu1 %5362  ;;  %v5449_v18 = vsel %vm892_vm2, %v5415_v50, 0.0  ;;  %v5416_v36 = vmul.f32 %v10825_v55, %v10825_v55 }
 0x989   :  { %v5386_v52 = vmul.f32 0.03125, %v5363_v6  ;;  %5450 = vadd.xlane.f32.xlu0 %v5449_v18 }
 0x98a   :  { %v5366_v48 = vpop.xlane.xlu0 %5365  ;;  %v5452_v0 = vsel %vm892_vm2, %v5416_v36, 0.0  ;;  %v5417_v1 = vmul.f32 %v10831_v17, %v10831_v17 }
 0x98b   :  { %v10840_v54 = vsub.f32 %v10757_v5, %v5386_v52  ;;  %v5387_v33 = vmul.f32 0.03125, %v5366_v48  ;;  %5453 = vadd.xlane.f32.xlu1 %v5452_v0 }
 0x98c   :  { %v5369_v39 = vpop.xlane.xlu1 %5368  ;;  %v5455_v59 = vsel %vm892_vm2, %v5417_v1, 0.0 }
 0x98d   :  { %v10844_v10 = vsub.f32 %v10761_v26, %v5387_v33  ;;  %v5388_v16 = vmul.f32 0.03125, %v5369_v39  ;;  %5456 = vadd.xlane.f32.xlu0 %v5455_v59  ;;  %v5418_v51 = vmul.f32 %v10840_v54, %v10840_v54  ;;  %v11741_v33 = vld [vmem:[#allocation33_spill] sm:$0xff] }
 0x98e   :  { %v5372_v41 = vpop.xlane.xlu0 %5371 }
 0x98f   :  { %v10849_v57 = vsub.f32 %v10749_v40, %v5388_v16  ;;  %v5389_v14 = vmul.f32 0.03125, %v5372_v41  ;;  %v5458_v5 = vsel %vm892_vm2, %v5418_v51, 0.0  ;;  %v5419_v15 = vmul.f32 %v10844_v10, %v10844_v10 }
 0x990   :  { %5459 = vadd.xlane.f32.xlu1 %v5458_v5 }
 0x991   :  { %v10855_v29 = vsub.f32 %v10753_v9, %v5389_v14  ;;  %v5461_v26 = vsel %vm892_vm2, %v5419_v15, 0.0  ;;  %v5420_v12 = vmul.f32 %v10849_v57, %v10849_v57  ;;  %v11742_v15 = vld [vmem:[#allocation34_spill] sm:$0xff] }
 0x992   :  { %5462 = vadd.xlane.f32.xlu0 %v5461_v26 }
 0x993   :  { %v5464_v43 = vsel %vm892_vm2, %v5420_v12, 0.0  ;;  %v5421_v40 = vmul.f32 %v10855_v29, %v10855_v29 }
 0x994   :  { %5465 = vadd.xlane.f32.xlu1 %v5464_v43 }
 0x995   :  { %v5467_v28 = vsel %vm892_vm2, %v5421_v40, 0.0 }
 0x996   :  { %5468 = vadd.xlane.f32.xlu0 %v5467_v28 }
 0x9fc   :  { %v5424_v30 = vpop.xlane.xlu1 %5423 }
 0x9fd   :  { %v5470_v19 = vmul.f32 0.03125, %v5424_v30 }
 0x9fe   :  { %v5427_v13 = vpop.xlane.xlu0 %5426 }
 0x9ff   :  { %v5486_v9 = vadd.f32 1e-05, %v5470_v19  ;;  %v5471_v7 = vmul.f32 0.03125, %v5427_v13  ;;  %v11743_v13 = vld [vmem:[#allocation31_spill] sm:$0xff] }
 0xa00   :  { %v5430_v24 = vpop.xlane.xlu1 %5429 }
 0xa01   :  { %8067 = vrsqrt.f32 %v5486_v9  ;;  %v5487_v32 = vadd.f32 1e-05, %v5471_v7  ;;  %v5472_v44 = vmul.f32 0.03125, %v5430_v24 }
 0xa03   :  { %8069 = vrsqrt.f32 %v5487_v32  ;;  %v5488_v45 = vadd.f32 1e-05, %v5472_v44 }
 0xa04   :  { %v5433_v62 = vpop.xlane.xlu0 %5432 }
 0xa05   :  { %8071 = vrsqrt.f32 %v5488_v45  ;;  %v5473_v60 = vmul.f32 0.03125, %v5433_v62 }
 0xa07   :  { %v5489_v4 = vadd.f32 1e-05, %v5473_v60 }
 0xa09   :  { %8073 = vrsqrt.f32 %v5489_v4 }
 0xa0b   :  { %v8068_v3 = vpop.eup %8067 }
 0xa0c   :  { %v5436_v56 = vpop.xlane.xlu1 %5435  ;;  %v5518_v34 = vmul.f32 %v8068_v3, %v10770_v46  ;;  %v11744_v3 = vld [vmem:[#allocation32_spill] sm:$0xff] }
 0xa0d   :  { %v5474_v27 = vmul.f32 0.03125, %v5436_v56  ;;  %v8070_v21 = vpop.eup %8069 }
 0xa0e   :  { %v5439_v53 = vpop.xlane.xlu0 %5438  ;;  %v5538_v58 = vmul.f32 %v10864_v35, %v5518_v34  ;;  %v5519_v63 = vmul.f32 %v8070_v21, %v10772_v20 }
 0xa0f   :  { %v5490_v25 = vadd.f32 1e-05, %v5474_v27  ;;  %v5475_v42 = vmul.f32 0.03125, %v5439_v53  ;;  %v8072_v11 = vpop.eup %8071 }
 0xa10   :  { %v5442_v50 = vpop.xlane.xlu1 %5441  ;;  %v5558_v36 = vadd.f32 %v10867_v47, %v5538_v58  ;;  %v5539_v46 = vmul.f32 %v10864_v35, %v5519_v63  ;;  %v5520_v48 = vmul.f32 %v8072_v11, %v10777_v61 }
 0xa11   :  { %8075 = vrsqrt.f32 %v5490_v25  ;;  %v5491_v6 = vadd.f32 1e-05, %v5475_v42  ;;  %v5476_v18 = vmul.f32 0.03125, %v5442_v50 }
 0xa12   :  { %v5445_v52 = vpop.xlane.xlu0 %5444  ;;  %v10875_v39 = vadd.f32 %v5558_v36, %v11741_v33  ;;  %v5559_v16 = vadd.f32 %v10867_v47, %v5539_v46  ;;  %v5540_v51 = vmul.f32 %v10864_v35, %v5520_v48  ;;  %v11745_v33 = vld [vmem:[#allocation35_spill] sm:$0xff] }
 0xa13   :  { %8077 = vrsqrt.f32 %v5491_v6  ;;  %v5492_v0 = vadd.f32 1e-05, %v5476_v18  ;;  %v5477_v1 = vmul.f32 0.03125, %v5445_v52  ;;  %v8074_v59 = vpop.eup %8073 }
 0xa14   :  { %v5448_v20 = vpop.xlane.xlu1 %5447  ;;  %v5592_v5 = vsel %vm892_vm2, %v10875_v39, 0.0  ;;  %v10882_v26 = vadd.f32 %v5559_v16, %v11742_v15  ;;  %v5560_v12 = vadd.f32 %v10867_v47, %v5540_v51  ;;  %v5521_v43 = vmul.f32 %v8074_v59, %v10786_v23  ;;  %v11746_v15 = vld [vmem:[#allocation36_spill] sm:$0xff] }
 0xa15   :  { %8079 = vrsqrt.f32 %v5492_v0  ;;  %v5493_v41 = vadd.f32 1e-05, %v5477_v1  ;;  %v5478_v14 = vmul.f32 0.03125, %v5448_v20  ;;  %5593 = vadd.xlane.f32.xlu1 %v5592_v5 }
 0xa16   :  { %v5451_v61 = vpop.xlane.xlu0 %5450  ;;  %v5595_v30 = vsel %vm892_vm2, %v10882_v26, 0.0  ;;  %v10889_v9 = vadd.f32 %v5560_v12, %v11743_v13  ;;  %v5541_v7 = vmul.f32 %v10864_v35, %v5521_v43 }
 0xa17   :  { %8081 = vrsqrt.f32 %v5493_v41  ;;  %v5494_v40 = vadd.f32 1e-05, %v5478_v14  ;;  %v5479_v28 = vmul.f32 0.03125, %v5451_v61  ;;  %5596 = vadd.xlane.f32.xlu0 %v5595_v30 }
 0xa18   :  { %v5454_v19 = vpop.xlane.xlu1 %5453  ;;  %v5598_v44 = vsel %vm892_vm2, %v10889_v9, 0.0  ;;  %v5561_v45 = vadd.f32 %v10867_v47, %v5541_v7  ;;  %v11747_v7 = vld [vmem:[#allocation37_spill] sm:$0xff] }
 0xa19   :  { %8083 = vrsqrt.f32 %v5494_v40  ;;  %v5495_v24 = vadd.f32 1e-05, %v5479_v28  ;;  %v5480_v32 = vmul.f32 0.03125, %v5454_v19  ;;  %5599 = vadd.xlane.f32.xlu1 %v5598_v44 }
 0xa1a   :  { %v5457_v23 = vpop.xlane.xlu0 %5456  ;;  %v10896_v56 = vadd.f32 %v5561_v45, %v11744_v3 }
 0xa1b   :  { %v8076_v62 = vpop.eup %8075  ;;  %8085 = vrsqrt.f32 %v5495_v24  ;;  %v5496_v60 = vadd.f32 1e-05, %v5480_v32  ;;  %v5481_v4 = vmul.f32 0.03125, %v5457_v23 }
 0xa1c   :  { %v5522_v27 = vmul.f32 %v8076_v62, %v10793_v8  ;;  %v5601_v42 = vsel %vm892_vm2, %v10896_v56, 0.0  ;;  %v11748_v62 = vld [vmem:[#allocation38_spill] sm:$0xff] }
 0xa1d   :  { %v8078_v34 = vpop.eup %8077  ;;  %8087 = vrsqrt.f32 %v5496_v60  ;;  %v5497_v21 = vadd.f32 1e-05, %v5481_v4  ;;  %v5460_v53 = vpop.xlane.xlu1 %5459  ;;  %5602 = vadd.xlane.f32.xlu0 %v5601_v42  ;;  %v11750_v42 = vld [vmem:[#allocation41_spill] sm:$0xff] }
 0xa1e   :  { %v5482_v25 = vmul.f32 0.03125, %v5460_v53  ;;  %v5542_v58 = vmul.f32 %v10864_v35, %v5522_v27  ;;  %v5523_v63 = vmul.f32 %v8078_v34, %v10796_v22 }
 0xa1f   :  { %v8080_v11 = vpop.eup %8079  ;;  %8089 = vrsqrt.f32 %v5497_v21  ;;  %v5463_v50 = vpop.xlane.xlu0 %5462 }
 0xa20   :  { %v5498_v6 = vadd.f32 1e-05, %v5482_v25  ;;  %v5483_v18 = vmul.f32 0.03125, %v5463_v50  ;;  %v5562_v8 = vadd.f32 %v10867_v47, %v5542_v58  ;;  %v5543_v36 = vmul.f32 %v10864_v35, %v5523_v63 }
 0xa21   :  { %v8082_v52 = vpop.eup %8081  ;;  %v5466_v46 = vpop.xlane.xlu1 %5465  ;;  %v5524_v48 = vmul.f32 %v8080_v11, %v10801_v38 }
 0xa22   :  { %8091 = vrsqrt.f32 %v5498_v6  ;;  %v5499_v0 = vadd.f32 1e-05, %v5483_v18  ;;  %v5484_v1 = vmul.f32 0.03125, %v5466_v46  ;;  %v10907_v59 = vadd.f32 %v5562_v8, %v11745_v33  ;;  %v11751_v8 = vld [vmem:[#allocation42_spill] sm:$0xff] }
 0xa23   :  { %v8084_v22 = vpop.eup %8083  ;;  %v5469_v20 = vpop.xlane.xlu0 %5468  ;;  %v5563_v16 = vadd.f32 %v10867_v47, %v5543_v36  ;;  %v5544_v51 = vmul.f32 %v10864_v35, %v5524_v48  ;;  %v5525_v41 = vmul.f32 %v8082_v52, %v10807_v49 }
 0xa24   :  { %8093 = vrsqrt.f32 %v5499_v0  ;;  %v5500_v14 = vadd.f32 1e-05, %v5484_v1  ;;  %v5485_v5 = vmul.f32 0.03125, %v5469_v20  ;;  %v5604_v38 = vsel %vm892_vm2, %v10907_v59, 0.0 }
 0xa25   :  { %v8086_v61 = vpop.eup %8085  ;;  %5605 = vadd.xlane.f32.xlu1 %v5604_v38  ;;  %v10915_v12 = vadd.f32 %v5563_v16, %v11746_v15  ;;  %v5564_v43 = vadd.f32 %v10867_v47, %v5544_v51  ;;  %v5545_v40 = vmul.f32 %v10864_v35, %v5525_v41  ;;  %v5526_v28 = vmul.f32 %v8084_v22, %v10813_v37 }
 0xa26   :  { %8095 = vrsqrt.f32 %v5500_v14  ;;  %v5501_v30 = vadd.f32 1e-05, %v5485_v5  ;;  %v5527_v49 = vmul.f32 %v8086_v61, %v10819_v31 }
 0xa27   :  { %v8088_v19 = vpop.eup %8087  ;;  %v5607_v13 = vsel %vm892_vm2, %v10915_v12, 0.0  ;;  %v10924_v24 = vadd.f32 %v5564_v43, %v11747_v7  ;;  %v5565_v32 = vadd.f32 %v10867_v47, %v5545_v40  ;;  %v5546_v44 = vmul.f32 %v10864_v35, %v5526_v28  ;;  %v11754_v43 = vld [vmem:[#allocation46_spill] sm:$0xff]  ;;  %v11756_v7 = vld [vmem:[#allocation43_spill] sm:$0xff] }
 0xa28   :  { %8097 = vrsqrt.f32 %v5501_v30  ;;  %5608 = vadd.xlane.f32.xlu0 %v5607_v13  ;;  %v5547_v23 = vmul.f32 %v10864_v35, %v5527_v49  ;;  %v5528_v37 = vmul.f32 %v8088_v19, %v10825_v55  ;;  %v11749_v55 = vld [vmem:[#allocation39_spill] sm:$0xff]  ;;  %v11755_v49 = vld [vmem:[#allocation45_spill] sm:$0xff] }
 0xa29   :  { %v8090_v45 = vpop.eup %8089  ;;  %v5610_v31 = vsel %vm892_vm2, %v10924_v24, 0.0  ;;  %v10933_v60 = vadd.f32 %v5565_v32, %v11748_v62  ;;  %v5566_v4 = vadd.f32 %v10867_v47, %v5546_v44 }
 0xa2a   :  { %5611 = vadd.xlane.f32.xlu1 %v5610_v31  ;;  %v5567_v3 = vadd.f32 %v10867_v47, %v5547_v23  ;;  %v5548_v27 = vmul.f32 %v10864_v35, %v5528_v37  ;;  %v5529_v34 = vmul.f32 %v8090_v45, %v10831_v17 }
 0xa2b   :  { %v5613_v21 = vsel %vm892_vm2, %v10933_v60, 0.0  ;;  %v10942_v53 = vadd.f32 %v5566_v4, %v11749_v55 }
 0xa2c   :  { %v8092_v25 = vpop.eup %8091  ;;  %5614 = vadd.xlane.f32.xlu0 %v5613_v21  ;;  %v10945_v58 = vadd.f32 %v5567_v3, %v11750_v42  ;;  %v5568_v63 = vadd.f32 %v10867_v47, %v5548_v27  ;;  %v5549_v11 = vmul.f32 %v10864_v35, %v5529_v34 }
 0xa2d   :  { %v5616_v50 = vsel %vm892_vm2, %v10942_v53, 0.0  ;;  %v5530_v17 = vmul.f32 %v8092_v25, %v10840_v54  ;;  %v11752_v54 = vld [vmem:[#allocation40_spill] sm:$0xff] }
 0xa2e   :  { %v8094_v6 = vpop.eup %8093  ;;  %5617 = vadd.xlane.f32.xlu1 %v5616_v50  ;;  %v5619_v18 = vsel %vm892_vm2, %v10945_v58, 0.0  ;;  %v10955_v36 = vadd.f32 %v5568_v63, %v11751_v8  ;;  %v5569_v52 = vadd.f32 %v10867_v47, %v5549_v11 }
 0xa2f   :  { %v5550_v46 = vmul.f32 %v10864_v35, %v5530_v17  ;;  %v5531_v48 = vmul.f32 %v8094_v6, %v10844_v10  ;;  %v11753_v10 = vld [vmem:[#allocation44_spill] sm:$0xff] }
 0xa30   :  { %v8096_v0 = vpop.eup %8095  ;;  %5620 = vadd.xlane.f32.xlu0 %v5619_v18  ;;  %v5622_v1 = vsel %vm892_vm2, %v10955_v36, 0.0  ;;  %v10963_v33 = vadd.f32 %v5569_v52, %v11752_v54 }
 0xa31   :  { %v5570_v22 = vadd.f32 %v10867_v47, %v5550_v46  ;;  %v5551_v20 = vmul.f32 %v10864_v35, %v5531_v48  ;;  %v5532_v16 = vmul.f32 %v8096_v0, %v10849_v57 }
 0xa32   :  { %v8098_v51 = vpop.eup %8097  ;;  %5623 = vadd.xlane.f32.xlu1 %v5622_v1  ;;  %v5625_v41 = vsel %vm892_vm2, %v10963_v33, 0.0 }
 0xa33   :  { %v10971_v14 = vadd.f32 %v5570_v22, %v11753_v10  ;;  %v5571_v5 = vadd.f32 %v10867_v47, %v5551_v20  ;;  %v5552_v38 = vmul.f32 %v10864_v35, %v5532_v16  ;;  %v5533_v61 = vmul.f32 %v8098_v51, %v10855_v29 }
 0xa34   :  { %5626 = vadd.xlane.f32.xlu0 %v5625_v41 }
 0xa35   :  { %v5628_v15 = vsel %vm892_vm2, %v10971_v14, 0.0  ;;  %v10979_v57 = vadd.f32 %v5571_v5, %v11754_v43  ;;  %v5572_v40 = vadd.f32 %v10867_v47, %v5552_v38  ;;  %v5553_v28 = vmul.f32 %v10864_v35, %v5533_v61 }
 0xa36   :  { %5629 = vadd.xlane.f32.xlu1 %v5628_v15 }
 0xa37   :  { %v5631_v30 = vsel %vm892_vm2, %v10979_v57, 0.0  ;;  %v10986_v19 = vadd.f32 %v5572_v40, %v11755_v49  ;;  %v5573_v29 = vadd.f32 %v10867_v47, %v5553_v28 }
 0xa38   :  { %5632 = vadd.xlane.f32.xlu0 %v5631_v30 }
 0xa39   :  { %v5634_v13 = vsel %vm892_vm2, %v10986_v19, 0.0  ;;  %v10992_v32 = vadd.f32 %v5573_v29, %v11756_v7 }
 0xa3a   :  { %5635 = vadd.xlane.f32.xlu1 %v5634_v13 }
 0xa3b   :  { %v5637_v35 = vsel %vm892_vm2, %v10992_v32, 0.0 }
 0xa3c   :  { %5638 = vadd.xlane.f32.xlu0 %v5637_v35 }
 0xaa2   :  { %v5594_v44 = vpop.xlane.xlu1 %5593 }
 0xaa3   :  { %v5640_v23 = vmul.f32 0.03125, %v5594_v44 }
 0xaa4   :  { %v5597_v45 = vpop.xlane.xlu0 %5596 }
 0xaa5   :  { %v10997_v37 = vsub.f32 %v10875_v39, %v5640_v23  ;;  %v5641_v31 = vmul.f32 0.03125, %v5597_v45 }
 0xaa6   :  { %v5600_v47 = vpop.xlane.xlu1 %5599 }
 0xaa7   :  { %v5672_v62 = vmul.f32 %v10997_v37, %v10997_v37  ;;  %v11002_v4 = vsub.f32 %v10882_v26, %v5641_v31  ;;  %v5642_v3 = vmul.f32 0.03125, %v5600_v47 }
 0xaa9   :  { %v5688_v27 = vsel %vm892_vm2, %v5672_v62, 0.0  ;;  %v11006_v34 = vsub.f32 %v10889_v9, %v5642_v3  ;;  %v5673_v39 = vmul.f32 %v11002_v4, %v11002_v4 }
 0xaaa   :  { %5689 = vadd.xlane.f32.xlu1 %v5688_v27  ;;  %v5603_v21 = vpop.xlane.xlu0 %5602 }
 0xaab   :  { %v5643_v55 = vmul.f32 0.03125, %v5603_v21  ;;  %v5691_v25 = vsel %vm892_vm2, %v5673_v39, 0.0  ;;  %v5674_v42 = vmul.f32 %v11006_v34, %v11006_v34 }
 0xaac   :  { %5692 = vadd.xlane.f32.xlu0 %v5691_v25 }
 0xaad   :  { %v11014_v26 = vsub.f32 %v10896_v56, %v5643_v55  ;;  %v5694_v63 = vsel %vm892_vm2, %v5674_v42, 0.0 }
 0xaae   :  { %5695 = vadd.xlane.f32.xlu1 %v5694_v63 }
 0xaaf   :  { %v5675_v9 = vmul.f32 %v11014_v26, %v11014_v26 }
 0xab1   :  { %v5697_v17 = vsel %vm892_vm2, %v5675_v9, 0.0 }
 0xab2   :  { %v5606_v11 = vpop.xlane.xlu1 %5605  ;;  %5698 = vadd.xlane.f32.xlu0 %v5697_v17 }
 0xab3   :  { %v5644_v50 = vmul.f32 0.03125, %v5606_v11 }
 0xab5   :  { %v11021_v6 = vsub.f32 %v10907_v59, %v5644_v50  ;;  %v5609_v18 = vpop.xlane.xlu0 %5608 }
 0xab6   :  { %v5645_v8 = vmul.f32 0.03125, %v5609_v18  ;;  %v7739_v18 = vld [vmem:[#allocation14] sm:$0xff]  }
 0xab7   :  { %v5612_v52 = vpop.xlane.xlu1 %5611  ;;  %v5676_v56 = vmul.f32 %v11021_v6, %v11021_v6  ;;  %7429 = vmatprep.subr.bf16.mxu1 %v7739_v18 }
 0xab8   :  { %v11026_v46 = vsub.f32 %v10915_v12, %v5645_v8  ;;  %v5646_v48 = vmul.f32 0.03125, %v5612_v52  ;;  %7430 = vmatpush3.bf16.msra.mxu1 %v7739_v18  ;;  %v7741_v8 = vld [vmem:[#allocation17] sm:$0xff]   ;;  %v7742_v52 = vld [vmem:[#allocation17 + $0x8] sm:$0xff]  }
 0xab9   :  { %v5615_v0 = vpop.xlane.xlu0 %5614  ;;  %v5700_v1 = vsel %vm892_vm2, %v5676_v56, 0.0  ;;  %7449 = vmatprep.subr.bf16.mxu0 %v7741_v8 }
 0xaba   :  { %v11030_v54 = vsub.f32 %v10924_v24, %v5646_v48  ;;  %v5647_v22 = vmul.f32 0.03125, %v5615_v0  ;;  %5701 = vadd.xlane.f32.xlu1 %v5700_v1  ;;  %v5677_v59 = vmul.f32 %v11026_v46, %v11026_v46  ;;  %7450 = vmatpush3.bf16.msra.mxu0 %v7741_v8 }
 0xabb   :  { %v5618_v20 = vpop.xlane.xlu1 %5617  ;;  %7451 = vmatprep.subr.bf16.mxu0 %v7742_v52 }
 0xabc   :  { %v11035_v16 = vsub.f32 %v10933_v60, %v5647_v22  ;;  %v5648_v51 = vmul.f32 0.03125, %v5618_v20  ;;  %v5703_v12 = vsel %vm892_vm2, %v5677_v59, 0.0  ;;  %v5678_v41 = vmul.f32 %v11030_v54, %v11030_v54 }
 0xabd   :  { %5704 = vadd.xlane.f32.xlu0 %v5703_v12  ;;  %v5621_v10 = vpop.xlane.xlu0 %5620 }
 0xabe   :  { %v11041_v24 = vsub.f32 %v10942_v53, %v5648_v51  ;;  %v5649_v5 = vmul.f32 0.03125, %v5621_v10  ;;  %v5706_v38 = vsel %vm892_vm2, %v5678_v41, 0.0  ;;  %v5679_v61 = vmul.f32 %v11035_v16, %v11035_v16  ;;  %7452 = vmatpush3.bf16.msra.mxu0 %v7742_v52 }
 0xabf   :  { %5707 = vadd.xlane.f32.xlu1 %v5706_v38  ;;  %v5624_v60 = vpop.xlane.xlu1 %5623 }
 0xac0   :  { %v11047_v15 = vsub.f32 %v10945_v58, %v5649_v5  ;;  %v5650_v43 = vmul.f32 0.03125, %v5624_v60  ;;  %v5709_v40 = vsel %vm892_vm2, %v5679_v61, 0.0  ;;  %v5680_v28 = vmul.f32 %v11041_v24, %v11041_v24 }
 0xac1   :  { %5710 = vadd.xlane.f32.xlu0 %v5709_v40  ;;  %v5627_v53 = vpop.xlane.xlu0 %5626  ;;  %v11094_v40 = vld [vmem:[#allocation10 + $0x3] ss:$0 sm:$0xff] }
 0xac2   :  { %v11053_v30 = vsub.f32 %v10955_v36, %v5650_v43  ;;  %v5651_v49 = vmul.f32 0.03125, %v5627_v53  ;;  %v5712_v29 = vsel %vm892_vm2, %v5680_v28, 0.0  ;;  %v5681_v13 = vmul.f32 %v11047_v15, %v11047_v15 }
 0xac3   :  { %5713 = vadd.xlane.f32.xlu1 %v5712_v29  ;;  %v5630_v58 = vpop.xlane.xlu1 %5629 }
 0xac4   :  { %v11059_v7 = vsub.f32 %v10963_v33, %v5651_v49  ;;  %v5652_v35 = vmul.f32 0.03125, %v5630_v58  ;;  %v5715_v44 = vsel %vm892_vm2, %v5681_v13, 0.0  ;;  %v5682_v23 = vmul.f32 %v11053_v30, %v11053_v30 }
 0xac5   :  { %5716 = vadd.xlane.f32.xlu0 %v5715_v44  ;;  %v5633_v36 = vpop.xlane.xlu0 %5632 }
 0xac6   :  { %v11065_v45 = vsub.f32 %v10971_v14, %v5652_v35  ;;  %v5653_v31 = vmul.f32 0.03125, %v5633_v36  ;;  %v5718_v47 = vsel %vm892_vm2, %v5682_v23, 0.0  ;;  %v5683_v62 = vmul.f32 %v11059_v7, %v11059_v7 }
 0xac7   :  { %5719 = vadd.xlane.f32.xlu1 %v5718_v47  ;;  %v5636_v33 = vpop.xlane.xlu1 %5635 }
 0xac8   :  { %v11071_v3 = vsub.f32 %v10979_v57, %v5653_v31  ;;  %v5654_v27 = vmul.f32 0.03125, %v5636_v33  ;;  %v5721_v39 = vsel %vm892_vm2, %v5683_v62, 0.0  ;;  %v5684_v21 = vmul.f32 %v11065_v45, %v11065_v45  ;;  %v11098_v31 = vld [vmem:[#allocation10 + $0x4] ss:$0 sm:$0xff] }
 0xac9   :  { %5722 = vadd.xlane.f32.xlu0 %v5721_v39  ;;  %v5639_v14 = vpop.xlane.xlu0 %5638 }
 0xaca   :  { %v11077_v55 = vsub.f32 %v10986_v19, %v5654_v27  ;;  %v5655_v25 = vmul.f32 0.03125, %v5639_v14  ;;  %v5724_v42 = vsel %vm892_vm2, %v5684_v21, 0.0  ;;  %v5685_v63 = vmul.f32 %v11071_v3, %v11071_v3 }
 0xacb   :  { %5725 = vadd.xlane.f32.xlu1 %v5724_v42 }
 0xacc   :  { %v11083_v57 = vsub.f32 %v10992_v32, %v5655_v25  ;;  %v5727_v9 = vsel %vm892_vm2, %v5685_v63, 0.0  ;;  %v5686_v11 = vmul.f32 %v11077_v55, %v11077_v55  ;;  %v7740_v32 = vld [vmem:[#allocation14 + $0x8] sm:$0xff]  }
 0xacd   :  { %5728 = vadd.xlane.f32.xlu0 %v5727_v9  ;;  %7431 = vmatprep.subr.bf16.mxu1 %v7740_v32 }
 0xace   :  { %v5730_v50 = vsel %vm892_vm2, %v5686_v11, 0.0  ;;  %v5687_v19 = vmul.f32 %v11083_v57, %v11083_v57  ;;  %7432 = vmatpush3.bf16.msra.mxu1 %v7740_v32 }
 0xacf   :  { %5731 = vadd.xlane.f32.xlu1 %v5730_v50  ;;  %7473 = vmatprep.subr.bf16.mxu1 %v11684_v2 }
 0xad0   :  { %v5733_v17 = vsel %vm892_vm2, %v5687_v19, 0.0 }
 0xad1   :  { %5734 = vadd.xlane.f32.xlu0 %v5733_v17 }
 0xb37   :  { %v5690_v56 = vpop.xlane.xlu1 %5689 }
 0xb38   :  { %v5736_v48 = vmul.f32 0.03125, %v5690_v56 }
 0xb39   :  { %v5693_v1 = vpop.xlane.xlu0 %5692 }
 0xb3a   :  { %v5752_v0 = vadd.f32 1e-05, %v5736_v48  ;;  %v5737_v22 = vmul.f32 0.03125, %v5693_v1 }
 0xb3b   :  { %v5696_v59 = vpop.xlane.xlu1 %5695 }
 0xb3c   :  { %8099 = vrsqrt.f32 %v5752_v0  ;;  %v5753_v20 = vadd.f32 1e-05, %v5737_v22  ;;  %v5738_v51 = vmul.f32 0.03125, %v5696_v59 }
 0xb3e   :  { %8101 = vrsqrt.f32 %v5753_v20  ;;  %v5754_v12 = vadd.f32 1e-05, %v5738_v51 }
 0xb3f   :  { %v5699_v41 = vpop.xlane.xlu0 %5698 }
 0xb40   :  { %8103 = vrsqrt.f32 %v5754_v12  ;;  %v5739_v10 = vmul.f32 0.03125, %v5699_v41 }
 0xb42   :  { %v5755_v5 = vadd.f32 1e-05, %v5739_v10 }
 0xb44   :  { %8105 = vrsqrt.f32 %v5755_v5 }
 0xb46   :  { %v8100_v38 = vpop.eup %8099 }
 0xb47   :  { %v5702_v61 = vpop.xlane.xlu1 %5701  ;;  %v5784_v60 = vmul.f32 %v8100_v38, %v10997_v37 }
 0xb48   :  { %v5740_v43 = vmul.f32 0.03125, %v5702_v61  ;;  %v8102_v28 = vpop.eup %8101 }
 0xb49   :  { %v5785_v29 = vmul.f32 %v8102_v28, %v11002_v4  ;;  %v5804_v44 = vmul.f32 %v11094_v40, %v5784_v60 }
 0xb4a   :  { %v5756_v53 = vadd.f32 1e-05, %v5740_v43  ;;  %v5705_v49 = vpop.xlane.xlu0 %5704  ;;  %v8104_v58 = vpop.eup %8103 }
 0xb4b   :  { %v5741_v13 = vmul.f32 0.03125, %v5705_v49  ;;  %v5805_v37 = vmul.f32 %v11094_v40, %v5785_v29  ;;  %v5786_v47 = vmul.f32 %v8104_v58, %v11006_v34  ;;  %v11103_v21 = vadd.f32 %v11098_v31, %v5804_v44 }
 0xb4c   :  { %8107 = vrsqrt.f32 %v5756_v53  ;;  %v5708_v35 = vpop.xlane.xlu1 %5707 }
 0xb4d   :  { %v5757_v23 = vadd.f32 1e-05, %v5741_v13  ;;  %v5742_v36 = vmul.f32 0.03125, %v5708_v35  ;;  %v11106_v14 = vadd.f32 %v11098_v31, %v5805_v37  ;;  %v5806_v9 = vmul.f32 %v11094_v40, %v5786_v47 }
 0xb4e   :  { %v5711_v62 = vpop.xlane.xlu0 %5710  ;;  %v8106_v39 = vpop.eup %8105 }
 0xb4f   :  { %8109 = vrsqrt.f32 %v5757_v23  ;;  %v5758_v33 = vadd.f32 1e-05, %v5742_v36  ;;  %v5743_v27 = vmul.f32 0.03125, %v5711_v62  ;;  %v5787_v25 = vmul.f32 %v8106_v39, %v11014_v26 }
 0xb50   :  { %v5714_v4 = vpop.xlane.xlu1 %5713  ;;  %v5840_v34 = vpack.c.bf16 %v11106_v14, %v11103_v21  ;;  %v11118_v48 = vadd.f32 %v11098_v31, %v5806_v9 }
 0xb51   :  { %8111 = vrsqrt.f32 %v5758_v33  ;;  %v5759_v42 = vadd.f32 1e-05, %v5743_v27  ;;  %v5744_v63 = vmul.f32 0.03125, %v5714_v4  ;;  %v5807_v50 = vmul.f32 %v11094_v40, %v5787_v25 }
 0xb52   :  { %v5717_v11 = vpop.xlane.xlu0 %5716  ;;  %7433 = vmatprep.mubr.msk.bf16.mxu1 %vm892_vm2, %v5840_v34 }
 0xb53   :  { %8113 = vrsqrt.f32 %v5759_v42  ;;  %v5760_v19 = vadd.f32 1e-05, %v5744_v63  ;;  %v5745_v17 = vmul.f32 0.03125, %v5717_v11  ;;  %v11115_v8 = vadd.f32 %v11098_v31, %v5807_v50 }
 0xb54   :  { %v5720_v18 = vpop.xlane.xlu1 %5719 }
 0xb55   :  { %8115 = vrsqrt.f32 %v5760_v19  ;;  %v5761_v32 = vadd.f32 1e-05, %v5745_v17  ;;  %v5746_v26 = vmul.f32 0.03125, %v5720_v18  ;;  %v5841_v20 = vpack.c.bf16 %v11115_v8, %v11118_v48 }
 0xb56   :  { %v8108_v52 = vpop.eup %8107  ;;  %v5723_v56 = vpop.xlane.xlu0 %5722 }
 0xb57   :  { %v5788_v0 = vmul.f32 %v8108_v52, %v11021_v6  ;;  %8117 = vrsqrt.f32 %v5761_v32  ;;  %v5762_v1 = vadd.f32 1e-05, %v5746_v26  ;;  %v5747_v22 = vmul.f32 0.03125, %v5723_v56  ;;  %7434 = vmatmul.mubr.msk.bf16.vlgmr.msra.gmra.mrb[96].mxu1 %vm892_vm2, %v5841_v20 }
 0xb58   :  { %v5726_v59 = vpop.xlane.xlu1 %5725 }
 0xb59   :  { %v8110_v51 = vpop.eup %8109  ;;  %8119 = vrsqrt.f32 %v5762_v1  ;;  %v5763_v12 = vadd.f32 1e-05, %v5747_v22  ;;  %v5748_v41 = vmul.f32 0.03125, %v5726_v59  ;;  %v5808_v38 = vmul.f32 %v11094_v40, %v5788_v0 }
 0xb5a   :  { %v5789_v10 = vmul.f32 %v8110_v51, %v11026_v46  ;;  %v5729_v5 = vpop.xlane.xlu0 %5728 }
 0xb5b   :  { %v8112_v61 = vpop.eup %8111  ;;  %8121 = vrsqrt.f32 %v5763_v12  ;;  %v5764_v6 = vadd.f32 1e-05, %v5748_v41  ;;  %v5749_v60 = vmul.f32 0.03125, %v5729_v5  ;;  %v11130_v35 = vadd.f32 %v11098_v31, %v5808_v38 }
 0xb5c   :  { %v5790_v43 = vmul.f32 %v8112_v61, %v11030_v54  ;;  %v5732_v28 = vpop.xlane.xlu1 %5731  ;;  %v5809_v53 = vmul.f32 %v11094_v40, %v5789_v10 }
 0xb5d   :  { %v8114_v49 = vpop.eup %8113  ;;  %8123 = vrsqrt.f32 %v5764_v6  ;;  %v5765_v29 = vadd.f32 1e-05, %v5749_v60  ;;  %v5750_v13 = vmul.f32 0.03125, %v5732_v28  ;;  %v7743_v6 = vld [vmem:[#allocation17 + $0x10] sm:$0xff]   ;;  %v7744_v60 = vld [vmem:[#allocation17 + $0x18] sm:$0xff]  }
 0xb5e   :  { %v5791_v46 = vmul.f32 %v8114_v49, %v11035_v16  ;;  %v5735_v58 = vpop.xlane.xlu0 %5734  ;;  %v11133_v44 = vadd.f32 %v11098_v31, %v5809_v53  ;;  %v5810_v23 = vmul.f32 %v11094_v40, %v5790_v43  ;;  %7453 = vmatprep.subr.bf16.mxu0 %v7743_v6 }
 0xb5f   :  { %v8116_v36 = vpop.eup %8115  ;;  %8125 = vrsqrt.f32 %v5765_v29  ;;  %v5766_v54 = vadd.f32 1e-05, %v5750_v13  ;;  %v5751_v37 = vmul.f32 0.03125, %v5735_v58  ;;  %7454 = vmatpush3.bf16.msra.mxu0 %v7743_v6 }
 0xb60   :  { %v5792_v47 = vmul.f32 %v8116_v36, %v11041_v24  ;;  %v5842_v62 = vpack.c.bf16 %v11133_v44, %v11130_v35  ;;  %v5811_v16 = vmul.f32 %v11094_v40, %v5791_v46  ;;  %v11143_v4 = vadd.f32 %v11098_v31, %v5810_v23  ;;  %7455 = vmatprep.subr.bf16.mxu0 %v7744_v60 }
 0xb61   :  { %v8118_v33 = vpop.eup %8117  ;;  %8127 = vrsqrt.f32 %v5766_v54  ;;  %v5767_v27 = vadd.f32 1e-05, %v5751_v37 }
 0xb62   :  { %v5793_v39 = vmul.f32 %v8118_v33, %v11047_v15  ;;  %7437 = vmatprep.mubr.msk.bf16.mxu1 %vm892_vm2, %v5842_v62  ;;  %v11146_v25 = vadd.f32 %v11098_v31, %v5811_v16  ;;  %v5812_v24 = vmul.f32 %v11094_v40, %v5792_v47 }
 0xb63   :  { %v8120_v42 = vpop.eup %8119  ;;  %8129 = vrsqrt.f32 %v5767_v27  ;;  %7456 = vmatpush3.bf16.msra.mxu0 %v7744_v60 }
 0xb64   :  { %v5794_v63 = vmul.f32 %v8120_v42, %v11053_v30  ;;  %v5843_v9 = vpack.c.bf16 %v11146_v25, %v11143_v4  ;;  %v5813_v34 = vmul.f32 %v11094_v40, %v5793_v39  ;;  %v11156_v50 = vadd.f32 %v11098_v31, %v5812_v24 }
 0xb65   :  { %v8122_v15 = vpop.eup %8121 }
 0xb66   :  { %v5795_v11 = vmul.f32 %v8122_v15, %v11059_v7  ;;  %7438 = vmatmul.mubr.msk.bf16.gmra.mrb[100].mxu1 %vm892_vm2, %v5843_v9  ;;  %v11159_v19 = vadd.f32 %v11098_v31, %v5813_v34  ;;  %v5814_v17 = vmul.f32 %v11094_v40, %v5794_v63 }
 0xb67   :  { %v8124_v18 = vpop.eup %8123 }
 0xb68   :  { %v5796_v30 = vmul.f32 %v8124_v18, %v11065_v45  ;;  %v5844_v32 = vpack.c.bf16 %v11159_v19, %v11156_v50  ;;  %v5815_v26 = vmul.f32 %v11094_v40, %v5795_v11  ;;  %v11169_v56 = vadd.f32 %v11098_v31, %v5814_v17 }
 0xb69   :  { %v8126_v52 = vpop.eup %8125 }
 0xb6a   :  { %v5797_v7 = vmul.f32 %v8126_v52, %v11071_v3  ;;  %7441 = vmatprep.mubr.msk.bf16.mxu1 %vm892_vm2, %v5844_v32  ;;  %v11172_v0 = vadd.f32 %v11098_v31, %v5815_v26  ;;  %v5816_v1 = vmul.f32 %v11094_v40, %v5796_v30 }
 0xb6b   :  { %v8128_v22 = vpop.eup %8127 }
 0xb6c   :  { %v5798_v45 = vmul.f32 %v8128_v22, %v11077_v55  ;;  %v5845_v59 = vpack.c.bf16 %v11172_v0, %v11169_v56  ;;  %v5817_v20 = vmul.f32 %v11094_v40, %v5797_v7  ;;  %v11182_v12 = vadd.f32 %v11098_v31, %v5816_v1 }
 0xb6d   :  { %v8130_v51 = vpop.eup %8129 }
 0xb6e   :  { %v5799_v3 = vmul.f32 %v8130_v51, %v11083_v57  ;;  %7442 = vmatmul.mubr.msk.bf16.gmra.mrb[104].mxu1 %vm892_vm2, %v5845_v59  ;;  %v11185_v41 = vadd.f32 %v11098_v31, %v5817_v20  ;;  %v5818_v10 = vmul.f32 %v11094_v40, %v5798_v45 }
 0xb70   :  { %v5846_v55 = vpack.c.bf16 %v11185_v41, %v11182_v12  ;;  %v5819_v5 = vmul.f32 %v11094_v40, %v5799_v3  ;;  %v11193_v38 = vadd.f32 %v11098_v31, %v5818_v10  ;;  %v6757_v40 = vld [vmem:[#allocation16] ss:$0 sm:$0xff] }
 0xb72   :  { %7445 = vmatprep.mubr.msk.bf16.mxu1 %vm892_vm2, %v5846_v55  ;;  %v11196_v57 = vadd.f32 %v11098_v31, %v5819_v5 }
 0xb74   :  { %v5847_v61 = vpack.c.bf16 %v11196_v57, %v11193_v38 }
 0xb76   :  { %7446 = vmatmul.mubr.msk.bf16.gmra.mrb[108].mxu1 %vm892_vm2, %v5847_v61 }
 0xb77   :  { %7477 = vmatprep.mubr.msk.bf16.mxu1 %vm8483_vm3, %v11684_v2 }
 0xc2a   :  { %v7435_v43 = vpop.f32.mrb[96].mxu1 }
 0xc2b   :  { %v5938_v28 = vadd.f32 %v7435_v43, %v6757_v40  ;;  %v5929_v53 = vpop.f32.mrb[97].mxu1 }
 0xc2c   :  { %v5930_v31 = vadd.f32 %v6757_v40, %v5929_v53  ;;  %v7436_v49 = vpop.f32.mrb[98].mxu1 }
 0xc2d   :  { %v5941_v29 = vadd.f32 %v7436_v49, %v6757_v40  ;;  %v5932_v13 = vpop.f32.mrb[99].mxu1  ;;  %v5994_v58 = vmax.f32 %v5938_v28, 0.0 }
 0xc2e   :  { %v5933_v46 = vadd.f32 %v6757_v40, %v5932_v13  ;;  %v5992_v36 = vmax.f32 %v5930_v31, 0.0 }
 0xc2f   :  { %v5995_v23 = vmax.f32 %v5941_v29, 0.0 }
 0xc30   :  { %v5993_v54 = vmax.f32 %v5933_v46, 0.0 }
 0xc31   :  { %v6009_v37 = vpack.c.bf16 %v5995_v23, %v5994_v58 }
 0xc32   :  { %v6008_v47 = vpack.c.bf16 %v5993_v54, %v5992_v36  ;;  %v11211_v36 = vld [vmem:[#allocation10 + $0x5] ss:$0 sm:$0xff] }
 0xc34   :  { %7457 = vmatprep.mubr.msk.bf16.mxu0 %vm6053_vm5, %v6008_v47 }
 0xc35   :  { %7458 = vmatmul.mubr.msk.bf16.vlgmr.msra.gmra.mrb[112].mxu0 %vm6053_vm5, %v6009_v37 }
 0xc39   :  { %v7439_v62 = vpop.f32.mrb[100].mxu1 }
 0xc3a   :  { %v5954_v16 = vadd.f32 %v7439_v62, %v6757_v40  ;;  %v5945_v33 = vpop.f32.mrb[101].mxu1 }
 0xc3b   :  { %v5946_v27 = vadd.f32 %v6757_v40, %v5945_v33  ;;  %v7440_v39 = vpop.f32.mrb[102].mxu1 }
 0xc3c   :  { %v5957_v24 = vadd.f32 %v7440_v39, %v6757_v40  ;;  %v5948_v42 = vpop.f32.mrb[103].mxu1  ;;  %v5998_v9 = vmax.f32 %v5954_v16, 0.0 }
 0xc3d   :  { %v5949_v63 = vadd.f32 %v6757_v40, %v5948_v42  ;;  %v5996_v15 = vmax.f32 %v5946_v27, 0.0 }
 0xc3e   :  { %v5999_v34 = vmax.f32 %v5957_v24, 0.0 }
 0xc3f   :  { %v5997_v11 = vmax.f32 %v5949_v63, 0.0 }
 0xc40   :  { %v6011_v17 = vpack.c.bf16 %v5999_v34, %v5998_v9 }
 0xc41   :  { %v6010_v18 = vpack.c.bf16 %v5997_v11, %v5996_v15  ;;  %v7443_v30 = vpop.f32.mrb[104].mxu1 }
 0xc42   :  { %v5970_v32 = vadd.f32 %v7443_v30, %v6757_v40  ;;  %v5961_v26 = vpop.f32.mrb[105].mxu1 }
 0xc43   :  { %v5962_v52 = vadd.f32 %v6757_v40, %v5961_v26  ;;  %v7444_v7 = vpop.f32.mrb[106].mxu1  ;;  %7461 = vmatprep.mubr.msk.bf16.mxu0 %vm6053_vm5, %v6010_v18 }
 0xc44   :  { %v5973_v1 = vadd.f32 %v7444_v7, %v6757_v40  ;;  %v5964_v22 = vpop.f32.mrb[107].mxu1  ;;  %7462 = vmatmul.mubr.msk.bf16.gmra.mrb[116].mxu0 %vm6053_vm5, %v6011_v17  ;;  %v6002_v59 = vmax.f32 %v5970_v32, 0.0 }
 0xc45   :  { %v5965_v45 = vadd.f32 %v6757_v40, %v5964_v22  ;;  %v6000_v51 = vmax.f32 %v5962_v52, 0.0 }
 0xc46   :  { %v6003_v20 = vmax.f32 %v5973_v1, 0.0 }
 0xc47   :  { %v6001_v3 = vmax.f32 %v5965_v45, 0.0 }
 0xc48   :  { %v6013_v10 = vpack.c.bf16 %v6003_v20, %v6002_v59 }
 0xc49   :  { %v6012_v55 = vpack.c.bf16 %v6001_v3, %v6000_v51  ;;  %v7447_v5 = vpop.f32.mrb[108].mxu1 }
 0xc4a   :  { %v5986_v61 = vadd.f32 %v7447_v5, %v6757_v40  ;;  %v5977_v6 = vpop.f32.mrb[109].mxu1 }
 0xc4b   :  { %v5978_v60 = vadd.f32 %v6757_v40, %v5977_v6  ;;  %v7448_v43 = vpop.f32.mrb[110].mxu1  ;;  %7465 = vmatprep.mubr.msk.bf16.mxu0 %vm6053_vm5, %v6012_v55 }
 0xc4c   :  { %v5989_v28 = vadd.f32 %v7448_v43, %v6757_v40  ;;  %v5980_v53 = vpop.f32.mrb[111].mxu1  ;;  %7466 = vmatmul.mubr.msk.bf16.gmra.mrb[120].mxu0 %vm6053_vm5, %v6013_v10  ;;  %v6006_v49 = vmax.f32 %v5986_v61, 0.0 }
 0xc4d   :  { %v5981_v31 = vadd.f32 %v6757_v40, %v5980_v53  ;;  %v6004_v13 = vmax.f32 %v5978_v60, 0.0 }
 0xc4e   :  { %v6007_v29 = vmax.f32 %v5989_v28, 0.0 }
 0xc4f   :  { %v6005_v46 = vmax.f32 %v5981_v31, 0.0 }
 0xc50   :  { %v6015_v58 = vpack.c.bf16 %v6007_v29, %v6006_v49 }
 0xc51   :  { %v6014_v23 = vpack.c.bf16 %v6005_v46, %v6004_v13 }
 0xc53   :  { %7469 = vmatprep.mubr.msk.bf16.mxu0 %vm6053_vm5, %v6014_v23 }
 0xc54   :  { %7470 = vmatmul.mubr.msk.bf16.gmra.mrb[124].mxu0 %vm6053_vm5, %v6015_v58 }
 0xd08   :  { %v7459_v54 = vpop.f32.mrb[112].mxu0 }
 0xd09   :  { %v6121_v37 = vadd.f32 %v7459_v54, %v11211_v36  ;;  %v6112_v47 = vpop.f32.mrb[113].mxu0 }
 0xd0a   :  { %v6113_v62 = vadd.f32 %v11211_v36, %v6112_v47  ;;  %v7460_v16 = vpop.f32.mrb[114].mxu0 }
 0xd0b   :  { %v11216_v40 = vadd.f32 %v6121_v37, %v11118_v48  ;;  %v6124_v33 = vadd.f32 %v7460_v16, %v11211_v36  ;;  %v6115_v27 = vpop.f32.mrb[115].mxu0 }
 0xd0c   :  { %v6116_v39 = vadd.f32 %v11211_v36, %v6115_v27  ;;  %v11221_v24 = vadd.f32 %v6113_v62, %v11103_v21 }
 0xd0d   :  { %v11224_v42 = vadd.f32 %v6124_v33, %v11115_v8  ;;  %v6199_v63 = vsel %vm892_vm2, %v11216_v40, 0.0 }
 0xd0e   :  { %6200 = vadd.xlane.f32.xlu1 %v6199_v63  ;;  %v11229_v9 = vadd.f32 %v6116_v39, %v11106_v14  ;;  %v6193_v34 = vsel %vm892_vm2, %v11221_v24, 0.0 }
 0xd0f   :  { %v6202_v48 = vsel %vm892_vm2, %v11224_v42, 0.0 }
 0xd10   :  { %6203 = vadd.xlane.f32.xlu0 %v6202_v48  ;;  %v6196_v21 = vsel %vm892_vm2, %v11229_v9, 0.0 }
 0xd12   :  { %6194 = vadd.xlane.f32.xlu1 %v6193_v34 }
 0xd14   :  { %6197 = vadd.xlane.f32.xlu0 %v6196_v21 }
 0xd17   :  { %v7463_v8 = vpop.f32.mrb[116].mxu0 }
 0xd18   :  { %v6137_v15 = vadd.f32 %v7463_v8, %v11211_v36  ;;  %v6128_v11 = vpop.f32.mrb[117].mxu0 }
 0xd19   :  { %v6129_v17 = vadd.f32 %v11211_v36, %v6128_v11  ;;  %v7464_v14 = vpop.f32.mrb[118].mxu0 }
 0xd1a   :  { %v11240_v18 = vadd.f32 %v6137_v15, %v11143_v4  ;;  %v6140_v30 = vadd.f32 %v7464_v14, %v11211_v36  ;;  %v6131_v32 = vpop.f32.mrb[119].mxu0 }
 0xd1b   :  { %v6132_v26 = vadd.f32 %v11211_v36, %v6131_v32  ;;  %v11245_v52 = vadd.f32 %v6129_v17, %v11130_v35 }
 0xd1c   :  { %v11248_v7 = vadd.f32 %v6140_v30, %v11146_v25  ;;  %v6211_v1 = vsel %vm892_vm2, %v11240_v18, 0.0 }
 0xd1d   :  { %6212 = vadd.xlane.f32.xlu1 %v6211_v1  ;;  %v11253_v22 = vadd.f32 %v6132_v26, %v11133_v44  ;;  %v6205_v35 = vsel %vm892_vm2, %v11245_v52, 0.0 }
 0xd1e   :  { %v6214_v4 = vsel %vm892_vm2, %v11248_v7, 0.0 }
 0xd1f   :  { %6215 = vadd.xlane.f32.xlu0 %v6214_v4  ;;  %v7467_v45 = vpop.f32.mrb[120].mxu0  ;;  %v6208_v55 = vsel %vm892_vm2, %v11253_v22, 0.0 }
 0xd20   :  { %v6153_v59 = vadd.f32 %v7467_v45, %v11211_v36  ;;  %v6144_v20 = vpop.f32.mrb[121].mxu0 }
 0xd21   :  { %v6145_v25 = vadd.f32 %v11211_v36, %v6144_v20  ;;  %6206 = vadd.xlane.f32.xlu1 %v6205_v35  ;;  %v7468_v51 = vpop.f32.mrb[122].mxu0 }
 0xd22   :  { %v11262_v3 = vadd.f32 %v6153_v59, %v11169_v56  ;;  %v6156_v44 = vadd.f32 %v7468_v51, %v11211_v36  ;;  %v6147_v10 = vpop.f32.mrb[123].mxu0 }
 0xd23   :  { %v6148_v5 = vadd.f32 %v11211_v36, %v6147_v10  ;;  %6209 = vadd.xlane.f32.xlu0 %v6208_v55  ;;  %v11269_v61 = vadd.f32 %v6145_v25, %v11156_v50 }
 0xd24   :  { %v11272_v6 = vadd.f32 %v6156_v44, %v11172_v0  ;;  %v6223_v60 = vsel %vm892_vm2, %v11262_v3, 0.0 }
 0xd25   :  { %6224 = vadd.xlane.f32.xlu1 %v6223_v60  ;;  %v11277_v56 = vadd.f32 %v6148_v5, %v11159_v19  ;;  %v6217_v50 = vsel %vm892_vm2, %v11269_v61, 0.0 }
 0xd26   :  { %v6226_v43 = vsel %vm892_vm2, %v11272_v6, 0.0 }
 0xd27   :  { %6227 = vadd.xlane.f32.xlu0 %v6226_v43  ;;  %v7471_v28 = vpop.f32.mrb[124].mxu0  ;;  %v6220_v19 = vsel %vm892_vm2, %v11277_v56, 0.0 }
 0xd28   :  { %v6160_v53 = vpop.f32.mrb[125].mxu0  ;;  %v6169_v31 = vadd.f32 %v7471_v28, %v11211_v36 }
 0xd29   :  { %v6161_v0 = vadd.f32 %v11211_v36, %v6160_v53  ;;  %6218 = vadd.xlane.f32.xlu1 %v6217_v50  ;;  %v7472_v49 = vpop.f32.mrb[126].mxu0 }
 0xd2a   :  { %v6163_v29 = vpop.f32.mrb[127].mxu0  ;;  %v6172_v46 = vadd.f32 %v7472_v49, %v11211_v36  ;;  %v11293_v23 = vadd.f32 %v6169_v31, %v11193_v38 }
 0xd2b   :  { %v11288_v13 = vadd.f32 %v6161_v0, %v11182_v12  ;;  %v6164_v58 = vadd.f32 %v11211_v36, %v6163_v29  ;;  %6221 = vadd.xlane.f32.xlu0 %v6220_v19 }
 0xd2c   :  { %v11301_v47 = vadd.f32 %v6172_v46, %v11196_v57  ;;  %v6235_v36 = vsel %vm892_vm2, %v11293_v23, 0.0 }
 0xd2d   :  { %v11296_v54 = vadd.f32 %v6164_v58, %v11185_v41  ;;  %v6229_v37 = vsel %vm892_vm2, %v11288_v13, 0.0 }
 0xd2e   :  { %6230 = vadd.xlane.f32.xlu1 %v6229_v37  ;;  %v6238_v38 = vsel %vm892_vm2, %v11301_v47, 0.0 }
 0xd2f   :  { %v6232_v12 = vsel %vm892_vm2, %v11296_v54, 0.0 }
 0xd30   :  { %6233 = vadd.xlane.f32.xlu0 %v6232_v12 }
 0xd32   :  { %6236 = vadd.xlane.f32.xlu1 %v6235_v36 }
 0xd34   :  { %6239 = vadd.xlane.f32.xlu0 %v6238_v38 }
 0xd9b   :  { %v6201_v41 = vpop.xlane.xlu1 %6200 }
 0xd9c   :  { %v6243_v62 = vmul.f32 0.03125, %v6201_v41 }
 0xd9d   :  { %v6204_v16 = vpop.xlane.xlu0 %6203 }
 0xd9e   :  { %v11310_v33 = vsub.f32 %v11216_v40, %v6243_v62  ;;  %v6244_v57 = vmul.f32 0.03125, %v6204_v16 }
 0xd9f   :  { %v6195_v27 = vpop.xlane.xlu1 %6194 }
 0xda0   :  { %v11313_v39 = vsub.f32 %v11224_v42, %v6244_v57  ;;  %v6241_v63 = vmul.f32 0.03125, %v6195_v27  ;;  %v6275_v48 = vmul.f32 %v11310_v33, %v11310_v33 }
 0xda1   :  { %v6198_v34 = vpop.xlane.xlu0 %6197 }
 0xda2   :  { %v11318_v21 = vsub.f32 %v11221_v24, %v6241_v63  ;;  %v6242_v8 = vmul.f32 0.03125, %v6198_v34  ;;  %v6295_v15 = vsel %vm892_vm2, %v6275_v48, 0.0  ;;  %v6276_v40 = vmul.f32 %v11313_v39, %v11313_v39 }
 0xda3   :  { %6296 = vadd.xlane.f32.xlu1 %v6295_v15 }
 0xda4   :  { %v11324_v11 = vsub.f32 %v11229_v9, %v6242_v8  ;;  %v6298_v42 = vsel %vm892_vm2, %v6276_v40, 0.0  ;;  %v6273_v17 = vmul.f32 %v11318_v21, %v11318_v21 }
 0xda5   :  { %6299 = vadd.xlane.f32.xlu0 %v6298_v42 }
 0xda6   :  { %v6289_v14 = vsel %vm892_vm2, %v6273_v17, 0.0  ;;  %v6274_v24 = vmul.f32 %v11324_v11, %v11324_v11 }
 0xda7   :  { %6290 = vadd.xlane.f32.xlu1 %v6289_v14 }
 0xda8   :  { %v6292_v26 = vsel %vm892_vm2, %v6274_v24, 0.0 }
 0xda9   :  { %6293 = vadd.xlane.f32.xlu0 %v6292_v26 }
 0xdaa   :  { %v6213_v30 = vpop.xlane.xlu1 %6212 }
 0xdab   :  { %v6247_v32 = vmul.f32 0.03125, %v6213_v30 }
 0xdac   :  { %v6216_v1 = vpop.xlane.xlu0 %6215 }
 0xdad   :  { %v11334_v9 = vsub.f32 %v11240_v18, %v6247_v32  ;;  %v6248_v4 = vmul.f32 0.03125, %v6216_v1  ;;  %v7745_v1 = vld [vmem:[#allocation19] sm:$0xff]  }
 0xdae   :  { %v6207_v45 = vpop.xlane.xlu1 %6206  ;;  %7474 = vmatpush3.bf16.msra.mxu1 %v7745_v1 }
 0xdaf   :  { %v11337_v59 = vsub.f32 %v11248_v7, %v6248_v4  ;;  %v6245_v20 = vmul.f32 0.03125, %v6207_v45  ;;  %v6279_v35 = vmul.f32 %v11334_v9, %v11334_v9  ;;  %v7746_v4 = vld [vmem:[#allocation19 + $0x8] sm:$0xff]   ;;  %7475 = vmatprep.subr.bf16.mxu1 %v11684_v2 }
 0xdb0   :  { %v6210_v25 = vpop.xlane.xlu0 %6209 }
 0xdb1   :  { %v11342_v51 = vsub.f32 %v11245_v52, %v6245_v20  ;;  %v6246_v44 = vmul.f32 0.03125, %v6210_v25  ;;  %v6307_v10 = vsel %vm892_vm2, %v6279_v35, 0.0  ;;  %v6280_v18 = vmul.f32 %v11337_v59, %v11337_v59 }
 0xdb2   :  { %v6225_v55 = vpop.xlane.xlu1 %6224  ;;  %6308 = vadd.xlane.f32.xlu1 %v6307_v10  ;;  %7476 = vmatpush3.bf16.msra.mxu1 %v7746_v4 }
 0xdb3   :  { %v11348_v5 = vsub.f32 %v11253_v22, %v6246_v44  ;;  %v6251_v7 = vmul.f32 0.03125, %v6225_v55  ;;  %v6310_v60 = vsel %vm892_vm2, %v6280_v18, 0.0  ;;  %v6277_v43 = vmul.f32 %v11342_v51, %v11342_v51 }
 0xdb4   :  { %6311 = vadd.xlane.f32.xlu0 %v6310_v60  ;;  %v6228_v52 = vpop.xlane.xlu0 %6227 }
 0xdb5   :  { %v11354_v28 = vsub.f32 %v11262_v3, %v6251_v7  ;;  %v6252_v53 = vmul.f32 0.03125, %v6228_v52  ;;  %v6301_v50 = vsel %vm892_vm2, %v6277_v43, 0.0  ;;  %v6278_v31 = vmul.f32 %v11348_v5, %v11348_v5 }
 0xdb6   :  { %v6219_v0 = vpop.xlane.xlu1 %6218  ;;  %6302 = vadd.xlane.f32.xlu1 %v6301_v50 }
 0xdb7   :  { %v11360_v22 = vsub.f32 %v11272_v6, %v6252_v53  ;;  %v6249_v49 = vmul.f32 0.03125, %v6219_v0  ;;  %v6304_v29 = vsel %vm892_vm2, %v6278_v31, 0.0  ;;  %v6283_v19 = vmul.f32 %v11354_v28, %v11354_v28 }
 0xdb8   :  { %6305 = vadd.xlane.f32.xlu0 %v6304_v29  ;;  %v6222_v3 = vpop.xlane.xlu0 %6221 }
 0xdb9   :  { %v11366_v46 = vsub.f32 %v11269_v61, %v6249_v49  ;;  %v6250_v58 = vmul.f32 0.03125, %v6222_v3  ;;  %v6319_v37 = vsel %vm892_vm2, %v6283_v19, 0.0  ;;  %v6284_v12 = vmul.f32 %v11360_v22, %v11360_v22 }
 0xdba   :  { %6320 = vadd.xlane.f32.xlu1 %v6319_v37 }
 0xdbb   :  { %v11372_v6 = vsub.f32 %v11277_v56, %v6250_v58  ;;  %v6231_v36 = vpop.xlane.xlu1 %6230  ;;  %v6322_v38 = vsel %vm892_vm2, %v6284_v12, 0.0  ;;  %v6281_v41 = vmul.f32 %v11366_v46, %v11366_v46 }
 0xdbc   :  { %v6253_v62 = vmul.f32 0.03125, %v6231_v36  ;;  %6323 = vadd.xlane.f32.xlu0 %v6322_v38 }
 0xdbd   :  { %v6234_v61 = vpop.xlane.xlu0 %6233  ;;  %v6313_v16 = vsel %vm892_vm2, %v6281_v41, 0.0  ;;  %v6282_v57 = vmul.f32 %v11372_v6, %v11372_v6 }
 0xdbe   :  { %v11381_v27 = vsub.f32 %v11288_v13, %v6253_v62  ;;  %v6254_v63 = vmul.f32 0.03125, %v6234_v61  ;;  %6314 = vadd.xlane.f32.xlu1 %v6313_v16 }
 0xdbf   :  { %v6237_v56 = vpop.xlane.xlu1 %6236  ;;  %v6316_v48 = vsel %vm892_vm2, %v6282_v57, 0.0 }
 0xdc0   :  { %v11385_v34 = vsub.f32 %v11296_v54, %v6254_v63  ;;  %v6255_v8 = vmul.f32 0.03125, %v6237_v56  ;;  %6317 = vadd.xlane.f32.xlu0 %v6316_v48  ;;  %v6285_v15 = vmul.f32 %v11381_v27, %v11381_v27 }
 0xdc1   :  { %v6240_v40 = vpop.xlane.xlu0 %6239 }
 0xdc2   :  { %v11390_v42 = vsub.f32 %v11293_v23, %v6255_v8  ;;  %v6256_v17 = vmul.f32 0.03125, %v6240_v40  ;;  %v6325_v13 = vsel %vm892_vm2, %v6285_v15, 0.0  ;;  %v6286_v14 = vmul.f32 %v11385_v34, %v11385_v34 }
 0xdc3   :  { %6326 = vadd.xlane.f32.xlu1 %v6325_v13 }
 0xdc4   :  { %v11396_v24 = vsub.f32 %v11301_v47, %v6256_v17  ;;  %v6328_v54 = vsel %vm892_vm2, %v6286_v14, 0.0  ;;  %v6287_v30 = vmul.f32 %v11390_v42, %v11390_v42  ;;  %v11409_v14 = vld [vmem:[#allocation10 + $0x6] ss:$0 sm:$0xff] }
 0xdc5   :  { %6329 = vadd.xlane.f32.xlu0 %v6328_v54 }
 0xdc6   :  { %v6331_v32 = vsel %vm892_vm2, %v6287_v30, 0.0  ;;  %v6288_v23 = vmul.f32 %v11396_v24, %v11396_v24 }
 0xdc7   :  { %6332 = vadd.xlane.f32.xlu1 %v6331_v32 }
 0xdc8   :  { %v6334_v26 = vsel %vm892_vm2, %v6288_v23, 0.0 }
 0xdc9   :  { %6335 = vadd.xlane.f32.xlu0 %v6334_v26 }
 0xe30   :  { %v6297_v47 = vpop.xlane.xlu1 %6296 }
 0xe31   :  { %v6339_v44 = vmul.f32 0.03125, %v6297_v47 }
 0xe32   :  { %v6300_v45 = vpop.xlane.xlu0 %6299 }
 0xe33   :  { %v6340_v20 = vmul.f32 0.03125, %v6300_v45  ;;  %v6355_v43 = vadd.f32 1e-05, %v6339_v44 }
 0xe34   :  { %v6291_v35 = vpop.xlane.xlu1 %6290 }
 0xe35   :  { %v6337_v25 = vmul.f32 0.03125, %v6291_v35  ;;  %v6356_v55 = vadd.f32 1e-05, %v6340_v20  ;;  %v11415_v20 = vld [vmem:[#allocation10 + $0x7] ss:$0 sm:$0xff] }
 0xe36   :  { %v6294_v10 = vpop.xlane.xlu0 %6293 }
 0xe37   :  { %v6338_v18 = vmul.f32 0.03125, %v6294_v10  ;;  %v6353_v7 = vadd.f32 1e-05, %v6337_v25 }
 0xe39   :  { %v6354_v60 = vadd.f32 1e-05, %v6338_v18 }
 0xe3b   :  { %8131 = vrsqrt.f32 %v6354_v60 }
 0xe3c   :  { %8133 = vrsqrt.f32 %v6356_v55 }
 0xe3d   :  { %8135 = vrsqrt.f32 %v6353_v7 }
 0xe3e   :  { %8137 = vrsqrt.f32 %v6355_v43 }
 0xe3f   :  { %v6309_v52 = vpop.xlane.xlu1 %6308 }
 0xe40   :  { %v6343_v53 = vmul.f32 0.03125, %v6309_v52 }
 0xe41   :  { %v6312_v2 = vpop.xlane.xlu0 %6311 }
 0xe42   :  { %v6344_v50 = vmul.f32 0.03125, %v6312_v2  ;;  %v6359_v31 = vadd.f32 1e-05, %v6343_v53 }
 0xe43   :  { %v6303_v0 = vpop.xlane.xlu1 %6302 }
 0xe44   :  { %v6360_v49 = vadd.f32 1e-05, %v6344_v50  ;;  %v6341_v29 = vmul.f32 0.03125, %v6303_v0 }
 0xe45   :  { %v6306_v19 = vpop.xlane.xlu0 %6305  ;;  %v8132_v12 = vpop.eup %8131 }
 0xe46   :  { %8139 = vrsqrt.f32 %v6360_v49  ;;  %v6357_v3 = vadd.f32 1e-05, %v6341_v29  ;;  %v6342_v58 = vmul.f32 0.03125, %v6306_v19  ;;  %v8134_v41 = vpop.eup %8133  ;;  %v6386_v56 = vmul.f32 %v8132_v12, %v11324_v11 }
 0xe47   :  { %8141 = vrsqrt.f32 %v6359_v31  ;;  %v6321_v37 = vpop.xlane.xlu1 %6320  ;;  %v8136_v61 = vpop.eup %8135  ;;  %v6388_v40 = vmul.f32 %v8134_v41, %v11313_v39 }
 0xe48   :  { %8143 = vrsqrt.f32 %v6357_v3  ;;  %v6358_v36 = vadd.f32 1e-05, %v6342_v58  ;;  %v6347_v38 = vmul.f32 0.03125, %v6321_v37  ;;  %v8138_v63 = vpop.eup %8137  ;;  %v6385_v17 = vmul.f32 %v8136_v61, %v11318_v21 }
 0xe49   :  { %v6324_v62 = vpop.xlane.xlu0 %6323  ;;  %v6387_v54 = vmul.f32 %v8138_v63, %v11310_v33  ;;  %v6406_v23 = vmul.f32 %v11409_v14, %v6386_v56  ;;  %v6408_v47 = vmul.f32 %v11409_v14, %v6388_v40 }
 0xe4a   :  { %8145 = vrsqrt.f32 %v6358_v36  ;;  %v6363_v16 = vadd.f32 1e-05, %v6347_v38  ;;  %v6348_v57 = vmul.f32 0.03125, %v6324_v62  ;;  %v6405_v39 = vmul.f32 %v11409_v14, %v6385_v17 }
 0xe4b   :  { %v6315_v48 = vpop.xlane.xlu1 %6314  ;;  %v6407_v33 = vmul.f32 %v11409_v14, %v6387_v54  ;;  %v6426_v44 = vadd.f32 %v11415_v20, %v6406_v23  ;;  %v6428_v43 = vadd.f32 %v11415_v20, %v6408_v47 }
 0xe4c   :  { %8147 = vrsqrt.f32 %v6363_v16  ;;  %v6364_v8 = vadd.f32 1e-05, %v6348_v57  ;;  %v6345_v15 = vmul.f32 0.03125, %v6315_v48  ;;  %v6425_v52 = vadd.f32 %v11415_v20, %v6405_v39 }
 0xe4d   :  { %v6318_v13 = vpop.xlane.xlu0 %6317  ;;  %v6427_v50 = vadd.f32 %v11415_v20, %v6407_v33  ;;  %v6442_v0 = vsel %vm892_vm2, %v6426_v44, 0.0  ;;  %v6451_v58 = vsel %vm892_vm2, %v6428_v43, 0.0 }
 0xe4e   :  { %8149 = vrsqrt.f32 %v6364_v8  ;;  %v6361_v30 = vadd.f32 1e-05, %v6345_v15  ;;  %v6346_v32 = vmul.f32 0.03125, %v6318_v13  ;;  %v6441_v37 = vsel %vm892_vm2, %v6425_v52, 0.0 }
 0xe4f   :  { %v6450_v41 = vsel %vm892_vm2, %v6427_v50, 0.0  ;;  %v6443_v62 = vadd.f32 %v6442_v0, %v6441_v37 }
 0xe50   :  { %v8140_v26 = vpop.eup %8139  ;;  %8151 = vrsqrt.f32 %v6361_v30  ;;  %v6362_v11 = vadd.f32 1e-05, %v6346_v32  ;;  %v6327_v1 = vpop.xlane.xlu1 %6326  ;;  %v6452_v8 = vadd.f32 %v6451_v58, %v6450_v41 }
 0xe51   :  { %v8142_v4 = vpop.eup %8141  ;;  %v6349_v21 = vmul.f32 0.03125, %v6327_v1  ;;  %v6392_v35 = vmul.f32 %v8140_v26, %v11337_v59  ;;  %v6444_v54 = vrot.slane %v6443_v62, 4 }
 0xe52   :  { %v8144_v45 = vpop.eup %8143  ;;  %8153 = vrsqrt.f32 %v6362_v11  ;;  %v6330_v25 = vpop.xlane.xlu0 %6329  ;;  %v6391_v7 = vmul.f32 %v8142_v4, %v11334_v9  ;;  %v6453_v4 = vrot.slane %v6452_v8, 4 }
 0xe53   :  { %v6389_v10 = vmul.f32 %v8144_v45, %v11342_v51  ;;  %v6365_v18 = vadd.f32 1e-05, %v6349_v21  ;;  %v6350_v60 = vmul.f32 0.03125, %v6330_v25  ;;  %v6412_v31 = vmul.f32 %v11409_v14, %v6392_v35 }
 0xe54   :  { %v8146_v55 = vpop.eup %8145  ;;  %v6411_v19 = vmul.f32 %v11409_v14, %v6391_v7  ;;  %v6445_v25 = vadd.f32 %v6444_v54, %v6443_v62  ;;  %v6454_v52 = vadd.f32 %v6453_v4, %v6452_v8 }
 0xe55   :  { %v6409_v53 = vmul.f32 %v11409_v14, %v6389_v10  ;;  %v6390_v2 = vmul.f32 %v8146_v55, %v11348_v5  ;;  %8155 = vrsqrt.f32 %v6365_v18  ;;  %v6366_v51 = vadd.f32 1e-05, %v6350_v60  ;;  %v6333_v5 = vpop.xlane.xlu1 %6332 }
 0xe56   :  { %v8148_v59 = vpop.eup %8147  ;;  %v6432_v61 = vadd.f32 %v11415_v20, %v6412_v31  ;;  %v6351_v56 = vmul.f32 0.03125, %v6333_v5  ;;  %v6431_v15 = vadd.f32 %v11415_v20, %v6411_v19  ;;  %v6336_v21 = vpop.xlane.xlu0 %6335 }
 0xe57   :  { %v6429_v9 = vadd.f32 %v11415_v20, %v6409_v53  ;;  %v6410_v49 = vmul.f32 %v11409_v14, %v6390_v2  ;;  %v6395_v3 = vmul.f32 %v8148_v59, %v11354_v28  ;;  %8157 = vrsqrt.f32 %v6366_v51 }
 0xe58   :  { %v8150_v29 = vpop.eup %8149  ;;  %v6469_v30 = vsel %vm892_vm2, %v6432_v61, 0.0  ;;  %v6367_v11 = vadd.f32 1e-05, %v6351_v56  ;;  %v6468_v47 = vsel %vm892_vm2, %v6431_v15, 0.0  ;;  %v6352_v43 = vmul.f32 0.03125, %v6336_v21 }
 0xe59   :  { %v6430_v12 = vadd.f32 %v11415_v20, %v6410_v49  ;;  %v6396_v36 = vmul.f32 %v8150_v29, %v11360_v22  ;;  %v6459_v16 = vsel %vm892_vm2, %v6429_v9, 0.0  ;;  %v6415_v40 = vmul.f32 %v11409_v14, %v6395_v3 }
 0xe5a   :  { %v8152_v38 = vpop.eup %8151  ;;  %v6470_v45 = vadd.f32 %v6469_v30, %v6468_v47  ;;  %8159 = vrsqrt.f32 %v6367_v11  ;;  %v6368_v31 = vadd.f32 1e-05, %v6352_v43  ;;  %v6446_v9 = vrot.slane %v6445_v25, 2 }
 0xe5b   :  { %v6460_v28 = vsel %vm892_vm2, %v6430_v12, 0.0  ;;  %v6416_v57 = vmul.f32 %v11409_v14, %v6396_v36  ;;  %v6393_v63 = vmul.f32 %v8152_v38, %v11366_v46  ;;  %v6435_v39 = vadd.f32 %v11415_v20, %v6415_v40 }
 0xe5c   :  { %v8154_v48 = vpop.eup %8153  ;;  %v6461_v22 = vadd.f32 %v6460_v28, %v6459_v16  ;;  %8161 = vrsqrt.f32 %v6368_v31  ;;  %v6447_v36 = vadd.f32 %v6446_v9, %v6445_v25 }
 0xe5d   :  { %v6413_v17 = vmul.f32 %v11409_v14, %v6393_v63  ;;  %v6394_v13 = vmul.f32 %v8154_v48, %v11372_v6  ;;  %v6436_v23 = vadd.f32 %v11415_v20, %v6416_v57  ;;  %v6486_v53 = vsel %vm892_vm2, %v6435_v39, 0.0 }
 0xe5e   :  { %v6462_v32 = vrot.slane %v6461_v22, 4  ;;  %v6448_v56 = vrot.slane %v6447_v36, 1 }
 0xe5f   :  { %v6433_v46 = vadd.f32 %v11415_v20, %v6413_v17  ;;  %v6414_v26 = vmul.f32 %v11409_v14, %v6394_v13  ;;  %v8156_v1 = vpop.eup %8155  ;;  %v6487_v10 = vsel %vm892_vm2, %v6436_v23, 0.0 }
 0xe60   :  { %v6397_v33 = vmul.f32 %v8156_v1, %v11381_v27  ;;  %v6463_v44 = vadd.f32 %v6462_v32, %v6461_v22  ;;  %v6471_v27 = vrot.slane %v6470_v45, 4  ;;  %v6488_v59 = vadd.f32 %v6487_v10, %v6486_v53 }
 0xe61   :  { %v6434_v6 = vadd.f32 %v11415_v20, %v6414_v26  ;;  %v8158_v35 = vpop.eup %8157  ;;  %v6477_v18 = vsel %vm892_vm2, %v6433_v46, 0.0  ;;  %v6449_v23 = vadd.f32 %v6448_v56, %v6447_v36 }
 0xe62   :  { %v6417_v7 = vmul.f32 %v11409_v14, %v6397_v33  ;;  %v6398_v60 = vmul.f32 %v8158_v35, %v11385_v34  ;;  %v6464_v49 = vrot.slane %v6463_v44, 2  ;;  %v6455_v34 = vrot.slane %v6454_v52, 2 }
 0xe63   :  { %v6478_v55 = vsel %vm892_vm2, %v6434_v6, 0.0  ;;  %v6472_v3 = vadd.f32 %v6471_v27, %v6470_v45  ;;  %v6489_v5 = vrot.slane %v6488_v59, 4  ;;  %v6514_v45 = vmul.f32 0.0625, %v6449_v23 }
 0xe64   :  { %v6479_v2 = vadd.f32 %v6478_v55, %v6477_v18  ;;  %v6418_v50 = vmul.f32 %v11409_v14, %v6398_v60  ;;  %v6437_v0 = vadd.f32 %v11415_v20, %v6417_v7  ;;  %v8160_v12 = vpop.eup %8159  ;;  %v6465_v38 = vadd.f32 %v6464_v49, %v6463_v44 }
 0xe65   :  { %v6399_v61 = vmul.f32 %v8160_v12, %v11390_v42  ;;  %v6456_v16 = vadd.f32 %v6455_v34, %v6454_v52  ;;  %v6473_v28 = vrot.slane %v6472_v3, 2  ;;  %v6490_v57 = vadd.f32 %v6489_v5, %v6488_v59 }
 0xe66   :  { %v6480_v51 = vrot.slane %v6479_v2, 4  ;;  %v6438_v29 = vadd.f32 %v11415_v20, %v6418_v50  ;;  %v6495_v37 = vsel %vm892_vm2, %v6437_v0, 0.0  ;;  %v6466_v48 = vrot.slane %v6465_v38, 1  ;;  %v8162_v40 = vpop.eup %8161 }
 0xe67   :  { %v6419_v22 = vmul.f32 %v11409_v14, %v6399_v61  ;;  %v6457_v17 = vrot.slane %v6456_v16, 1  ;;  %v6474_v13 = vadd.f32 %v6473_v28, %v6472_v3  ;;  %v6491_v54 = vrot.slane %v6490_v57, 2 }
 0xe68   :  { %v6481_v19 = vadd.f32 %v6480_v51, %v6479_v2  ;;  %v6496_v58 = vsel %vm892_vm2, %v6438_v29, 0.0  ;;  %v6400_v32 = vmul.f32 %v8162_v40, %v11396_v24  ;;  %v6467_v46 = vadd.f32 %v6466_v48, %v6465_v38 }
 0xe69   :  { %v6497_v41 = vadd.f32 %v6496_v58, %v6495_v37  ;;  %v6439_v11 = vadd.f32 %v11415_v20, %v6419_v22  ;;  %v6458_v4 = vadd.f32 %v6457_v17, %v6456_v16  ;;  %v6475_v47 = vrot.slane %v6474_v13, 1  ;;  %v6783_v22 = vld [vmem:[#allocation20] ss:$0 sm:$0xff] }
 0xe6a   :  { %v6482_v62 = vrot.slane %v6481_v19, 2  ;;  %v6420_v1 = vmul.f32 %v11409_v14, %v6400_v32  ;;  %v6492_v39 = vadd.f32 %v6491_v54, %v6490_v57  ;;  %v6516_v6 = vmul.f32 0.0625, %v6467_v46 }
 0xe6b   :  { %v6498_v63 = vrot.slane %v6497_v41, 4  ;;  %v6504_v25 = vsel %vm892_vm2, %v6439_v11, 0.0  ;;  %v6515_v44 = vmul.f32 0.0625, %v6458_v4  ;;  %v6476_v10 = vadd.f32 %v6475_v47, %v6474_v13 }
 0xe6c   :  { %v6483_v15 = vadd.f32 %v6482_v62, %v6481_v19  ;;  %v6440_v21 = vadd.f32 %v11415_v20, %v6420_v1  ;;  %v6493_v18 = vrot.slane %v6492_v39, 1  ;;  %v6522_v7 = vpack.c.bf16 %v6514_v45, %v6514_v45 }
 0xe6d   :  { %v6499_v8 = vadd.f32 %v6498_v63, %v6497_v41  ;;  %v6524_v14 = vpack.c.bf16 %v6516_v6, %v6516_v6  ;;  %v6523_v53 = vpack.c.bf16 %v6515_v44, %v6515_v44  ;;  %v6517_v2 = vmul.f32 0.0625, %v6476_v10 }
 0xe6e   :  { %v6484_v42 = vrot.slane %v6483_v15, 1  ;;  %v6505_v24 = vsel %vm892_vm2, %v6440_v21, 0.0  ;;  %v6494_v20 = vadd.f32 %v6493_v18, %v6492_v39  ;;  %v6549_v59 = vunpack.c.l.b16 %v6522_v7 }
 0xe6f   :  { %v6500_v30 = vrot.slane %v6499_v8, 2  ;;  %v6506_v55 = vadd.f32 %v6505_v24, %v6504_v25  ;;  %v6551_v31 = vunpack.c.l.b16 %v6524_v14  ;;  %v6550_v9 = vunpack.c.l.b16 %v6523_v53 }
 0xe70   :  { %v6485_v33 = vadd.f32 %v6484_v42, %v6483_v15  ;;  %v6525_v49 = vpack.c.bf16 %v6517_v2, %v6517_v2  ;;  %v6519_v29 = vmul.f32 0.0625, %v6494_v20 }
 0xe71   :  { %v6501_v26 = vadd.f32 %v6500_v30, %v6499_v8  ;;  %v6507_v60 = vrot.slane %v6506_v55, 4  ;;  %v6558_v3 = vsel %vm6557_vm6, %v6550_v9, %v6549_v59 }
 0xe72   :  { %v6518_v43 = vmul.f32 0.0625, %v6485_v33  ;;  %v6560_v37 = vsel %vm6559_vm7, %v6551_v31, %v6558_v3  ;;  %v6552_v12 = vunpack.c.l.b16 %v6525_v49  ;;  %v6527_v36 = vpack.c.bf16 %v6519_v29, %v6519_v29 }
 0xe73   :  { %v6502_v35 = vrot.slane %v6501_v26, 1  ;;  %v6508_v27 = vadd.f32 %v6507_v60, %v6506_v55 }
 0xe74   :  { %v6526_v51 = vpack.c.bf16 %v6518_v43, %v6518_v43  ;;  %v6562_v62 = vsel %vm6561_vm8, %v6552_v12, %v6560_v37  ;;  %v6554_v57 = vunpack.c.l.b16 %v6527_v36 }
 0xe75   :  { %v6503_v52 = vadd.f32 %v6502_v35, %v6501_v26  ;;  %v6509_v50 = vrot.slane %v6508_v27, 2 }
 0xe76   :  { %v6553_v5 = vunpack.c.l.b16 %v6526_v51 }
 0xe77   :  { %v6520_v0 = vmul.f32 0.0625, %v6503_v52  ;;  %v6510_v19 = vadd.f32 %v6509_v50, %v6508_v27 }
 0xe78   :  { %v6564_v16 = vsel %vm6563_vm9, %v6553_v5, %v6562_v62 }
 0xe79   :  { %v6511_v34 = vrot.slane %v6510_v19, 1  ;;  %v6528_v58 = vpack.c.bf16 %v6520_v0, %v6520_v0  ;;  %v6566_v56 = vsel %vm6565_vm10, %v6554_v57, %v6564_v16 }
 0xe7b   :  { %v6512_v38 = vadd.f32 %v6511_v34, %v6510_v19  ;;  %v6555_v61 = vunpack.c.l.b16 %v6528_v58 }
 0xe7d   :  { %v6521_v41 = vmul.f32 0.0625, %v6512_v38  ;;  %v6568_v48 = vsel %vm6567_vm11, %v6555_v61, %v6566_v56 }
 0xe7f   :  { %v6529_v28 = vpack.c.bf16 %v6521_v41, %v6521_v41 }
 0xe81   :  { %v6556_v63 = vunpack.c.l.b16 %v6529_v28 }
 0xe83   :  { %v6570_v8 = vsel %vm6569_vm12, %v6556_v63, %v6568_v48 }
 0xe84   :  { %v6571_v15 = vpack.c.b16 %v6570_v8, %v6570_v8 }
 0xe86   :  { %7478 = vmatmul.mubr.msk.bf16.vlgmr.msra.gmra.mrb[112].mxu1 %vm892_vm2, %v6571_v15 }
 0xf59   :  { %v6621_v40 = vpop.f32.mrb[112].mxu1 }
 0xf5a   :  { %v6622_v17 = vadd.f32 %v6783_v22, %v6621_v40  ;;  %v7479_v13 = vpop.f32.mrb[113].mxu1 }
 0xf5b   :  { %v6624_v54 = vpop.f32.mrb[114].mxu1 }
 0xf5c   :  { %6627 = vst.msk [vmem:[#allocation22] sm:$0xff] %vm262_vm1, %v6622_v17  ;;  %v7480_v30 = vpop.f32.mrb[115].mxu1 }
 0xf5d   :  { %8438 = shalt.err (!%p8435_p2)
}
 0xf5e   :  { %s8439_s5 = scalar_lea.hbm %s11500_s12, 128 }
 0xf5f   :  { %p8440_p3 = scmp.ne.s32.totalorder %s11500_s12, %s8439_s5  ;;  %p8443_p4 = scmp.lt.u32.totalorder %s8439_s5, %s11500_s12 }
 0xf61   :  { %p8445_p5 = pnand %p8443_p4, %p8440_p3 }
 0xf63   :  { %8448 = shalt.err (!%p8445_p5)
}
 0xf64   :  { %6637 = dma.vmem_to_hbm [thread:$0]  %s6635_s7, 128, %s11500_s12, [#allocation4]  }
 0xf65   :  { %8463 = dma.done.wait [#allocation4], 128  }
 0xf66   :  { %8464 = vsyncadd [#allocation4], 4294967168 }
 0xf67   :  { %6641 = vsyncpa [#allocation3], 1 }
 0xf68   :  { %6642 = vsyncpa [#allocation6], 1 }
 0xf69   :  { %6643 = vsyncpa [#allocation9], 1 }
 0xf6a   :  { %6644 = vsyncpa [#allocation12], 1 }
 0xf6b   :  { %6645 = vsyncpa [#allocation15], 1 }
 0xf6c   :  { %6646 = vsyncpa [#allocation18], 1 }
 0xf6d   :  { %6647 = vsyncpa [#allocation21], 1 }
 0xf6e   :  { %6648 = vsyncpa [#allocation4], 1 }

</bundles_post_ra>
